<compile_context>
chip_gen: v6e
topology: v6e:2x2x1
jax: 0.10.0
libtpu: 0.0.40
codegen_flags: <defaults>
</compile_context>

<pallas_src>
import functools
import math

import jax
import jax.numpy as jnp
from jax.experimental import pallas as pl
from jax.experimental.pallas import tpu as pltpu


def _convt_matmul_kernel(w_ref, patch_ref, b_ref, out_ref, *, apply_act):
    """One ConvTranspose2d layer as a single MXU matmul.

    w_ref:     (Cout, Cin*k*k)   pre-flipped, flattened weights
    patch_ref: (Cin*k*k, N)      im2col slab, N = Ho*Wo
    b_ref:     (Cout, 1)         bias
    out_ref:   (Cout, N)
    """
    v = jnp.dot(w_ref[...], patch_ref[...], preferred_element_type=jnp.float32)
    v = v + b_ref[...]
    if apply_act:
        # fused tail of the model: v * clamp(v + 3, 0, 6) / 6
        v = v * jnp.clip(v + 3.0, 0.0, 6.0) * (1.0 / 6.0)
    out_ref[...] = v.astype(out_ref.dtype)


def conv_transpose_pallas(x, w_flat, b2, stride, padding, output_padding,
                          apply_act=False):
    """Transposed conv for a single image; one pallas_call = one matmul.

    x:      (Cin, H, W) float32
    w_flat: (Cout, k*k*Cin)  from prepare_params (flipped, (kh,kw,ci)-flattened)
    b2:     (Cout, 1) float32
    """
    Cin, H, W = x.shape
    Cout, K_total = w_flat.shape
    k = math.isqrt(K_total // Cin)
    s, p, op = stride, padding, output_padding

    pad_lo = k - 1 - p
    pad_hi = k - 1 - p + op
    Hd, Wd = (H - 1) * s + 1, (W - 1) * s + 1
    Hp, Wp = Hd + pad_lo + pad_hi, Wd + pad_lo + pad_hi
    Ho, Wo = Hp - (k - 1), Wp - (k - 1)
    N = Ho * Wo

    # --- glue (XLA, fused under jit): zero-insertion (stride dilation) + padding ---
    if s == 1:
        xp = jnp.pad(x, ((0, 0), (pad_lo, pad_hi), (pad_lo, pad_hi)))
    else:
        xp = jnp.zeros((Cin, Hp, Wp), x.dtype).at[
            :, pad_lo:pad_lo + Hd:s, pad_lo:pad_lo + Wd:s].set(x)

    # --- glue: im2col patches; row order (kh, kw, ci) matches w_flat's flattening ---
    patches = jnp.concatenate(
        [xp[:, kh:kh + Ho, kw:kw + Wo].reshape(Cin, N)
         for kh in range(k) for kw in range(k)], axis=0)       # (k*k*Cin, N)

    out = pl.pallas_call(
        functools.partial(_convt_matmul_kernel, apply_act=apply_act),
        out_shape=jax.ShapeDtypeStruct((Cout, N), jnp.float32),
        in_specs=[pl.BlockSpec(memory_space=pltpu.MemorySpace.VMEM),
                  pl.BlockSpec(memory_space=pltpu.MemorySpace.VMEM),
                  pl.BlockSpec(memory_space=pltpu.MemorySpace.VMEM)],
        out_specs=pl.BlockSpec(memory_space=pltpu.MemorySpace.VMEM),
    )(w_flat, patches, b2)

    return out.reshape(Cout, Ho, Wo)


def prepare_params(params):
    """One-time weight prep (hoisted out of the forward pass).

    PyTorch ConvTranspose2d weight (Cin, Cout, k, k) -> flip spatially, reorder and
    flatten to (Cout, k*k*Cin) with index (kh*k + kw)*Cin + ci.
    """
    prepared = []
    for w, b in params:
        Cin, Cout, k, _ = w.shape
        w_eff = jnp.flip(w, axis=(2, 3))                          # (Cin, Cout, k, k)
        w_flat = jnp.transpose(w_eff, (1, 2, 3, 0)).reshape(Cout, k * k * Cin)
        prepared.append((w_flat, b.reshape(Cout, 1).astype(jnp.float32)))
    return prepared


def model_forward(x, prepared_params):
    """x: (1, Cin, H, W) NCHW, matching the PyTorch module."""
    (w1, b1), (w2, b2), (w3, b3) = prepared_params
    v = x[0]
    v1 = conv_transpose_pallas(v, w1, b1, stride=2, padding=1, output_padding=1)
    v2 = conv_transpose_pallas(v1, w2, b2, stride=1, padding=2, output_padding=2)
    v8 = conv_transpose_pallas(v2, w3, b3, stride=1, padding=1, output_padding=1,
                               apply_act=True)
    return v8[None]


# ----------------------- pure-JAX reference (for checking) -----------------
def _conv_transpose_ref(x, w, b, s, p, op):
    k = w.shape[2]
    w_eff = jnp.transpose(jnp.flip(w, (2, 3)), (1, 0, 2, 3))   # (Cout,Cin,k,k)
    out = jax.lax.conv_general_dilated(
        x, w_eff, window_strides=(1, 1),
        padding=[(k - 1 - p, k - 1 - p + op)] * 2,
        lhs_dilation=(s, s),
        dimension_numbers=('NCHW', 'OIHW', 'NCHW'))
    return out + b.reshape(1, -1, 1, 1)


def model_ref(x, params):
    (w1, b1), (w2, b2), (w3, b3) = params
    v1 = _conv_transpose_ref(x, w1, b1, 2, 1, 1)
    v2 = _conv_transpose_ref(v1, w2, b2, 1, 2, 2)
    v3 = _conv_transpose_ref(v2, w3, b3, 1, 1, 1)
    v6 = jnp.clip(v3 + 3.0, 0.0, 6.0)
    return v3 * v6 / 6.0


# ------------------------------------ main ---------------------------------
def _init_convt_params(key, cin, cout, k):
    # PyTorch default init: U(-sqrt(fan), sqrt(fan)), fan = 1/(cin*k*k)
    bound = 1.0 / jnp.sqrt(cin * k * k)
    kw_, kb_ = jax.random.split(key)
    w = jax.random.uniform(kw_, (cin, cout, k, k), jnp.float32, -bound, bound)
    b = jax.random.uniform(kb_, (cout,), jnp.float32, -bound, bound)
    return w, b


if __name__ == "__main__":
    key = jax.random.PRNGKey(0)
    kx, k1, k2, k3 = jax.random.split(key, 4)

    C = 32          # fixed by the module
    H = W = 12      # small spatial size for the example (module's sample is 36x36)
    x = jax.random.normal(kx, (1, C, H, W), jnp.float32)

    params = (
        _init_convt_params(k1, C, C, 3),   # conv_transpose1
        _init_convt_params(k2, C, C, 5),   # conv_transpose2
        _init_convt_params(k3, C, C, 3),   # conv_transpose3
    )
    prepared = prepare_params(params)      # one-time weight prep (hoisted)

    fwd = jax.jit(model_forward)
    out = jax.block_until_ready(fwd(x, prepared))
    ref = jax.block_until_ready(model_ref(x, params))

    assert out.shape == ref.shape, (out.shape, ref.shape)
    assert jnp.allclose(out, ref, rtol=1e-4, atol=1e-4), \
        float(jnp.max(jnp.abs(out - ref)))

    print("KERNEL_OK")
</pallas_src>

<mosaic_0001>
module attributes {stable_mosaic.version = 11 : i64} {
  func.func @_convt_matmul_kernel(%arg0: memref<32x288xf32, #tpu.memory_space<vmem>>, %arg1: memref<288x576xf32, #tpu.memory_space<vmem>>, %arg2: memref<32x1xf32, #tpu.memory_space<vmem>>, %arg3: memref<32x576xf32, #tpu.memory_space<vmem>>) attributes {dimension_semantics = [], scalar_prefetch = 0 : i64, scratch_operands = 0 : i64, tpu.core_type = #tpu.core_type<tc>} {
    %c0 = arith.constant 0 : index
    %c0_0 = arith.constant 0 : index
    %0 = vector.load %arg0[%c0, %c0_0] : memref<32x288xf32, #tpu.memory_space<vmem>>, vector<32x288xf32>
    %c0_1 = arith.constant 0 : index
    %c0_2 = arith.constant 0 : index
    %1 = vector.load %arg1[%c0_1, %c0_2] : memref<288x576xf32, #tpu.memory_space<vmem>>, vector<288x576xf32>
    %cst = arith.constant dense<0.000000e+00> : vector<32x576xf32>
    %2 = tpu.matmul %0, %1, %cst {dimension_numbers = #tpu.dot_dimension_numbers<[1], [0], [0], [1], [0, 0, 1, 1], [], []>} : vector<32x288xf32>, vector<288x576xf32>, vector<32x576xf32> -> vector<32x576xf32>
    %c0_3 = arith.constant 0 : index
    %c0_4 = arith.constant 0 : index
    %3 = vector.load %arg2[%c0_3, %c0_4] : memref<32x1xf32, #tpu.memory_space<vmem>>, vector<32x1xf32>
    %4 = vector.broadcast %3 : vector<32x1xf32> to vector<32x576xf32>
    %5 = arith.addf %2, %4 : vector<32x576xf32>
    %c0_5 = arith.constant 0 : index
    %c0_6 = arith.constant 0 : index
    %6 = vector.load %arg3[%c0_5, %c0_6] : memref<32x576xf32, #tpu.memory_space<vmem>>, vector<32x576xf32>
    tpu.vector_store %arg3[%c0_5, %c0_6], %5 {strides = array<i32>} : memref<32x576xf32, #tpu.memory_space<vmem>>, vector<32x576xf32>,
    return
  }
}

module attributes {stable_mosaic.version = 11 : i64} {
  func.func @_convt_matmul_kernel(%arg0: memref<32x800xf32, #tpu.memory_space<vmem>>, %arg1: memref<800x676xf32, #tpu.memory_space<vmem>>, %arg2: memref<32x1xf32, #tpu.memory_space<vmem>>, %arg3: memref<32x676xf32, #tpu.memory_space<vmem>>) attributes {dimension_semantics = [], scalar_prefetch = 0 : i64, scratch_operands = 0 : i64, tpu.core_type = #tpu.core_type<tc>} {
    %c0 = arith.constant 0 : index
    %c0_0 = arith.constant 0 : index
    %0 = vector.load %arg0[%c0, %c0_0] : memref<32x800xf32, #tpu.memory_space<vmem>>, vector<32x800xf32>
    %c0_1 = arith.constant 0 : index
    %c0_2 = arith.constant 0 : index
    %1 = vector.load %arg1[%c0_1, %c0_2] : memref<800x676xf32, #tpu.memory_space<vmem>>, vector<800x676xf32>
    %cst = arith.constant dense<0.000000e+00> : vector<32x676xf32>
    %2 = tpu.matmul %0, %1, %cst {dimension_numbers = #tpu.dot_dimension_numbers<[1], [0], [0], [1], [0, 0, 1, 1], [], []>} : vector<32x800xf32>, vector<800x676xf32>, vector<32x676xf32> -> vector<32x676xf32>
    %c0_3 = arith.constant 0 : index
    %c0_4 = arith.constant 0 : index
    %3 = vector.load %arg2[%c0_3, %c0_4] : memref<32x1xf32, #tpu.memory_space<vmem>>, vector<32x1xf32>
    %4 = vector.broadcast %3 : vector<32x1xf32> to vector<32x676xf32>
    %5 = arith.addf %2, %4 : vector<32x676xf32>
    %c0_5 = arith.constant 0 : index
    %c0_6 = arith.constant 0 : index
    %6 = vector.load %arg3[%c0_5, %c0_6] : memref<32x676xf32, #tpu.memory_space<vmem>>, vector<32x676xf32>
    tpu.vector_store %arg3[%c0_5, %c0_6], %5 {strides = array<i32>} : memref<32x676xf32, #tpu.memory_space<vmem>>, vector<32x676xf32>,
    return
  }
}

module attributes {stable_mosaic.version = 11 : i64} {
  func.func @_convt_matmul_kernel(%arg0: memref<32x288xf32, #tpu.memory_space<vmem>>, %arg1: memref<288x729xf32, #tpu.memory_space<vmem>>, %arg2: memref<32x1xf32, #tpu.memory_space<vmem>>, %arg3: memref<32x729xf32, #tpu.memory_space<vmem>>) attributes {dimension_semantics = [], scalar_prefetch = 0 : i64, scratch_operands = 0 : i64, tpu.core_type = #tpu.core_type<tc>} {
    %c0 = arith.constant 0 : index
    %c0_0 = arith.constant 0 : index
    %0 = vector.load %arg0[%c0, %c0_0] : memref<32x288xf32, #tpu.memory_space<vmem>>, vector<32x288xf32>
    %c0_1 = arith.constant 0 : index
    %c0_2 = arith.constant 0 : index
    %1 = vector.load %arg1[%c0_1, %c0_2] : memref<288x729xf32, #tpu.memory_space<vmem>>, vector<288x729xf32>
    %cst = arith.constant dense<0.000000e+00> : vector<32x729xf32>
    %2 = tpu.matmul %0, %1, %cst {dimension_numbers = #tpu.dot_dimension_numbers<[1], [0], [0], [1], [0, 0, 1, 1], [], []>} : vector<32x288xf32>, vector<288x729xf32>, vector<32x729xf32> -> vector<32x729xf32>
    %c0_3 = arith.constant 0 : index
    %c0_4 = arith.constant 0 : index
    %3 = vector.load %arg2[%c0_3, %c0_4] : memref<32x1xf32, #tpu.memory_space<vmem>>, vector<32x1xf32>
    %4 = vector.broadcast %3 : vector<32x1xf32> to vector<32x729xf32>
    %5 = arith.addf %2, %4 : vector<32x729xf32>
    %cst_5 = arith.constant 3.000000e+00 : f32
    %6 = vector.broadcast %cst_5 : f32 to vector<32x729xf32>
    %7 = arith.addf %5, %6 : vector<32x729xf32>
    %cst_6 = arith.constant 0.000000e+00 : f32
    %cst_7 = arith.constant 6.000000e+00 : f32
    %8 = vector.broadcast %cst_6 : f32 to vector<32x729xf32>
    %9 = arith.maximumf %8, %7 : vector<32x729xf32>
    %10 = vector.broadcast %cst_7 : f32 to vector<32x729xf32>
    %11 = arith.minimumf %10, %9 : vector<32x729xf32>
    %12 = arith.mulf %5, %11 : vector<32x729xf32>
    %cst_8 = arith.constant 0.166666672 : f32
    %13 = vector.broadcast %cst_8 : f32 to vector<32x729xf32>
    %14 = arith.mulf %12, %13 : vector<32x729xf32>
    %c0_9 = arith.constant 0 : index
    %c0_10 = arith.constant 0 : index
    %15 = vector.load %arg3[%c0_9, %c0_10] : memref<32x729xf32, #tpu.memory_space<vmem>>, vector<32x729xf32>
    tpu.vector_store %arg3[%c0_9, %c0_10], %14 {strides = array<i32>} : memref<32x729xf32, #tpu.memory_space<vmem>>, vector<32x729xf32>,
    return
  }
}

</mosaic_0001>

<bundles_post_ra>
// kernel: model_forward.3
= control target key start
LH: loop header
LB: loop body
LE: loop exit
PB: predicated region body
PF: predicated region fallthrough
CT: control target
= control target key end

     0   :  { %v876_v3 = vmov 0.0   ;;  %v877_v4 = vmov 0   ;;  %vm230_vm0 = vcmask 261120   ;;  %vm773_vm1 = vcmask 523264   ;;  %s1660_s1 = inlined_call_operand.vmem [shape: f32[288,576], index: 1, kind: input, shape index: {}]   ;;  %s1661_s0 = inlined_call_operand.vmem [shape: f32[32,288], index: 0, kind: input, shape index: {}]   ;;  %s1662_s2 = inlined_call_operand.vmem [shape: f32[32,1], index: 2, kind: input, shape index: {}]   ;;  %s1663_s3 = inlined_call_operand.vmem [shape: f32[32,576], index: 3, kind: output, shape index: {}]  }
   0x1   :  { %v102_v0 = vld [vmem:[%s1660_s1 + $0x260] sm:$0xff]  ;;  %v101_v2 = vld [vmem:[%s1660_s1 + $0x258] sm:$0xff]  ;;  %396 = vmatprep.mubr.f32.mxu1 %v876_v3  ;;  %874 = vset.pattern.permute.xlu0 %v877_v4  ;;  %v96_v8 = vld [vmem:[%s1660_s1 + $0x230] sm:$0xff] }
   0x2   :  { %v202_v1 = vld [vmem:[%s1660_s1 + $0x580] sm:$0xff]  ;;  %243 = vmatprep.subr.mxu0 %v102_v0  ;;  %v201_v5 = vld [vmem:[%s1660_s1 + $0x578] sm:$0xff]  ;;  %v196_v9 = vld [vmem:[%s1660_s1 + $0x550] sm:$0xff]  ;;  %875 = vset.pattern.permute.xlu1 %v877_v4 }
   0x3   :  { %356 = vmatprep.subr.mxu1 %v202_v1  ;;  %v97_v6 = vld [vmem:[%s1660_s1 + $0x238] sm:$0xff]  ;;  %244 = vmatpush1.msra.mxu0 %v101_v2  ;;  %v92_v10 = vld [vmem:[%s1660_s1 + $0x210] sm:$0xff]  ;;  %v91_v12 = vld [vmem:[%s1660_s1 + $0x208] sm:$0xff] }
   0x4   :  { %v197_v7 = vld [vmem:[%s1660_s1 + $0x558] sm:$0xff]  ;;  %357 = vmatpush1.msra.mxu1 %v201_v5  ;;  %245 = vmatprep.subr.mxu0 %v97_v6  ;;  %v192_v11 = vld [vmem:[%s1660_s1 + $0x530] sm:$0xff]  ;;  %v191_v13 = vld [vmem:[%s1660_s1 + $0x528] sm:$0xff] }
   0x5   :  { %358 = vmatprep.subr.mxu1 %v197_v7  ;;  %246 = vmatpush1.msra.mxu0 %v96_v8  ;;  %v87_v14 = vld [vmem:[%s1660_s1 + $0x1e8] sm:$0xff]  ;;  %v86_v16 = vld [vmem:[%s1660_s1 + $0x1e0] sm:$0xff]  ;;  %v954_v19 = vld [vmem:[%s1661_s0 + $0x10] sm:$0xff] }
   0x6   :  { %359 = vmatpush1.msra.mxu1 %v196_v9  ;;  %v187_v15 = vld [vmem:[%s1660_s1 + $0x508] sm:$0xff]  ;;  %247 = vmatprep.subr.mxu0 %v92_v10  ;;  %v186_v17 = vld [vmem:[%s1660_s1 + $0x500] sm:$0xff]  ;;  %v104_v20 = vld [vmem:[%s1660_s1 + $0x270] sm:$0xff] }
   0x7   :  { %360 = vmatprep.subr.mxu1 %v192_v11  ;;  %248 = vmatpush1.msra.mxu0 %v91_v12  ;;  %v82_v18 = vld [vmem:[%s1660_s1 + $0x1c0] sm:$0xff]  ;;  %v81_v21 = vld [vmem:[%s1660_s1 + $0x1b8] sm:$0xff]  ;;  %v103_v22 = vld [vmem:[%s1660_s1 + $0x268] sm:$0xff] }
   0x8   :  { %361 = vmatpush1.msra.mxu1 %v191_v13  ;;  %249 = vmatprep.subr.mxu0 %v87_v14  ;;  %v77_v23 = vld [vmem:[%s1660_s1 + $0x198] sm:$0xff]  ;;  %v99_v24 = vld [vmem:[%s1660_s1 + $0x248] sm:$0xff]  ;;  %v76_v25 = vld [vmem:[%s1660_s1 + $0x190] sm:$0xff] }
   0x9   :  { %362 = vmatprep.subr.mxu1 %v187_v15  ;;  %250 = vmatpush1.msra.mxu0 %v86_v16  ;;  %v98_v26 = vld [vmem:[%s1660_s1 + $0x240] sm:$0xff]  ;;  %v72_v27 = vld [vmem:[%s1660_s1 + $0x170] sm:$0xff]  ;;  %v71_v29 = vld [vmem:[%s1660_s1 + $0x168] sm:$0xff] }
   0xa   :  { %363 = vmatpush1.msra.mxu1 %v186_v17  ;;  %251 = vmatprep.subr.mxu0 %v82_v18  ;;  %v94_v28 = vld [vmem:[%s1660_s1 + $0x220] sm:$0xff]  ;;  %v93_v30 = vld [vmem:[%s1660_s1 + $0x218] sm:$0xff]  ;;  %v67_v31 = vld [vmem:[%s1660_s1 + $0x148] sm:$0xff] }
   0xb   :  { %794 = vmatmul.mubr.msk.f32.vlgmr.msra.gmra.mxu1 %vm230_vm0, %v954_v19  ;;  %421 = vmatprep.subr.mxu1 %v104_v20  ;;  %v89_v32 = vld [vmem:[%s1660_s1 + $0x1f8] sm:$0xff]  ;;  %v66_v33 = vld [vmem:[%s1660_s1 + $0x140] sm:$0xff]  ;;  %v88_v34 = vld [vmem:[%s1660_s1 + $0x1f0] sm:$0xff] }
   0xc   :  { %252 = vmatpush1.msra.mxu0 %v81_v21  ;;  %422 = vmatpush1.msra.mxu1 %v103_v22  ;;  %v62_v35 = vld [vmem:[%s1660_s1 + $0x120] sm:$0xff]  ;;  %v84_v36 = vld [vmem:[%s1660_s1 + $0x1d0] sm:$0xff]  ;;  %v61_v37 = vld [vmem:[%s1660_s1 + $0x118] sm:$0xff] }
   0xd   :  { %253 = vmatprep.subr.mxu0 %v77_v23  ;;  %423 = vmatprep.subr.mxu1 %v99_v24  ;;  %v83_v38 = vld [vmem:[%s1660_s1 + $0x1c8] sm:$0xff]  ;;  %v57_v39 = vld [vmem:[%s1660_s1 + $0xf8] sm:$0xff]  ;;  %v56_v41 = vld [vmem:[%s1660_s1 + $0xf0] sm:$0xff] }
   0xe   :  { %254 = vmatpush1.msra.mxu0 %v76_v25  ;;  %424 = vmatpush1.msra.mxu1 %v98_v26  ;;  %v79_v40 = vld [vmem:[%s1660_s1 + $0x1a8] sm:$0xff]  ;;  %v78_v42 = vld [vmem:[%s1660_s1 + $0x1a0] sm:$0xff]  ;;  %v52_v43 = vld [vmem:[%s1660_s1 + $0xd0] sm:$0xff] }
   0xf   :  { %255 = vmatprep.subr.mxu0 %v72_v27  ;;  %425 = vmatprep.subr.mxu1 %v94_v28  ;;  %v74_v44 = vld [vmem:[%s1660_s1 + $0x180] sm:$0xff]  ;;  %v51_v45 = vld [vmem:[%s1660_s1 + $0xc8] sm:$0xff]  ;;  %v73_v46 = vld [vmem:[%s1660_s1 + $0x178] sm:$0xff] }
  0x10   :  { %256 = vmatpush1.msra.mxu0 %v71_v29  ;;  %426 = vmatpush1.msra.mxu1 %v93_v30  ;;  %v47_v47 = vld [vmem:[%s1660_s1 + $0xa8] sm:$0xff]  ;;  %v69_v48 = vld [vmem:[%s1660_s1 + $0x158] sm:$0xff]  ;;  %v46_v49 = vld [vmem:[%s1660_s1 + $0xa0] sm:$0xff] }
  0x11   :  { %257 = vmatprep.subr.mxu0 %v67_v31  ;;  %427 = vmatprep.subr.mxu1 %v89_v32  ;;  %v68_v50 = vld [vmem:[%s1660_s1 + $0x150] sm:$0xff]  ;;  %v42_v51 = vld [vmem:[%s1660_s1 + $0x80] sm:$0xff]  ;;  %v41_v53 = vld [vmem:[%s1660_s1 + $0x78] sm:$0xff] }
  0x12   :  { %258 = vmatpush1.msra.mxu0 %v66_v33  ;;  %428 = vmatpush1.msra.mxu1 %v88_v34  ;;  %v64_v52 = vld [vmem:[%s1660_s1 + $0x130] sm:$0xff]  ;;  %v63_v54 = vld [vmem:[%s1660_s1 + $0x128] sm:$0xff]  ;;  %v37_v55 = vld [vmem:[%s1660_s1 + $0x58] sm:$0xff] }
  0x13   :  { %259 = vmatprep.subr.mxu0 %v62_v35  ;;  %429 = vmatprep.subr.mxu1 %v84_v36  ;;  %v59_v56 = vld [vmem:[%s1660_s1 + $0x108] sm:$0xff]  ;;  %v36_v57 = vld [vmem:[%s1660_s1 + $0x50] sm:$0xff]  ;;  %v58_v58 = vld [vmem:[%s1660_s1 + $0x100] sm:$0xff] }
  0x14   :  { %260 = vmatpush1.msra.mxu0 %v61_v37  ;;  %430 = vmatpush1.msra.mxu1 %v83_v38  ;;  %v32_v59 = vld [vmem:[%s1660_s1 + $0x30] sm:$0xff]  ;;  %v54_v60 = vld [vmem:[%s1660_s1 + $0xe0] sm:$0xff]  ;;  %v31_v61 = vld [vmem:[%s1660_s1 + $0x28] sm:$0xff] }
  0x15   :  { %261 = vmatprep.subr.mxu0 %v57_v39  ;;  %431 = vmatprep.subr.mxu1 %v79_v40  ;;  %v53_v62 = vld [vmem:[%s1660_s1 + $0xd8] sm:$0xff]  ;;  %v27_v63 = vld [vmem:[%s1660_s1 + $0x8] sm:$0xff]  ;;  %v26_v1 = vld [vmem:[%s1660_s1] sm:$0xff] }
  0x16   :  { %262 = vmatpush1.msra.mxu0 %v56_v41  ;;  %432 = vmatpush1.msra.mxu1 %v78_v42  ;;  %v49_v0 = vld [vmem:[%s1660_s1 + $0xb8] sm:$0xff]  ;;  %v48_v2 = vld [vmem:[%s1660_s1 + $0xb0] sm:$0xff]  ;;  %v182_v5 = vld [vmem:[%s1660_s1 + $0x4e0] sm:$0xff] }
  0x17   :  { %263 = vmatprep.subr.mxu0 %v52_v43  ;;  %433 = vmatprep.subr.mxu1 %v74_v44  ;;  %v44_v6 = vld [vmem:[%s1660_s1 + $0x90] sm:$0xff]  ;;  %v181_v7 = vld [vmem:[%s1660_s1 + $0x4d8] sm:$0xff]  ;;  %v43_v8 = vld [vmem:[%s1660_s1 + $0x88] sm:$0xff] }
  0x18   :  { %264 = vmatpush1.msra.mxu0 %v51_v45  ;;  %434 = vmatpush1.msra.mxu1 %v73_v46  ;;  %v177_v9 = vld [vmem:[%s1660_s1 + $0x4b8] sm:$0xff]  ;;  %v39_v10 = vld [vmem:[%s1660_s1 + $0x68] sm:$0xff]  ;;  %v176_v11 = vld [vmem:[%s1660_s1 + $0x4b0] sm:$0xff] }
  0x19   :  { %265 = vmatprep.subr.mxu0 %v47_v47  ;;  %435 = vmatprep.subr.mxu1 %v69_v48  ;;  %v38_v12 = vld [vmem:[%s1660_s1 + $0x60] sm:$0xff]  ;;  %v172_v13 = vld [vmem:[%s1660_s1 + $0x490] sm:$0xff]  ;;  %v171_v15 = vld [vmem:[%s1660_s1 + $0x488] sm:$0xff] }
  0x1a   :  { %266 = vmatpush1.msra.mxu0 %v46_v49  ;;  %436 = vmatpush1.msra.mxu1 %v68_v50  ;;  %v34_v14 = vld [vmem:[%s1660_s1 + $0x40] sm:$0xff]  ;;  %v33_v16 = vld [vmem:[%s1660_s1 + $0x38] sm:$0xff]  ;;  %v167_v17 = vld [vmem:[%s1660_s1 + $0x468] sm:$0xff] }
  0x1b   :  { %267 = vmatprep.subr.mxu0 %v42_v51  ;;  %437 = vmatprep.subr.mxu1 %v64_v52  ;;  %v29_v18 = vld [vmem:[%s1660_s1 + $0x18] sm:$0xff]  ;;  %v166_v20 = vld [vmem:[%s1660_s1 + $0x460] sm:$0xff]  ;;  %v28_v21 = vld [vmem:[%s1660_s1 + $0x10] sm:$0xff] }
  0x1c   :  { %268 = vmatpush1.msra.mxu0 %v41_v53  ;;  %438 = vmatpush1.msra.mxu1 %v63_v54  ;;  %v162_v22 = vld [vmem:[%s1660_s1 + $0x440] sm:$0xff]  ;;  %v184_v23 = vld [vmem:[%s1660_s1 + $0x4f0] sm:$0xff]  ;;  %v161_v24 = vld [vmem:[%s1660_s1 + $0x438] sm:$0xff] }
  0x1d   :  { %269 = vmatprep.subr.mxu0 %v37_v55  ;;  %439 = vmatprep.subr.mxu1 %v59_v56  ;;  %v183_v25 = vld [vmem:[%s1660_s1 + $0x4e8] sm:$0xff]  ;;  %v157_v26 = vld [vmem:[%s1660_s1 + $0x418] sm:$0xff]  ;;  %v156_v28 = vld [vmem:[%s1660_s1 + $0x410] sm:$0xff] }
  0x1e   :  { %270 = vmatpush1.msra.mxu0 %v36_v57  ;;  %440 = vmatpush1.msra.mxu1 %v58_v58  ;;  %v179_v27 = vld [vmem:[%s1660_s1 + $0x4c8] sm:$0xff]  ;;  %v178_v29 = vld [vmem:[%s1660_s1 + $0x4c0] sm:$0xff]  ;;  %v152_v30 = vld [vmem:[%s1660_s1 + $0x3f0] sm:$0xff] }
  0x1f   :  { %271 = vmatprep.subr.mxu0 %v32_v59  ;;  %441 = vmatprep.subr.mxu1 %v54_v60  ;;  %v174_v31 = vld [vmem:[%s1660_s1 + $0x4a0] sm:$0xff]  ;;  %v151_v32 = vld [vmem:[%s1660_s1 + $0x3e8] sm:$0xff]  ;;  %v173_v33 = vld [vmem:[%s1660_s1 + $0x498] sm:$0xff] }
  0x20   :  { %272 = vmatpush1.msra.mxu0 %v31_v61  ;;  %442 = vmatpush1.msra.mxu1 %v53_v62  ;;  %v147_v34 = vld [vmem:[%s1660_s1 + $0x3c8] sm:$0xff]  ;;  %v169_v35 = vld [vmem:[%s1660_s1 + $0x478] sm:$0xff]  ;;  %v146_v36 = vld [vmem:[%s1660_s1 + $0x3c0] sm:$0xff] }
  0x21   :  { %273 = vmatprep.subr.mxu0 %v27_v63  ;;  %443 = vmatprep.subr.mxu1 %v49_v0  ;;  %v168_v37 = vld [vmem:[%s1660_s1 + $0x470] sm:$0xff]  ;;  %v142_v38 = vld [vmem:[%s1660_s1 + $0x3a0] sm:$0xff]  ;;  %v141_v40 = vld [vmem:[%s1660_s1 + $0x398] sm:$0xff] }
  0x22   :  { %274 = vmatpush1.msra.mxu0 %v26_v1  ;;  %444 = vmatpush1.msra.mxu1 %v48_v2  ;;  %v164_v39 = vld [vmem:[%s1660_s1 + $0x450] sm:$0xff]  ;;  %v163_v41 = vld [vmem:[%s1660_s1 + $0x448] sm:$0xff]  ;;  %v137_v42 = vld [vmem:[%s1660_s1 + $0x378] sm:$0xff] }
  0x23   :  { %275 = vmatprep.subr.mxu0 %v182_v5  ;;  %445 = vmatprep.subr.mxu1 %v44_v6  ;;  %v159_v43 = vld [vmem:[%s1660_s1 + $0x428] sm:$0xff]  ;;  %v136_v44 = vld [vmem:[%s1660_s1 + $0x370] sm:$0xff]  ;;  %v158_v45 = vld [vmem:[%s1660_s1 + $0x420] sm:$0xff] }
  0x24   :  { %276 = vmatpush2.msra.mxu0 %v181_v7  ;;  %446 = vmatpush1.msra.mxu1 %v43_v8  ;;  %v132_v46 = vld [vmem:[%s1660_s1 + $0x350] sm:$0xff]  ;;  %v154_v47 = vld [vmem:[%s1660_s1 + $0x400] sm:$0xff]  ;;  %v131_v48 = vld [vmem:[%s1660_s1 + $0x348] sm:$0xff] }
  0x25   :  { %277 = vmatprep.subr.mxu0 %v177_v9  ;;  %447 = vmatprep.subr.mxu1 %v39_v10  ;;  %v153_v49 = vld [vmem:[%s1660_s1 + $0x3f8] sm:$0xff]  ;;  %v127_v50 = vld [vmem:[%s1660_s1 + $0x328] sm:$0xff]  ;;  %v126_v52 = vld [vmem:[%s1660_s1 + $0x320] sm:$0xff] }
  0x26   :  { %278 = vmatpush2.msra.mxu0 %v176_v11  ;;  %448 = vmatpush1.msra.mxu1 %v38_v12  ;;  %v149_v51 = vld [vmem:[%s1660_s1 + $0x3d8] sm:$0xff]  ;;  %v148_v53 = vld [vmem:[%s1660_s1 + $0x3d0] sm:$0xff]  ;;  %v122_v54 = vld [vmem:[%s1660_s1 + $0x300] sm:$0xff] }
  0x27   :  { %279 = vmatprep.subr.mxu0 %v172_v13  ;;  %449 = vmatprep.subr.mxu1 %v34_v14  ;;  %v144_v55 = vld [vmem:[%s1660_s1 + $0x3b0] sm:$0xff]  ;;  %v121_v56 = vld [vmem:[%s1660_s1 + $0x2f8] sm:$0xff]  ;;  %v143_v57 = vld [vmem:[%s1660_s1 + $0x3a8] sm:$0xff] }
  0x28   :  { %280 = vmatpush2.msra.mxu0 %v171_v15  ;;  %450 = vmatpush1.msra.mxu1 %v33_v16  ;;  %v117_v58 = vld [vmem:[%s1660_s1 + $0x2d8] sm:$0xff]  ;;  %v139_v59 = vld [vmem:[%s1660_s1 + $0x388] sm:$0xff]  ;;  %v116_v60 = vld [vmem:[%s1660_s1 + $0x2d0] sm:$0xff] }
  0x29   :  { %281 = vmatprep.subr.mxu0 %v167_v17  ;;  %451 = vmatprep.subr.mxu1 %v29_v18  ;;  %v1267_v61 = vld [vmem:[%s1661_s0 + $0x28] sm:$0xff]  ;;  %v138_v62 = vld [vmem:[%s1660_s1 + $0x380] sm:$0xff]  ;;  %v112_v63 = vld [vmem:[%s1660_s1 + $0x2b0] sm:$0xff] }
  0x2a   :  { %282 = vmatpush2.msra.mxu0 %v166_v20  ;;  %452 = vmatpush1.msra.mxu1 %v28_v21  ;;  %v134_v0 = vld [vmem:[%s1660_s1 + $0x360] sm:$0xff]  ;;  %v111_v1 = vld [vmem:[%s1660_s1 + $0x2a8] sm:$0xff]  ;;  %v133_v2 = vld [vmem:[%s1660_s1 + $0x358] sm:$0xff] }
  0x2b   :  { %283 = vmatprep.subr.mxu0 %v162_v22  ;;  %453 = vmatprep.subr.mxu1 %v184_v23  ;;  %v107_v5 = vld [vmem:[%s1660_s1 + $0x288] sm:$0xff]  ;;  %v129_v6 = vld [vmem:[%s1660_s1 + $0x338] sm:$0xff]  ;;  %v106_v7 = vld [vmem:[%s1660_s1 + $0x280] sm:$0xff] }
  0x2c   :  { %284 = vmatpush2.msra.mxu0 %v161_v24  ;;  %454 = vmatpush2.msra.mxu1 %v183_v25  ;;  %v1299_v8 = vld [vmem:[%s1661_s0 + $0x8] sm:$0xff]  ;;  %v1304_v9 = vld [vmem:[%s1661_s0 + $0x40] sm:$0xff]  ;;  %v128_v11 = vld [vmem:[%s1660_s1 + $0x330] sm:$0xff] }
  0x2d   :  { %285 = vmatprep.subr.mxu0 %v157_v26  ;;  %455 = vmatprep.subr.mxu1 %v179_v27  ;;  %v1309_v10 = vld [vmem:[%s1661_s0] sm:$0xff]  ;;  %v124_v12 = vld [vmem:[%s1660_s1 + $0x310] sm:$0xff]  ;;  %v123_v14 = vld [vmem:[%s1660_s1 + $0x308] sm:$0xff] }
  0x2e   :  { %286 = vmatpush2.msra.mxu0 %v156_v28  ;;  %456 = vmatpush2.msra.mxu1 %v178_v29  ;;  %v1322_v13 = vld [vmem:[%s1661_s0 + $0x20] sm:$0xff]  ;;  %v204_v15 = vld [vmem:[%s1660_s1 + $0x590] sm:$0xff]  ;;  %v119_v16 = vld [vmem:[%s1660_s1 + $0x2e8] sm:$0xff] }
  0x2f   :  { %287 = vmatprep.subr.mxu0 %v152_v30  ;;  %457 = vmatprep.subr.mxu1 %v174_v31  ;;  %v1340_v17 = vld [vmem:[%s1661_s0 + $0x58] sm:$0xff]  ;;  %v118_v18 = vld [vmem:[%s1660_s1 + $0x2e0] sm:$0xff]  ;;  %v203_v25 = vld [vmem:[%s1660_s1 + $0x588] sm:$0xff] }
  0x30   :  { %288 = vmatpush2.msra.mxu0 %v151_v32  ;;  %458 = vmatpush2.msra.mxu1 %v173_v33  ;;  %v1349_v20 = vld [vmem:[%s1661_s0 + $0x18] sm:$0xff]  ;;  %v114_v21 = vld [vmem:[%s1660_s1 + $0x2c0] sm:$0xff]  ;;  %v108_v26 = vld [vmem:[%s1660_s1 + $0x290] sm:$0xff] }
  0x31   :  { %289 = vmatprep.subr.mxu0 %v147_v34  ;;  %459 = vmatprep.subr.mxu1 %v169_v35  ;;  %v1357_v22 = vld [vmem:[%s1661_s0 + $0x38] sm:$0xff]  ;;  %v1378_v27 = vld [vmem:[%s1661_s0 + $0x30] sm:$0xff]  ;;  %v199_v30 = vld [vmem:[%s1660_s1 + $0x568] sm:$0xff] }
  0x32   :  { %290 = vmatpush2.msra.mxu0 %v146_v36  ;;  %460 = vmatpush2.msra.mxu1 %v168_v37  ;;  %v113_v23 = vld [vmem:[%s1660_s1 + $0x2b8] sm:$0xff]  ;;  %v180_v31 = vld [vmem:[%s1660_s1 + $0x4d0] sm:$0xff]  ;;  %v198_v33 = vld [vmem:[%s1660_s1 + $0x560] sm:$0xff] }
  0x33   :  { %291 = vmatprep.subr.mxu0 %v142_v38  ;;  %461 = vmatprep.subr.mxu1 %v164_v39  ;;  %v109_v24 = vld [vmem:[%s1660_s1 + $0x298] sm:$0xff]  ;;  %v1397_v32 = vld [vmem:[%s1661_s0 + $0x50] sm:$0xff]  ;;  %v1409_v35 = vld [vmem:[%s1661_s0 + $0x48] sm:$0xff] }
  0x34   :  { %292 = vmatpush2.msra.mxu0 %v141_v40  ;;  %462 = vmatpush2.msra.mxu1 %v163_v41  ;;  %v185_v28 = vld [vmem:[%s1660_s1 + $0x4f8] sm:$0xff]  ;;  %v100_v34 = vld [vmem:[%s1660_s1 + $0x250] sm:$0xff]  ;;  %v194_v36 = vld [vmem:[%s1660_s1 + $0x540] sm:$0xff] }
  0x35   :  { %293 = vmatprep.subr.mxu0 %v137_v42  ;;  %463 = vmatprep.subr.mxu1 %v159_v43  ;;  %v105_v29 = vld [vmem:[%s1660_s1 + $0x278] sm:$0xff]  ;;  %v175_v37 = vld [vmem:[%s1660_s1 + $0x4a8] sm:$0xff]  ;;  %v170_v41 = vld [vmem:[%s1660_s1 + $0x480] sm:$0xff] }
  0x36   :  { %294 = vmatpush2.msra.mxu0 %v136_v44  ;;  %464 = vmatpush2.msra.mxu1 %v158_v45  ;;  %v193_v38 = vld [vmem:[%s1660_s1 + $0x538] sm:$0xff]  ;;  %v95_v39 = vld [vmem:[%s1660_s1 + $0x228] sm:$0xff]  ;;  %v188_v42 = vld [vmem:[%s1660_s1 + $0x510] sm:$0xff] }
  0x37   :  { %295 = vmatprep.subr.mxu0 %v132_v46  ;;  %465 = vmatprep.subr.mxu1 %v154_v47  ;;  %v189_v40 = vld [vmem:[%s1660_s1 + $0x518] sm:$0xff]  ;;  %v90_v43 = vld [vmem:[%s1660_s1 + $0x200] sm:$0xff]  ;;  %v160_v46 = vld [vmem:[%s1660_s1 + $0x430] sm:$0xff] }
  0x38   :  { %296 = vmatpush2.msra.mxu0 %v131_v48  ;;  %466 = vmatpush2.msra.mxu1 %v153_v49  ;;  %v165_v44 = vld [vmem:[%s1660_s1 + $0x458] sm:$0xff]  ;;  %v80_v47 = vld [vmem:[%s1660_s1 + $0x1b0] sm:$0xff]  ;;  %v155_v48 = vld [vmem:[%s1660_s1 + $0x408] sm:$0xff] }
  0x39   :  { %297 = vmatprep.subr.mxu0 %v127_v50  ;;  %467 = vmatprep.subr.mxu1 %v149_v51  ;;  %v85_v45 = vld [vmem:[%s1660_s1 + $0x1d8] sm:$0xff]  ;;  %v75_v49 = vld [vmem:[%s1660_s1 + $0x188] sm:$0xff]  ;;  %v150_v50 = vld [vmem:[%s1660_s1 + $0x3e0] sm:$0xff] }
  0x3a   :  { %298 = vmatpush2.msra.mxu0 %v126_v52  ;;  %468 = vmatpush2.msra.mxu1 %v148_v53  ;;  %v70_v51 = vld [vmem:[%s1660_s1 + $0x160] sm:$0xff]  ;;  %v145_v52 = vld [vmem:[%s1660_s1 + $0x3b8] sm:$0xff] }
  0x3b   :  { %299 = vmatprep.subr.mxu0 %v122_v54  ;;  %469 = vmatprep.subr.mxu1 %v144_v55  ;;  %v65_v53 = vld [vmem:[%s1660_s1 + $0x138] sm:$0xff]  ;;  %v140_v54 = vld [vmem:[%s1660_s1 + $0x390] sm:$0xff] }
  0x3c   :  { %300 = vmatpush2.msra.mxu0 %v121_v56  ;;  %470 = vmatpush2.msra.mxu1 %v143_v57  ;;  %v60_v55 = vld [vmem:[%s1660_s1 + $0x110] sm:$0xff]  ;;  %v135_v56 = vld [vmem:[%s1660_s1 + $0x368] sm:$0xff]  ;;  %v205_v57 = vld [vmem:[%s1660_s1 + $0x598] sm:$0xff] }
  0x3d   :  { %301 = vmatprep.subr.mxu0 %v117_v58  ;;  %402 = vmatprep.mubr.f32.mxu1 %v876_v3  ;;  %v55_v58 = vld [vmem:[%s1660_s1 + $0xe8] sm:$0xff] }
  0x3e   :  { %471 = vmatprep.subr.mxu1 %v139_v59  ;;  %302 = vmatpush2.msra.mxu0 %v116_v60  ;;  %v130_v59 = vld [vmem:[%s1660_s1 + $0x340] sm:$0xff] }
  0x3f   :  { %795 = vmatmul.mubr.msk.f32.gmra.mxu1 %vm230_vm0, %v1267_v61  ;;  %303 = vmatprep.subr.mxu0 %v112_v63  ;;  %v50_v60 = vld [vmem:[%s1660_s1 + $0xc0] sm:$0xff]  ;;  %v125_v63 = vld [vmem:[%s1660_s1 + $0x318] sm:$0xff] }
  0x40   :  { %472 = vmatpush2.msra.mxu1 %v138_v62  ;;  %304 = vmatpush2.msra.mxu0 %v111_v1  ;;  %v200_v62 = vld [vmem:[%s1660_s1 + $0x570] sm:$0xff]  ;;  %v195_v1 = vld [vmem:[%s1660_s1 + $0x548] sm:$0xff] }
  0x41   :  { %473 = vmatprep.subr.mxu1 %v134_v0  ;;  %305 = vmatprep.subr.mxu0 %v107_v5  ;;  %v120_v0 = vld [vmem:[%s1660_s1 + $0x2f0] sm:$0xff]  ;;  %v115_v5 = vld [vmem:[%s1660_s1 + $0x2c8] sm:$0xff] }
  0x42   :  { %474 = vmatpush2.msra.mxu1 %v133_v2  ;;  %408 = vmatprep.mubr.f32.mxu1 %v876_v3  ;;  %v40_v2 = vld [vmem:[%s1660_s1 + $0x70] sm:$0xff] }
  0x43   :  { %475 = vmatprep.subr.mxu1 %v129_v6  ;;  %306 = vmatpush2.msra.mxu0 %v106_v7  ;;  %v190_v6 = vld [vmem:[%s1660_s1 + $0x520] sm:$0xff]  ;;  %v35_v7 = vld [vmem:[%s1660_s1 + $0x48] sm:$0xff] }
  0x44   :  { %307 = vmatprep.mubr.f32.mxu0 %v1299_v8  ;;  %796 = vmatmul.mubr.msk.f32.gmra.mxu1 %vm230_vm0, %v1304_v9 }
  0x45   :  { %308 = vmatmul.mubr.f32.vlgmr.msra.gmra.mxu0 %v1309_v10  ;;  %476 = vmatpush2.msra.mxu1 %v128_v11  ;;  %v30_v11 = vld [vmem:[%s1660_s1 + $0x20] sm:$0xff] }
  0x46   :  { %414 = vmatprep.mubr.f32.mxu1 %v876_v3  ;;  %477 = vmatprep.subr.mxu1 %v124_v12  ;;  %v206_v12 = vld [vmem:[%s1662_s2] sm:$0xff] }
  0x47   :  { %313 = vmatprep.mubr.f32.mxu0 %v1322_v13  ;;  %478 = vmatpush2.msra.mxu1 %v123_v14  ;;  %v208_v14 = vld [vmem:[%s1662_s2 + $0x10] sm:$0xff] }
  0x48   :  { %534 = vmatprep.subr.mxu0 %v204_v15  ;;  %479 = vmatprep.subr.mxu1 %v119_v16 }
  0x49   :  { %797 = vmatmul.mubr.msk.f32.gmra.mxu1 %vm230_vm0, %v1340_v17  ;;  %314 = vmatmul.mubr.f32.gmra.mxu0 %v1349_v20 }
  0x4a   :  { %480 = vmatpush2.msra.mxu1 %v118_v18  ;;  %319 = vmatprep.mubr.f32.mxu0 %v1357_v22 }
  0x4b   :  { %481 = vmatprep.subr.mxu1 %v114_v21  ;;  %485 = vmatprep.mubr.f32.mxu1 %v1299_v8 }
  0x4c   :  { %482 = vmatpush2.msra.mxu1 %v113_v23  ;;  %535 = vmatpush1.msra.mxu0 %v203_v25 }
  0x4d   :  { %483 = vmatprep.subr.mxu1 %v109_v24  ;;  %320 = vmatmul.mubr.f32.gmra.mxu0 %v1378_v27 }
  0x4e   :  { %484 = vmatpush2.msra.mxu1 %v108_v26  ;;  %536 = vmatprep.subr.mxu0 %v199_v30 }
  0x4f   :  { %486 = vmatmul.mubr.f32.vlgmr.msra.gmra.mxu1 %v1309_v10  ;;  %806 = vmatprep.subr.mxu1 %v185_v28 }
  0x50   :  { %807 = vmatpush3.msra.mxu1 %v105_v29  ;;  %325 = vmatprep.mubr.f32.mxu0 %v1397_v32 }
  0x51   :  { %808 = vmatprep.subr.mxu1 %v180_v31  ;;  %537 = vmatpush1.msra.mxu0 %v198_v33 }
  0x52   :  { %809 = vmatpush3.msra.mxu1 %v100_v34  ;;  %326 = vmatmul.mubr.f32.gmra.mxu0 %v1409_v35 }
  0x53   :  { %538 = vmatprep.subr.mxu0 %v194_v36  ;;  %810 = vmatprep.subr.mxu1 %v175_v37 }
  0x54   :  { %539 = vmatpush1.msra.mxu0 %v193_v38  ;;  %811 = vmatpush3.msra.mxu1 %v95_v39 }
  0x55   :  { %540 = vmatprep.subr.mxu0 %v189_v40  ;;  %812 = vmatprep.subr.mxu1 %v170_v41 }
  0x56   :  { %541 = vmatpush1.msra.mxu0 %v188_v42  ;;  %574 = vmatprep.mubr.f32.mxu0 %v876_v3 }
  0x57   :  { %813 = vmatpush3.msra.mxu1 %v90_v43  ;;  %798 = vmatmul.mubr.msk.f32.vlgmr.msra.gmra.mxu0 %vm230_vm0, %v954_v19 }
  0x58   :  { %814 = vmatprep.subr.mxu1 %v165_v44  ;;  %491 = vmatprep.mubr.f32.mxu1 %v1322_v13 }
  0x59   :  { %815 = vmatpush3.msra.mxu1 %v85_v45  ;;  %580 = vmatprep.mubr.f32.mxu0 %v876_v3 }
  0x5a   :  { %816 = vmatprep.subr.mxu1 %v160_v46  ;;  %492 = vmatmul.mubr.f32.gmra.mxu1 %v1349_v20 }
  0x5b   :  { %817 = vmatpush3.msra.mxu1 %v80_v47  ;;  %799 = vmatmul.mubr.msk.f32.gmra.mxu0 %vm230_vm0, %v1267_v61 }
  0x5c   :  { %818 = vmatprep.subr.mxu1 %v155_v48  ;;  %497 = vmatprep.mubr.f32.mxu1 %v1357_v22 }
  0x5d   :  { %819 = vmatpush3.msra.mxu1 %v75_v49  ;;  %586 = vmatprep.mubr.f32.mxu0 %v876_v3 }
  0x5e   :  { %820 = vmatprep.subr.mxu1 %v150_v50  ;;  %498 = vmatmul.mubr.f32.gmra.mxu1 %v1378_v27 }
  0x5f   :  { %821 = vmatpush3.msra.mxu1 %v70_v51  ;;  %800 = vmatmul.mubr.msk.f32.gmra.mxu0 %vm230_vm0, %v1304_v9 }
  0x60   :  { %822 = vmatprep.subr.mxu1 %v145_v52  ;;  %503 = vmatprep.mubr.f32.mxu1 %v1397_v32 }
  0x61   :  { %823 = vmatpush3.msra.mxu1 %v65_v53  ;;  %592 = vmatprep.mubr.f32.mxu0 %v876_v3  ;;  %v45_v3 = vld [vmem:[%s1660_s1 + $0x98] sm:$0xff] }
  0x62   :  { %824 = vmatprep.subr.mxu1 %v140_v54  ;;  %504 = vmatmul.mubr.f32.gmra.mxu1 %v1409_v35 }
  0x63   :  { %825 = vmatpush3.msra.mxu1 %v60_v55  ;;  %858 = vmatprep.subr.mxu0 %v205_v57 }
  0x64   :  { %826 = vmatprep.subr.mxu1 %v135_v56  ;;  %801 = vmatmul.mubr.msk.f32.gmra.mxu0 %vm230_vm0, %v1340_v17 }
  0x65   :  { %827 = vmatpush3.msra.mxu1 %v55_v58  ;;  %859 = vmatpush3.msra.mxu0 %v205_v57 }
  0x66   :  { %828 = vmatprep.subr.mxu1 %v130_v59  ;;  %860 = vmatprep.subr.mxu0 %v200_v62 }
  0x67   :  { %829 = vmatpush3.msra.mxu1 %v50_v60  ;;  %663 = vmatprep.mubr.f32.mxu1 %v1299_v8  ;;  %v110_v8 = vld [vmem:[%s1660_s1 + $0x2a0] sm:$0xff] }
  0x68   :  { %830 = vmatprep.subr.mxu1 %v125_v63  ;;  %861 = vmatpush3.msra.mxu0 %v200_v62 }
  0x69   :  { %831 = vmatpush3.msra.mxu1 %v45_v3  ;;  %862 = vmatprep.subr.mxu0 %v195_v1 }
  0x6a   :  { %832 = vmatprep.subr.mxu1 %v120_v0  ;;  %863 = vmatpush3.msra.mxu0 %v195_v1 }
  0x6b   :  { %833 = vmatpush3.msra.mxu1 %v40_v2  ;;  %864 = vmatprep.subr.mxu0 %v190_v6 }
  0x6c   :  { %834 = vmatprep.subr.mxu1 %v115_v5  ;;  %865 = vmatpush3.msra.mxu0 %v190_v6 }
  0x6d   :  { %835 = vmatpush3.msra.mxu1 %v35_v7  ;;  %866 = vmatprep.mubr.msk.f32.mxu0 %vm230_vm0, %v954_v19  ;;  %v207_v19 = vld [vmem:[%s1662_s2 + $0x8] sm:$0xff] }
  0x6e   :  { %836 = vmatprep.subr.mxu1 %v110_v8  ;;  %867 = vmatmul.mubr.msk.f32.vlgmr.msra.gmra.mxu0 %vm230_vm0, %v1267_v61  ;;  %v209_v61 = vld [vmem:[%s1662_s2 + $0x18] sm:$0xff] }
  0x6f   :  { %837 = vmatpush3.msra.mxu1 %v30_v11  ;;  %869 = vmatprep.mubr.msk.f32.mxu0 %vm230_vm0, %v1304_v9 }
  0x70   :  { %664 = vmatmul.mubr.f32.vlgmr.msra.gmra.mxu1 %v1309_v10  ;;  %212 = vperm.xlu0 %874, %v206_v12  }
  0x71   :  { %668 = vmatprep.mubr.f32.mxu1 %v1322_v13  ;;  %222 = vperm.xlu1 %875, %v208_v14  }
  0x72   :  { %870 = vmatmul.mubr.msk.f32.gmra.mxu0 %vm230_vm0, %v1340_v17 }
  0x74   :  { %669 = vmatmul.mubr.f32.gmra.mxu1 %v1349_v20  ;;  %217 = vperm.xlu0 %874, %v207_v19  }
  0x75   :  { %673 = vmatprep.mubr.f32.mxu1 %v1357_v22  ;;  %227 = vperm.xlu1 %875, %v209_v61  }
  0x78   :  { %674 = vmatmul.mubr.f32.gmra.mxu1 %v1378_v27 }
  0x79   :  { %678 = vmatprep.mubr.f32.mxu1 %v1397_v32 }
  0x7c   :  { %679 = vmatmul.mubr.f32.gmra.mxu1 %v1409_v35 }
  0xcb   :  { %v398_v4 = vpop.f32.mrf.mxu1 }
  0xcd   :  { %v400_v9 = vpop.f32.mrf.mxu1 }
  0xeb   :  { %v1568_v15 = vpop.permute.xlu0 %212 }
  0xec   :  { %v1578_v29 = vpop.permute.xlu1 %222 }
  0xef   :  { %v1572_v24 = vpop.permute.xlu0 %217 }
  0xf0   :  { %v1592_v40 = vpop.permute.xlu1 %227 }
  0xff   :  { %v404_v10 = vpop.f32.mrf.mxu1 }
 0x101   :  { %v406_v13 = vpop.f32.mrf.mxu1 }
 0x104   :  { %v410_v16 = vpop.f32.mrf.mxu1 }
 0x105   :  { %v309_v17 = vpop.f32.mrf.mxu0 }
 0x106   :  { %v310_v18 = vadd.f32 %v309_v17, %v1568_v15  ;;  %v412_v20 = vpop.f32.mrf.mxu1 }
 0x107   :  { %v311_v21 = vpop.f32.mrf.mxu0 }
 0x108   :  { %v399_v22 = vadd.f32 %v398_v4, %v310_v18  ;;  %v312_v23 = vadd.f32 %v311_v21, %v1568_v15 }
 0x109   :  { %v416_v26 = vpop.f32.mrf.mxu1  ;;  %v315_v27 = vpop.f32.mrf.mxu0 }
 0x10a   :  { %769 = vst [vmem:[%s1663_s3] sm:$0xff] %v399_v22  ;;  %v401_v25 = vadd.f32 %v400_v9, %v312_v23  ;;  %v316_v28 = vadd.f32 %v315_v27, %v1572_v24 }
 0x10b   :  { %v317_v30 = vpop.f32.mrf.mxu0  ;;  %v418_v33 = vpop.f32.mrf.mxu1 }
 0x10c   :  { %770 = vst [vmem:[%s1663_s3 + $0x8] sm:$0xff] %v401_v25  ;;  %v405_v31 = vadd.f32 %v404_v10, %v316_v28  ;;  %v318_v32 = vadd.f32 %v317_v30, %v1572_v24 }
 0x10d   :  { %v321_v34 = vpop.f32.mrf.mxu0 }
 0x10e   :  { %775 = vst [vmem:[%s1663_s3 + $0x28] sm:$0xff] %v405_v31  ;;  %v407_v35 = vadd.f32 %v406_v13, %v318_v32  ;;  %v322_v36 = vadd.f32 %v321_v34, %v1578_v29 }
 0x10f   :  { %v323_v37 = vpop.f32.mrf.mxu0  ;;  %v487_v41 = vpop.f32.mrf.mxu1 }
 0x110   :  { %776 = vst [vmem:[%s1663_s3 + $0x30] sm:$0xff] %v407_v35  ;;  %v411_v38 = vadd.f32 %v410_v16, %v322_v36  ;;  %v324_v39 = vadd.f32 %v323_v37, %v1578_v29  ;;  %v488_v49 = vadd.f32 %v487_v41, %v1568_v15 }
 0x111   :  { %v489_v46 = vpop.f32.mrf.mxu1 }
 0x112   :  { %780 = vst [vmem:[%s1663_s3 + $0x50] sm:$0xff] %v411_v38  ;;  %v413_v42 = vadd.f32 %v412_v20, %v324_v39  ;;  %v327_v43 = vpop.f32.mrf.mxu0  ;;  %v490_v52 = vadd.f32 %v489_v46, %v1568_v15 }
 0x113   :  { %v328_v44 = vadd.f32 %v327_v43, %v1592_v40 }
 0x114   :  { %781 = vst [vmem:[%s1663_s3 + $0x58] sm:$0xff] %v413_v42  ;;  %v329_v45 = vpop.f32.mrf.mxu0 }
 0x115   :  { %v417_v47 = vadd.f32 %v416_v26, %v328_v44  ;;  %v330_v48 = vadd.f32 %v329_v45, %v1592_v40 }
 0x117   :  { %785 = vst [vmem:[%s1663_s3 + $0x78] sm:$0xff] %v417_v47  ;;  %v419_v50 = vadd.f32 %v418_v33, %v330_v48  ;;  %v576_v51 = vpop.f32.mrf.mxu0 }
 0x118   :  { %v577_v53 = vadd.f32 %v576_v51, %v488_v49 }
 0x119   :  { %786 = vst [vmem:[%s1663_s3 + $0x80] sm:$0xff] %v419_v50  ;;  %v578_v54 = vpop.f32.mrf.mxu0 }
 0x11a   :  { %v493_v55 = vpop.f32.mrf.mxu1  ;;  %771 = vst [vmem:[%s1663_s3 + $0x10] sm:$0xff] %v577_v53  ;;  %v579_v56 = vadd.f32 %v578_v54, %v490_v52 }
 0x11b   :  { %v494_v57 = vadd.f32 %v493_v55, %v1572_v24  ;;  %v582_v59 = vpop.f32.mrf.mxu0 }
 0x11c   :  { %v495_v58 = vpop.f32.mrf.mxu1  ;;  %772 = vst [vmem:[%s1663_s3 + $0x18] sm:$0xff] %v579_v56 }
 0x11d   :  { %v496_v60 = vadd.f32 %v495_v58, %v1572_v24  ;;  %v583_v62 = vadd.f32 %v582_v59, %v494_v57  ;;  %v584_v3 = vpop.f32.mrf.mxu0 }
 0x11e   :  { %v499_v63 = vpop.f32.mrf.mxu1 }
 0x11f   :  { %777 = vst [vmem:[%s1663_s3 + $0x38] sm:$0xff] %v583_v62  ;;  %v500_v0 = vadd.f32 %v499_v63, %v1578_v29  ;;  %v585_v1 = vadd.f32 %v584_v3, %v496_v60  ;;  %v588_v5 = vpop.f32.mrf.mxu0 }
 0x120   :  { %v501_v2 = vpop.f32.mrf.mxu1 }
 0x121   :  { %778 = vst [vmem:[%s1663_s3 + $0x40] sm:$0xff] %v585_v1  ;;  %v502_v6 = vadd.f32 %v501_v2, %v1578_v29  ;;  %v589_v7 = vadd.f32 %v588_v5, %v500_v0  ;;  %v590_v11 = vpop.f32.mrf.mxu0 }
 0x122   :  { %v505_v8 = vpop.f32.mrf.mxu1 }
 0x123   :  { %782 = vst [vmem:[%s1663_s3 + $0x60] sm:$0xff] %v589_v7  ;;  %v506_v12 = vadd.f32 %v505_v8, %v1592_v40  ;;  %v591_v14 = vadd.f32 %v590_v11, %v502_v6 }
 0x124   :  { %v507_v19 = vpop.f32.mrf.mxu1  ;;  %v594_v4 = vpop.f32.mrf.mxu0 }
 0x125   :  { %783 = vst [vmem:[%s1663_s3 + $0x68] sm:$0xff] %v591_v14  ;;  %v508_v61 = vadd.f32 %v507_v19, %v1592_v40  ;;  %v595_v9 = vadd.f32 %v594_v4, %v506_v12 }
 0x126   :  { %v596_v10 = vpop.f32.mrf.mxu0 }
 0x127   :  { %787 = vst [vmem:[%s1663_s3 + $0x88] sm:$0xff] %v595_v9  ;;  %v597_v13 = vadd.f32 %v596_v10, %v508_v61 }
 0x129   :  { %788 = vst [vmem:[%s1663_s3 + $0x90] sm:$0xff] %v597_v13 }
 0x12e   :  { %v868_v17 = vpop.f32.mrf.mxu0 }
 0x130   :  { %v838_v16 = vpop.f32.mrf.mxu1  ;;  %v750_v22 = vpop.f32.mrf.mxu0 }
 0x132   :  { %v839_v18 = vpop.f32.mrf.mxu1  ;;  %v871_v30 = vpop.f32.mrf.mxu0 }
 0x133   :  { %v840_v20 = vadd.f32 %v839_v18, %v838_v16 }
 0x134   :  { %v841_v21 = vpop.f32.mrf.mxu1  ;;  %v760_v36 = vpop.f32.mrf.mxu0 }
 0x135   :  { %v666_v23 = vadd.f32 %v840_v20, %v1568_v15 }
 0x136   :  { %v842_v25 = vpop.f32.mrf.mxu1 }
 0x137   :  { %v843_v26 = vadd.f32 %v842_v25, %v841_v21  ;;  %v751_v27 = vadd.f32 %v750_v22, %v666_v23 }
 0x138   :  { %v844_v28 = vpop.f32.mrf.mxu1 }
 0x139   :  { %v671_v31 = vadd.f32 %v843_v26, %v1572_v24  ;;  %774 = vst.msk [vmem:[%s1663_s3 + $0x20] sm:$0xff] %vm773_vm1, %v751_v27 }
 0x13a   :  { %v845_v32 = vpop.f32.mrf.mxu1 }
 0x13b   :  { %v756_v33 = vadd.f32 %v868_v17, %v671_v31  ;;  %v846_v34 = vadd.f32 %v845_v32, %v844_v28 }
 0x13c   :  { %v847_v35 = vpop.f32.mrf.mxu1 }
 0x13d   :  { %779 = vst.msk [vmem:[%s1663_s3 + $0x48] sm:$0xff] %vm773_vm1, %v756_v33  ;;  %v676_v15 = vadd.f32 %v846_v34, %v1578_v29 }
 0x13e   :  { %v848_v37 = vpop.f32.mrf.mxu1 }
 0x13f   :  { %v849_v38 = vadd.f32 %v848_v37, %v847_v35  ;;  %v761_v24 = vadd.f32 %v760_v36, %v676_v15 }
 0x141   :  { %v681_v39 = vadd.f32 %v849_v38, %v1592_v40  ;;  %784 = vst.msk [vmem:[%s1663_s3 + $0x70] sm:$0xff] %vm773_vm1, %v761_v24 }
 0x143   :  { %v766_v41 = vadd.f32 %v871_v30, %v681_v39 }
 0x145   :  { %789 = vst.msk [vmem:[%s1663_s3 + $0x98] sm:$0xff] %vm773_vm1, %v766_v41 }

// kernel: model_forward.4
= control target key start
LH: loop header
LB: loop body
LE: loop exit
PB: predicated region body
PF: predicated region fallthrough
CT: control target
= control target key end

     0   :  { %vm666_vm0 = vcmask 261120   ;;  %vm1752_vm1 = vcmask 293888   ;;  %s4116_s1 = inlined_call_operand.vmem [shape: f32[800,676], index: 1, kind: input, shape index: {}]   ;;  %s4117_s0 = inlined_call_operand.vmem [shape: f32[32,800], index: 0, kind: input, shape index: {}]   ;;  %s4118_s2 = inlined_call_operand.vmem [shape: f32[32,1], index: 2, kind: input, shape index: {}]   ;;  %s4119_s3 = inlined_call_operand.vmem [shape: f32[32,676], index: 3, kind: output, shape index: {}]  }
   0x1   :  { %v133_v0 = vld [vmem:[%s4116_s1 + $0x2d8] sm:$0xff]  ;;  %v132_v2 = vld [vmem:[%s4116_s1 + $0x2d0] sm:$0xff]  ;;  %v127_v4 = vld [vmem:[%s4116_s1 + $0x2a8] sm:$0xff] }
   0x2   :  { %v325_v1 = vld [vmem:[%s4116_s1 + $0x8d8] sm:$0xff]  ;;  %679 = vmatprep.subr.mxu0 %v133_v0  ;;  %v324_v3 = vld [vmem:[%s4116_s1 + $0x8d0] sm:$0xff]  ;;  %v319_v5 = vld [vmem:[%s4116_s1 + $0x8a8] sm:$0xff] }
   0x3   :  { %768 = vmatprep.subr.mxu1 %v325_v1  ;;  %680 = vmatpush1.msra.mxu0 %v132_v2  ;;  %v126_v6 = vld [vmem:[%s4116_s1 + $0x2a0] sm:$0xff]  ;;  %v121_v8 = vld [vmem:[%s4116_s1 + $0x278] sm:$0xff]  ;;  %v120_v10 = vld [vmem:[%s4116_s1 + $0x270] sm:$0xff] }
   0x4   :  { %769 = vmatpush1.msra.mxu1 %v324_v3  ;;  %v318_v7 = vld [vmem:[%s4116_s1 + $0x8a0] sm:$0xff]  ;;  %681 = vmatprep.subr.mxu0 %v127_v4  ;;  %v313_v9 = vld [vmem:[%s4116_s1 + $0x878] sm:$0xff]  ;;  %v312_v11 = vld [vmem:[%s4116_s1 + $0x870] sm:$0xff] }
   0x5   :  { %770 = vmatprep.subr.mxu1 %v319_v5  ;;  %682 = vmatpush1.msra.mxu0 %v126_v6  ;;  %v115_v12 = vld [vmem:[%s4116_s1 + $0x248] sm:$0xff]  ;;  %v114_v14 = vld [vmem:[%s4116_s1 + $0x240] sm:$0xff]  ;;  %v109_v16 = vld [vmem:[%s4116_s1 + $0x218] sm:$0xff] }
   0x6   :  { %771 = vmatpush1.msra.mxu1 %v318_v7  ;;  %v307_v13 = vld [vmem:[%s4116_s1 + $0x848] sm:$0xff]  ;;  %683 = vmatprep.subr.mxu0 %v121_v8  ;;  %v306_v15 = vld [vmem:[%s4116_s1 + $0x840] sm:$0xff]  ;;  %v301_v17 = vld [vmem:[%s4116_s1 + $0x818] sm:$0xff] }
   0x7   :  { %772 = vmatprep.subr.mxu1 %v313_v9  ;;  %684 = vmatpush1.msra.mxu0 %v120_v10  ;;  %v108_v18 = vld [vmem:[%s4116_s1 + $0x210] sm:$0xff]  ;;  %v103_v20 = vld [vmem:[%s4116_s1 + $0x1e8] sm:$0xff]  ;;  %v102_v22 = vld [vmem:[%s4116_s1 + $0x1e0] sm:$0xff] }
   0x8   :  { %773 = vmatpush1.msra.mxu1 %v312_v11  ;;  %685 = vmatprep.subr.mxu0 %v115_v12  ;;  %v300_v19 = vld [vmem:[%s4116_s1 + $0x810] sm:$0xff]  ;;  %v295_v21 = vld [vmem:[%s4116_s1 + $0x7e8] sm:$0xff]  ;;  %v294_v23 = vld [vmem:[%s4116_s1 + $0x7e0] sm:$0xff] }
   0x9   :  { %774 = vmatprep.subr.mxu1 %v307_v13  ;;  %686 = vmatpush1.msra.mxu0 %v114_v14  ;;  %v97_v24 = vld [vmem:[%s4116_s1 + $0x1b8] sm:$0xff]  ;;  %v96_v26 = vld [vmem:[%s4116_s1 + $0x1b0] sm:$0xff]  ;;  %v91_v28 = vld [vmem:[%s4116_s1 + $0x188] sm:$0xff] }
   0xa   :  { %775 = vmatpush1.msra.mxu1 %v306_v15  ;;  %687 = vmatprep.subr.mxu0 %v109_v16  ;;  %v289_v25 = vld [vmem:[%s4116_s1 + $0x7b8] sm:$0xff]  ;;  %v288_v27 = vld [vmem:[%s4116_s1 + $0x7b0] sm:$0xff]  ;;  %v283_v29 = vld [vmem:[%s4116_s1 + $0x788] sm:$0xff] }
   0xb   :  { %776 = vmatprep.subr.mxu1 %v301_v17  ;;  %688 = vmatpush1.msra.mxu0 %v108_v18  ;;  %v90_v30 = vld [vmem:[%s4116_s1 + $0x180] sm:$0xff]  ;;  %v85_v32 = vld [vmem:[%s4116_s1 + $0x158] sm:$0xff]  ;;  %v84_v34 = vld [vmem:[%s4116_s1 + $0x150] sm:$0xff] }
   0xc   :  { %777 = vmatpush1.msra.mxu1 %v300_v19  ;;  %689 = vmatprep.subr.mxu0 %v103_v20  ;;  %v282_v31 = vld [vmem:[%s4116_s1 + $0x780] sm:$0xff]  ;;  %v277_v33 = vld [vmem:[%s4116_s1 + $0x758] sm:$0xff]  ;;  %v276_v35 = vld [vmem:[%s4116_s1 + $0x750] sm:$0xff] }
   0xd   :  { %778 = vmatprep.subr.mxu1 %v295_v21  ;;  %690 = vmatpush1.msra.mxu0 %v102_v22  ;;  %v79_v36 = vld [vmem:[%s4116_s1 + $0x128] sm:$0xff]  ;;  %v78_v38 = vld [vmem:[%s4116_s1 + $0x120] sm:$0xff]  ;;  %v73_v40 = vld [vmem:[%s4116_s1 + $0xf8] sm:$0xff] }
   0xe   :  { %779 = vmatpush1.msra.mxu1 %v294_v23  ;;  %691 = vmatprep.subr.mxu0 %v97_v24  ;;  %v271_v37 = vld [vmem:[%s4116_s1 + $0x728] sm:$0xff]  ;;  %v270_v39 = vld [vmem:[%s4116_s1 + $0x720] sm:$0xff]  ;;  %v265_v41 = vld [vmem:[%s4116_s1 + $0x6f8] sm:$0xff] }
   0xf   :  { %780 = vmatprep.subr.mxu1 %v289_v25  ;;  %692 = vmatpush1.msra.mxu0 %v96_v26  ;;  %v72_v42 = vld [vmem:[%s4116_s1 + $0xf0] sm:$0xff]  ;;  %v67_v44 = vld [vmem:[%s4116_s1 + $0xc8] sm:$0xff]  ;;  %v66_v46 = vld [vmem:[%s4116_s1 + $0xc0] sm:$0xff] }
  0x10   :  { %781 = vmatpush1.msra.mxu1 %v288_v27  ;;  %693 = vmatprep.subr.mxu0 %v91_v28  ;;  %v264_v43 = vld [vmem:[%s4116_s1 + $0x6f0] sm:$0xff]  ;;  %v259_v45 = vld [vmem:[%s4116_s1 + $0x6c8] sm:$0xff]  ;;  %v258_v47 = vld [vmem:[%s4116_s1 + $0x6c0] sm:$0xff] }
  0x11   :  { %782 = vmatprep.subr.mxu1 %v283_v29  ;;  %694 = vmatpush1.msra.mxu0 %v90_v30  ;;  %v61_v48 = vld [vmem:[%s4116_s1 + $0x98] sm:$0xff]  ;;  %v60_v50 = vld [vmem:[%s4116_s1 + $0x90] sm:$0xff]  ;;  %v55_v52 = vld [vmem:[%s4116_s1 + $0x68] sm:$0xff] }
  0x12   :  { %783 = vmatpush1.msra.mxu1 %v282_v31  ;;  %695 = vmatprep.subr.mxu0 %v85_v32  ;;  %v253_v49 = vld [vmem:[%s4116_s1 + $0x698] sm:$0xff]  ;;  %v252_v51 = vld [vmem:[%s4116_s1 + $0x690] sm:$0xff]  ;;  %v247_v53 = vld [vmem:[%s4116_s1 + $0x668] sm:$0xff] }
  0x13   :  { %784 = vmatprep.subr.mxu1 %v277_v33  ;;  %696 = vmatpush1.msra.mxu0 %v84_v34  ;;  %v54_v54 = vld [vmem:[%s4116_s1 + $0x60] sm:$0xff]  ;;  %v49_v56 = vld [vmem:[%s4116_s1 + $0x38] sm:$0xff]  ;;  %v48_v58 = vld [vmem:[%s4116_s1 + $0x30] sm:$0xff] }
  0x14   :  { %785 = vmatpush1.msra.mxu1 %v276_v35  ;;  %697 = vmatprep.subr.mxu0 %v79_v36  ;;  %v246_v55 = vld [vmem:[%s4116_s1 + $0x660] sm:$0xff]  ;;  %v241_v57 = vld [vmem:[%s4116_s1 + $0x638] sm:$0xff]  ;;  %v240_v59 = vld [vmem:[%s4116_s1 + $0x630] sm:$0xff] }
  0x15   :  { %786 = vmatprep.subr.mxu1 %v271_v37  ;;  %698 = vmatpush1.msra.mxu0 %v78_v38  ;;  %v43_v60 = vld [vmem:[%s4116_s1 + $0x8] sm:$0xff]  ;;  %v42_v62 = vld [vmem:[%s4116_s1] sm:$0xff]  ;;  %v229_v0 = vld [vmem:[%s4116_s1 + $0x5d8] sm:$0xff] }
  0x16   :  { %787 = vmatpush1.msra.mxu1 %v270_v39  ;;  %699 = vmatprep.subr.mxu0 %v73_v40  ;;  %v235_v61 = vld [vmem:[%s4116_s1 + $0x608] sm:$0xff]  ;;  %v234_v63 = vld [vmem:[%s4116_s1 + $0x600] sm:$0xff]  ;;  %v421_v1 = vld [vmem:[%s4116_s1 + $0xbd8] sm:$0xff] }
  0x17   :  { %788 = vmatprep.subr.mxu1 %v265_v41  ;;  %700 = vmatpush1.msra.mxu0 %v72_v42  ;;  %v228_v2 = vld [vmem:[%s4116_s1 + $0x5d0] sm:$0xff]  ;;  %v223_v4 = vld [vmem:[%s4116_s1 + $0x5a8] sm:$0xff]  ;;  %v222_v6 = vld [vmem:[%s4116_s1 + $0x5a0] sm:$0xff] }
  0x18   :  { %789 = vmatpush1.msra.mxu1 %v264_v43  ;;  %701 = vmatprep.subr.mxu0 %v67_v44  ;;  %v420_v3 = vld [vmem:[%s4116_s1 + $0xbd0] sm:$0xff]  ;;  %v415_v5 = vld [vmem:[%s4116_s1 + $0xba8] sm:$0xff]  ;;  %v414_v7 = vld [vmem:[%s4116_s1 + $0xba0] sm:$0xff] }
  0x19   :  { %790 = vmatprep.subr.mxu1 %v259_v45  ;;  %702 = vmatpush1.msra.mxu0 %v66_v46  ;;  %v217_v8 = vld [vmem:[%s4116_s1 + $0x578] sm:$0xff]  ;;  %v216_v10 = vld [vmem:[%s4116_s1 + $0x570] sm:$0xff]  ;;  %v211_v12 = vld [vmem:[%s4116_s1 + $0x548] sm:$0xff] }
  0x1a   :  { %791 = vmatpush1.msra.mxu1 %v258_v47  ;;  %703 = vmatprep.subr.mxu0 %v61_v48  ;;  %v409_v9 = vld [vmem:[%s4116_s1 + $0xb78] sm:$0xff]  ;;  %v408_v11 = vld [vmem:[%s4116_s1 + $0xb70] sm:$0xff]  ;;  %v403_v13 = vld [vmem:[%s4116_s1 + $0xb48] sm:$0xff] }
  0x1b   :  { %792 = vmatprep.subr.mxu1 %v253_v49  ;;  %704 = vmatpush1.msra.mxu0 %v60_v50  ;;  %v210_v14 = vld [vmem:[%s4116_s1 + $0x540] sm:$0xff]  ;;  %v205_v16 = vld [vmem:[%s4116_s1 + $0x518] sm:$0xff]  ;;  %v204_v18 = vld [vmem:[%s4116_s1 + $0x510] sm:$0xff] }
  0x1c   :  { %793 = vmatpush1.msra.mxu1 %v252_v51  ;;  %705 = vmatprep.subr.mxu0 %v55_v52  ;;  %v402_v15 = vld [vmem:[%s4116_s1 + $0xb40] sm:$0xff]  ;;  %v397_v17 = vld [vmem:[%s4116_s1 + $0xb18] sm:$0xff]  ;;  %v396_v19 = vld [vmem:[%s4116_s1 + $0xb10] sm:$0xff] }
  0x1d   :  { %794 = vmatprep.subr.mxu1 %v247_v53  ;;  %706 = vmatpush1.msra.mxu0 %v54_v54  ;;  %v199_v20 = vld [vmem:[%s4116_s1 + $0x4e8] sm:$0xff]  ;;  %v198_v22 = vld [vmem:[%s4116_s1 + $0x4e0] sm:$0xff]  ;;  %v193_v24 = vld [vmem:[%s4116_s1 + $0x4b8] sm:$0xff] }
  0x1e   :  { %795 = vmatpush1.msra.mxu1 %v246_v55  ;;  %707 = vmatprep.subr.mxu0 %v49_v56  ;;  %v391_v21 = vld [vmem:[%s4116_s1 + $0xae8] sm:$0xff]  ;;  %v390_v23 = vld [vmem:[%s4116_s1 + $0xae0] sm:$0xff]  ;;  %v385_v25 = vld [vmem:[%s4116_s1 + $0xab8] sm:$0xff] }
  0x1f   :  { %796 = vmatprep.subr.mxu1 %v241_v57  ;;  %708 = vmatpush1.msra.mxu0 %v48_v58  ;;  %v192_v26 = vld [vmem:[%s4116_s1 + $0x4b0] sm:$0xff]  ;;  %v187_v28 = vld [vmem:[%s4116_s1 + $0x488] sm:$0xff]  ;;  %v186_v30 = vld [vmem:[%s4116_s1 + $0x480] sm:$0xff] }
  0x20   :  { %797 = vmatpush1.msra.mxu1 %v240_v59  ;;  %709 = vmatprep.subr.mxu0 %v43_v60  ;;  %v384_v27 = vld [vmem:[%s4116_s1 + $0xab0] sm:$0xff]  ;;  %v379_v29 = vld [vmem:[%s4116_s1 + $0xa88] sm:$0xff]  ;;  %v378_v31 = vld [vmem:[%s4116_s1 + $0xa80] sm:$0xff] }
  0x21   :  { %798 = vmatprep.subr.mxu1 %v235_v61  ;;  %710 = vmatpush1.msra.mxu0 %v42_v62  ;;  %v181_v32 = vld [vmem:[%s4116_s1 + $0x458] sm:$0xff]  ;;  %v180_v34 = vld [vmem:[%s4116_s1 + $0x450] sm:$0xff]  ;;  %v175_v36 = vld [vmem:[%s4116_s1 + $0x428] sm:$0xff] }
  0x22   :  { %799 = vmatpush1.msra.mxu1 %v234_v63  ;;  %711 = vmatprep.subr.mxu0 %v229_v0  ;;  %v373_v33 = vld [vmem:[%s4116_s1 + $0xa58] sm:$0xff]  ;;  %v372_v35 = vld [vmem:[%s4116_s1 + $0xa50] sm:$0xff]  ;;  %v367_v37 = vld [vmem:[%s4116_s1 + $0xa28] sm:$0xff] }
  0x23   :  { %800 = vmatprep.subr.mxu1 %v421_v1  ;;  %712 = vmatpush2.msra.mxu0 %v228_v2  ;;  %v174_v38 = vld [vmem:[%s4116_s1 + $0x420] sm:$0xff]  ;;  %v169_v40 = vld [vmem:[%s4116_s1 + $0x3f8] sm:$0xff]  ;;  %v168_v42 = vld [vmem:[%s4116_s1 + $0x3f0] sm:$0xff] }
  0x24   :  { %801 = vmatpush2.msra.mxu1 %v420_v3  ;;  %713 = vmatprep.subr.mxu0 %v223_v4  ;;  %v366_v39 = vld [vmem:[%s4116_s1 + $0xa20] sm:$0xff]  ;;  %v361_v41 = vld [vmem:[%s4116_s1 + $0x9f8] sm:$0xff]  ;;  %v360_v43 = vld [vmem:[%s4116_s1 + $0x9f0] sm:$0xff] }
  0x25   :  { %802 = vmatprep.subr.mxu1 %v415_v5  ;;  %714 = vmatpush2.msra.mxu0 %v222_v6  ;;  %v163_v44 = vld [vmem:[%s4116_s1 + $0x3c8] sm:$0xff]  ;;  %v162_v46 = vld [vmem:[%s4116_s1 + $0x3c0] sm:$0xff]  ;;  %v157_v48 = vld [vmem:[%s4116_s1 + $0x398] sm:$0xff] }
  0x26   :  { %803 = vmatpush2.msra.mxu1 %v414_v7  ;;  %715 = vmatprep.subr.mxu0 %v217_v8  ;;  %v355_v45 = vld [vmem:[%s4116_s1 + $0x9c8] sm:$0xff]  ;;  %v354_v47 = vld [vmem:[%s4116_s1 + $0x9c0] sm:$0xff]  ;;  %v349_v49 = vld [vmem:[%s4116_s1 + $0x998] sm:$0xff] }
  0x27   :  { %804 = vmatprep.subr.mxu1 %v409_v9  ;;  %716 = vmatpush2.msra.mxu0 %v216_v10  ;;  %v156_v50 = vld [vmem:[%s4116_s1 + $0x390] sm:$0xff]  ;;  %v151_v52 = vld [vmem:[%s4116_s1 + $0x368] sm:$0xff]  ;;  %v150_v54 = vld [vmem:[%s4116_s1 + $0x360] sm:$0xff] }
  0x28   :  { %805 = vmatpush2.msra.mxu1 %v408_v11  ;;  %717 = vmatprep.subr.mxu0 %v211_v12  ;;  %v348_v51 = vld [vmem:[%s4116_s1 + $0x990] sm:$0xff]  ;;  %v343_v53 = vld [vmem:[%s4116_s1 + $0x968] sm:$0xff]  ;;  %v342_v55 = vld [vmem:[%s4116_s1 + $0x960] sm:$0xff] }
  0x29   :  { %806 = vmatprep.subr.mxu1 %v403_v13  ;;  %718 = vmatpush2.msra.mxu0 %v210_v14  ;;  %v145_v56 = vld [vmem:[%s4116_s1 + $0x338] sm:$0xff]  ;;  %v144_v58 = vld [vmem:[%s4116_s1 + $0x330] sm:$0xff]  ;;  %v139_v60 = vld [vmem:[%s4116_s1 + $0x308] sm:$0xff] }
  0x2a   :  { %807 = vmatpush2.msra.mxu1 %v402_v15  ;;  %719 = vmatprep.subr.mxu0 %v205_v16  ;;  %v337_v57 = vld [vmem:[%s4116_s1 + $0x938] sm:$0xff]  ;;  %v336_v59 = vld [vmem:[%s4116_s1 + $0x930] sm:$0xff]  ;;  %v331_v61 = vld [vmem:[%s4116_s1 + $0x908] sm:$0xff] }
  0x2b   :  { %808 = vmatprep.subr.mxu1 %v397_v17  ;;  %720 = vmatpush2.msra.mxu0 %v204_v18  ;;  %v138_v62 = vld [vmem:[%s4116_s1 + $0x300] sm:$0xff]  ;;  %v2226_v63 = vld [vmem:[%s4117_s0 + $0x8] sm:$0xff]  ;;  %v17_v1 = vld [vmem:[%s4117_s0 + $0x18] sm:$0xff] }
  0x2c   :  { %809 = vmatpush2.msra.mxu1 %v396_v19  ;;  %721 = vmatprep.subr.mxu0 %v199_v20  ;;  %v330_v0 = vld [vmem:[%s4116_s1 + $0x900] sm:$0xff]  ;;  %v16_v3 = vld [vmem:[%s4117_s0 + $0x10] sm:$0xff]  ;;  %v517_v4 = vld [vmem:[%s4116_s1 + $0xed8] sm:$0xff] }
  0x2d   :  { %810 = vmatprep.subr.mxu1 %v391_v21  ;;  %722 = vmatpush2.msra.mxu0 %v198_v22  ;;  %v2237_v2 = vld [vmem:[%s4117_s0] sm:$0xff]  ;;  %v24_v5 = vld [vmem:[%s4117_s0 + $0x50] sm:$0xff]  ;;  %v637_v7 = vld [vmem:[%s4116_s1 + $0x1298] sm:$0xff] }
  0x2e   :  { %811 = vmatpush2.msra.mxu1 %v390_v23  ;;  %723 = vmatprep.subr.mxu0 %v193_v24  ;;  %v516_v6 = vld [vmem:[%s4116_s1 + $0xed0] sm:$0xff]  ;;  %v511_v8 = vld [vmem:[%s4116_s1 + $0xea8] sm:$0xff]  ;;  %v510_v10 = vld [vmem:[%s4116_s1 + $0xea0] sm:$0xff] }
  0x2f   :  { %812 = vmatprep.subr.mxu1 %v385_v25  ;;  %724 = vmatpush2.msra.mxu0 %v192_v26  ;;  %v636_v9 = vld [vmem:[%s4116_s1 + $0x1290] sm:$0xff]  ;;  %v23_v11 = vld [vmem:[%s4117_s0 + $0x48] sm:$0xff]  ;;  %v505_v12 = vld [vmem:[%s4116_s1 + $0xe78] sm:$0xff] }
  0x30   :  { %813 = vmatpush2.msra.mxu1 %v384_v27  ;;  %725 = vmatprep.subr.mxu0 %v187_v28  ;;  %v31_v13 = vld [vmem:[%s4117_s0 + $0x88] sm:$0xff]  ;;  %v504_v14 = vld [vmem:[%s4116_s1 + $0xe70] sm:$0xff]  ;;  %v630_v17 = vld [vmem:[%s4116_s1 + $0x1260] sm:$0xff] }
  0x31   :  { %814 = vmatprep.subr.mxu1 %v379_v29  ;;  %726 = vmatpush2.msra.mxu0 %v186_v30  ;;  %v631_v15 = vld [vmem:[%s4116_s1 + $0x1268] sm:$0xff]  ;;  %v498_v18 = vld [vmem:[%s4116_s1 + $0xe40] sm:$0xff]  ;;  %v493_v20 = vld [vmem:[%s4116_s1 + $0xe18] sm:$0xff] }
  0x32   :  { %815 = vmatpush2.msra.mxu1 %v378_v31  ;;  %727 = vmatprep.subr.mxu0 %v181_v32  ;;  %v499_v16 = vld [vmem:[%s4116_s1 + $0xe48] sm:$0xff]  ;;  %v30_v19 = vld [vmem:[%s4117_s0 + $0x80] sm:$0xff]  ;;  %v492_v22 = vld [vmem:[%s4116_s1 + $0xe10] sm:$0xff] }
  0x33   :  { %816 = vmatprep.subr.mxu1 %v373_v33  ;;  %728 = vmatpush2.msra.mxu0 %v180_v34  ;;  %v38_v21 = vld [vmem:[%s4117_s0 + $0xc0] sm:$0xff]  ;;  %v625_v23 = vld [vmem:[%s4116_s1 + $0x1238] sm:$0xff]  ;;  %v487_v24 = vld [vmem:[%s4116_s1 + $0xde8] sm:$0xff] }
  0x34   :  { %817 = vmatpush2.msra.mxu1 %v372_v35  ;;  %729 = vmatprep.subr.mxu0 %v175_v36  ;;  %v624_v25 = vld [vmem:[%s4116_s1 + $0x1230] sm:$0xff]  ;;  %v486_v26 = vld [vmem:[%s4116_s1 + $0xde0] sm:$0xff]  ;;  %v37_v27 = vld [vmem:[%s4117_s0 + $0xb8] sm:$0xff] }
  0x35   :  { %818 = vmatprep.subr.mxu1 %v367_v37  ;;  %730 = vmatpush2.msra.mxu0 %v174_v38  ;;  %v481_v28 = vld [vmem:[%s4116_s1 + $0xdb8] sm:$0xff]  ;;  %v619_v29 = vld [vmem:[%s4116_s1 + $0x1208] sm:$0xff]  ;;  %v480_v30 = vld [vmem:[%s4116_s1 + $0xdb0] sm:$0xff]  ;;  %v1820_v37 = vmov 0.0  }
  0x36   :  { %819 = vmatpush2.msra.mxu1 %v366_v39  ;;  %731 = vmatprep.subr.mxu0 %v169_v40  ;;  %v618_v31 = vld [vmem:[%s4116_s1 + $0x1200] sm:$0xff]  ;;  %v475_v32 = vld [vmem:[%s4116_s1 + $0xd88] sm:$0xff]  ;;  %v469_v35 = vld [vmem:[%s4116_s1 + $0xd58] sm:$0xff] }
  0x37   :  { %820 = vmatprep.subr.mxu1 %v361_v41  ;;  %732 = vmatpush2.msra.mxu0 %v168_v42  ;;  %v474_v33 = vld [vmem:[%s4116_s1 + $0xd80] sm:$0xff]  ;;  %v135_v34 = vld [vmem:[%s4116_s1 + $0x2e8] sm:$0xff]  ;;  %v20_v36 = vld [vmem:[%s4117_s0 + $0x30] sm:$0xff] }
  0x38   :  { %821 = vmatpush2.msra.mxu1 %v360_v43  ;;  %733 = vmatprep.subr.mxu0 %v163_v44  ;;  %v134_v38 = vld [vmem:[%s4116_s1 + $0x2e0] sm:$0xff]  ;;  %v468_v39 = vld [vmem:[%s4116_s1 + $0xd50] sm:$0xff]  ;;  %v129_v40 = vld [vmem:[%s4116_s1 + $0x2b8] sm:$0xff] }
  0x39   :  { %822 = vmatprep.subr.mxu1 %v355_v45  ;;  %734 = vmatpush2.msra.mxu0 %v162_v46  ;;  %v2356_v41 = vld [vmem:[%s4117_s0 + $0x40] sm:$0xff]  ;;  %v463_v42 = vld [vmem:[%s4116_s1 + $0xd28] sm:$0xff]  ;;  %v128_v43 = vld [vmem:[%s4116_s1 + $0x2b0] sm:$0xff] }
  0x3a   :  { %823 = vmatpush2.msra.mxu1 %v354_v47  ;;  %735 = vmatprep.subr.mxu0 %v157_v48  ;;  %v2368_v44 = vld [vmem:[%s4117_s0 + $0x38] sm:$0xff]  ;;  %v123_v45 = vld [vmem:[%s4116_s1 + $0x288] sm:$0xff]  ;;  %v462_v46 = vld [vmem:[%s4116_s1 + $0xd20] sm:$0xff] }
  0x3b   :  { %824 = vmatprep.subr.mxu1 %v349_v49  ;;  %736 = vmatpush2.msra.mxu0 %v156_v50  ;;  %v122_v47 = vld [vmem:[%s4116_s1 + $0x280] sm:$0xff]  ;;  %v457_v48 = vld [vmem:[%s4116_s1 + $0xcf8] sm:$0xff]  ;;  %v456_v50 = vld [vmem:[%s4116_s1 + $0xcf0] sm:$0xff] }
  0x3c   :  { %825 = vmatpush2.msra.mxu1 %v348_v51  ;;  %737 = vmatprep.subr.mxu0 %v151_v52  ;;  %v117_v49 = vld [vmem:[%s4116_s1 + $0x258] sm:$0xff]  ;;  %v451_v52 = vld [vmem:[%s4116_s1 + $0xcc8] sm:$0xff] }
  0x3d   :  { %826 = vmatprep.subr.mxu1 %v343_v53  ;;  %738 = vmatpush2.msra.mxu0 %v150_v54  ;;  %v2393_v51 = vld [vmem:[%s4117_s0 + $0x78] sm:$0xff]  ;;  %v116_v53 = vld [vmem:[%s4116_s1 + $0x250] sm:$0xff] }
  0x3e   :  { %827 = vmatpush2.msra.mxu1 %v342_v55  ;;  %739 = vmatprep.subr.mxu0 %v145_v56  ;;  %v2404_v54 = vld [vmem:[%s4117_s0 + $0x70] sm:$0xff]  ;;  %v111_v55 = vld [vmem:[%s4116_s1 + $0x228] sm:$0xff]  ;;  %v450_v56 = vld [vmem:[%s4116_s1 + $0xcc0] sm:$0xff] }
  0x3f   :  { %828 = vmatprep.subr.mxu1 %v337_v57  ;;  %740 = vmatpush2.msra.mxu0 %v144_v58  ;;  %v110_v57 = vld [vmem:[%s4116_s1 + $0x220] sm:$0xff]  ;;  %v445_v58 = vld [vmem:[%s4116_s1 + $0xc98] sm:$0xff] }
  0x40   :  { %829 = vmatpush2.msra.mxu1 %v336_v59  ;;  %741 = vmatprep.subr.mxu0 %v139_v60  ;;  %v105_v59 = vld [vmem:[%s4116_s1 + $0x1f8] sm:$0xff]  ;;  %v444_v60 = vld [vmem:[%s4116_s1 + $0xc90] sm:$0xff] }
  0x41   :  { %830 = vmatprep.subr.mxu1 %v331_v61  ;;  %742 = vmatpush2.msra.mxu0 %v138_v62  ;;  %v2429_v61 = vld [vmem:[%s4117_s0 + $0xb0] sm:$0xff]  ;;  %v439_v62 = vld [vmem:[%s4116_s1 + $0xc68] sm:$0xff] }
  0x42   :  { %743 = vmatprep.mubr.f32.mxu0 %v2226_v63  ;;  %831 = vmatpush2.msra.mxu1 %v330_v0  ;;  %v104_v0 = vld [vmem:[%s4116_s1 + $0x1f0] sm:$0xff] }
  0x43   :  { %832 = vmatprep.mubr.f32.mxu1 %v17_v1  ;;  %744 = vmatmul.mubr.f32.vlgmr.msra.gmra.mxu0 %v2237_v2  ;;  %v2440_v1 = vld [vmem:[%s4117_s0 + $0xa8] sm:$0xff] }
  0x44   :  { %833 = vmatmul.mubr.f32.vlgmr.msra.gmra.mxu1 %v16_v3  ;;  %857 = vmatprep.subr.mxu0 %v517_v4  ;;  %v99_v3 = vld [vmem:[%s4116_s1 + $0x1c8] sm:$0xff]  ;;  %v438_v4 = vld [vmem:[%s4116_s1 + $0xc60] sm:$0xff] }
  0x45   :  { %838 = vmatprep.mubr.f32.mxu1 %v24_v5  ;;  %858 = vmatpush1.msra.mxu0 %v516_v6  ;;  %v98_v5 = vld [vmem:[%s4116_s1 + $0x1c0] sm:$0xff]  ;;  %v433_v6 = vld [vmem:[%s4116_s1 + $0xc38] sm:$0xff] }
  0x46   :  { %970 = vmatprep.subr.mxu1 %v637_v7  ;;  %859 = vmatprep.subr.mxu0 %v511_v8  ;;  %v93_v7 = vld [vmem:[%s4116_s1 + $0x198] sm:$0xff]  ;;  %v432_v8 = vld [vmem:[%s4116_s1 + $0xc30] sm:$0xff] }
  0x47   :  { %971 = vmatpush1.msra.mxu1 %v636_v9  ;;  %860 = vmatpush1.msra.mxu0 %v510_v10  ;;  %v92_v9 = vld [vmem:[%s4116_s1 + $0x190] sm:$0xff]  ;;  %v427_v10 = vld [vmem:[%s4116_s1 + $0xc08] sm:$0xff] }
  0x48   :  { %839 = vmatmul.mubr.f32.gmra.mxu1 %v23_v11  ;;  %861 = vmatprep.subr.mxu0 %v505_v12  ;;  %v87_v11 = vld [vmem:[%s4116_s1 + $0x168] sm:$0xff]  ;;  %v426_v12 = vld [vmem:[%s4116_s1 + $0xc00] sm:$0xff] }
  0x49   :  { %844 = vmatprep.mubr.f32.mxu1 %v31_v13  ;;  %862 = vmatpush1.msra.mxu0 %v504_v14  ;;  %v86_v13 = vld [vmem:[%s4116_s1 + $0x160] sm:$0xff]  ;;  %v613_v14 = vld [vmem:[%s4116_s1 + $0x11d8] sm:$0xff] }
  0x4a   :  { %972 = vmatprep.subr.mxu1 %v631_v15  ;;  %863 = vmatprep.subr.mxu0 %v499_v16  ;;  %v81_v15 = vld [vmem:[%s4116_s1 + $0x138] sm:$0xff]  ;;  %v612_v16 = vld [vmem:[%s4116_s1 + $0x11d0] sm:$0xff] }
  0x4b   :  { %973 = vmatpush1.msra.mxu1 %v630_v17  ;;  %864 = vmatpush1.msra.mxu0 %v498_v18  ;;  %v80_v17 = vld [vmem:[%s4116_s1 + $0x130] sm:$0xff]  ;;  %v607_v18 = vld [vmem:[%s4116_s1 + $0x11a8] sm:$0xff] }
  0x4c   :  { %845 = vmatmul.mubr.f32.gmra.mxu1 %v30_v19  ;;  %865 = vmatprep.subr.mxu0 %v493_v20  ;;  %v75_v19 = vld [vmem:[%s4116_s1 + $0x108] sm:$0xff]  ;;  %v606_v20 = vld [vmem:[%s4116_s1 + $0x11a0] sm:$0xff] }
  0x4d   :  { %850 = vmatprep.mubr.f32.mxu1 %v38_v21  ;;  %866 = vmatpush1.msra.mxu0 %v492_v22  ;;  %v74_v21 = vld [vmem:[%s4116_s1 + $0x100] sm:$0xff]  ;;  %v601_v22 = vld [vmem:[%s4116_s1 + $0x1178] sm:$0xff] }
  0x4e   :  { %974 = vmatprep.subr.mxu1 %v625_v23  ;;  %867 = vmatprep.subr.mxu0 %v487_v24  ;;  %v69_v23 = vld [vmem:[%s4116_s1 + $0xd8] sm:$0xff]  ;;  %v600_v24 = vld [vmem:[%s4116_s1 + $0x1170] sm:$0xff] }
  0x4f   :  { %975 = vmatpush1.msra.mxu1 %v624_v25  ;;  %868 = vmatpush1.msra.mxu0 %v486_v26  ;;  %v68_v25 = vld [vmem:[%s4116_s1 + $0xd0] sm:$0xff]  ;;  %v595_v26 = vld [vmem:[%s4116_s1 + $0x1148] sm:$0xff] }
  0x50   :  { %851 = vmatmul.mubr.f32.gmra.mxu1 %v37_v27  ;;  %869 = vmatprep.subr.mxu0 %v481_v28  ;;  %v63_v27 = vld [vmem:[%s4116_s1 + $0xa8] sm:$0xff]  ;;  %v594_v28 = vld [vmem:[%s4116_s1 + $0x1140] sm:$0xff] }
  0x51   :  { %976 = vmatprep.subr.mxu1 %v619_v29  ;;  %870 = vmatpush1.msra.mxu0 %v480_v30  ;;  %v62_v29 = vld [vmem:[%s4116_s1 + $0xa0] sm:$0xff]  ;;  %v589_v30 = vld [vmem:[%s4116_s1 + $0x1118] sm:$0xff] }
  0x52   :  { %977 = vmatpush1.msra.mxu1 %v618_v31  ;;  %871 = vmatprep.subr.mxu0 %v475_v32  ;;  %v57_v31 = vld [vmem:[%s4116_s1 + $0x78] sm:$0xff]  ;;  %v588_v32 = vld [vmem:[%s4116_s1 + $0x1110] sm:$0xff] }
  0x53   :  { %1010 = vmatprep.mubr.f32.mxu1 %v1820_v37  ;;  %872 = vmatpush1.msra.mxu0 %v474_v33  ;;  %v56_v33 = vld [vmem:[%s4116_s1 + $0x70] sm:$0xff] }
  0x54   :  { %1035 = vmatprep.subr.mxu1 %v135_v34  ;;  %873 = vmatprep.subr.mxu0 %v469_v35  ;;  %v583_v34 = vld [vmem:[%s4116_s1 + $0x10e8] sm:$0xff] }
  0x55   :  { %1776 = vmatmul.mubr.msk.f32.vlgmr.msra.gmra.mxu1 %vm666_vm0, %v20_v36  ;;  %874 = vmatpush1.msra.mxu0 %v468_v39  ;;  %v51_v35 = vld [vmem:[%s4116_s1 + $0x48] sm:$0xff]  ;;  %v582_v36 = vld [vmem:[%s4116_s1 + $0x10e0] sm:$0xff]  ;;  %v577_v39 = vld [vmem:[%s4116_s1 + $0x10b8] sm:$0xff] }
  0x56   :  { %1036 = vmatpush1.msra.mxu1 %v134_v38  ;;  %749 = vmatprep.mubr.f32.mxu0 %v2356_v41  ;;  %v50_v38 = vld [vmem:[%s4116_s1 + $0x40] sm:$0xff] }
  0x57   :  { %1037 = vmatprep.subr.mxu1 %v129_v40  ;;  %875 = vmatprep.subr.mxu0 %v463_v42  ;;  %v45_v40 = vld [vmem:[%s4116_s1 + $0x18] sm:$0xff]  ;;  %v576_v42 = vld [vmem:[%s4116_s1 + $0x10b0] sm:$0xff] }
  0x58   :  { %1038 = vmatpush1.msra.mxu1 %v128_v43  ;;  %750 = vmatmul.mubr.f32.gmra.mxu0 %v2368_v44  ;;  %v44_v43 = vld [vmem:[%s4116_s1 + $0x10] sm:$0xff] }
  0x59   :  { %1039 = vmatprep.subr.mxu1 %v123_v45  ;;  %876 = vmatpush1.msra.mxu0 %v462_v46  ;;  %v571_v45 = vld [vmem:[%s4116_s1 + $0x1088] sm:$0xff] }
  0x5a   :  { %1040 = vmatpush1.msra.mxu1 %v122_v47  ;;  %877 = vmatprep.subr.mxu0 %v457_v48  ;;  %v231_v46 = vld [vmem:[%s4116_s1 + $0x5e8] sm:$0xff]  ;;  %v570_v47 = vld [vmem:[%s4116_s1 + $0x1080] sm:$0xff] }
  0x5b   :  { %1041 = vmatprep.subr.mxu1 %v117_v49  ;;  %878 = vmatpush1.msra.mxu0 %v456_v50  ;;  %v230_v48 = vld [vmem:[%s4116_s1 + $0x5e0] sm:$0xff]  ;;  %v565_v49 = vld [vmem:[%s4116_s1 + $0x1058] sm:$0xff] }
  0x5c   :  { %755 = vmatprep.mubr.f32.mxu0 %v2393_v51  ;;  %879 = vmatprep.subr.mxu0 %v451_v52  ;;  %v225_v50 = vld [vmem:[%s4116_s1 + $0x5b8] sm:$0xff]  ;;  %v564_v52 = vld [vmem:[%s4116_s1 + $0x1050] sm:$0xff] }
  0x5d   :  { %1042 = vmatpush1.msra.mxu1 %v116_v53  ;;  %756 = vmatmul.mubr.f32.gmra.mxu0 %v2404_v54  ;;  %v224_v53 = vld [vmem:[%s4116_s1 + $0x5b0] sm:$0xff] }
  0x5e   :  { %1043 = vmatprep.subr.mxu1 %v111_v55  ;;  %880 = vmatpush1.msra.mxu0 %v450_v56  ;;  %v559_v55 = vld [vmem:[%s4116_s1 + $0x1028] sm:$0xff] }
  0x5f   :  { %1044 = vmatpush1.msra.mxu1 %v110_v57  ;;  %881 = vmatprep.subr.mxu0 %v445_v58  ;;  %v219_v56 = vld [vmem:[%s4116_s1 + $0x588] sm:$0xff]  ;;  %v558_v57 = vld [vmem:[%s4116_s1 + $0x1020] sm:$0xff] }
  0x60   :  { %1045 = vmatprep.subr.mxu1 %v105_v59  ;;  %882 = vmatpush1.msra.mxu0 %v444_v60  ;;  %v218_v58 = vld [vmem:[%s4116_s1 + $0x580] sm:$0xff]  ;;  %v553_v59 = vld [vmem:[%s4116_s1 + $0xff8] sm:$0xff] }
  0x61   :  { %761 = vmatprep.mubr.f32.mxu0 %v2429_v61  ;;  %883 = vmatprep.subr.mxu0 %v439_v62  ;;  %v213_v60 = vld [vmem:[%s4116_s1 + $0x558] sm:$0xff]  ;;  %v552_v62 = vld [vmem:[%s4116_s1 + $0xff0] sm:$0xff] }
  0x62   :  { %1046 = vmatpush1.msra.mxu1 %v104_v0  ;;  %762 = vmatmul.mubr.f32.gmra.mxu0 %v2440_v1  ;;  %v212_v0 = vld [vmem:[%s4116_s1 + $0x550] sm:$0xff] }
  0x63   :  { %1047 = vmatprep.subr.mxu1 %v99_v3  ;;  %884 = vmatpush1.msra.mxu0 %v438_v4  ;;  %v547_v3 = vld [vmem:[%s4116_s1 + $0xfc8] sm:$0xff] }
  0x64   :  { %1048 = vmatpush1.msra.mxu1 %v98_v5  ;;  %885 = vmatprep.subr.mxu0 %v433_v6  ;;  %v207_v4 = vld [vmem:[%s4116_s1 + $0x528] sm:$0xff]  ;;  %v546_v5 = vld [vmem:[%s4116_s1 + $0xfc0] sm:$0xff] }
  0x65   :  { %1049 = vmatprep.subr.mxu1 %v93_v7  ;;  %886 = vmatpush1.msra.mxu0 %v432_v8  ;;  %v206_v6 = vld [vmem:[%s4116_s1 + $0x520] sm:$0xff]  ;;  %v541_v7 = vld [vmem:[%s4116_s1 + $0xf98] sm:$0xff] }
  0x66   :  { %1050 = vmatpush1.msra.mxu1 %v92_v9  ;;  %887 = vmatprep.subr.mxu0 %v427_v10  ;;  %v201_v8 = vld [vmem:[%s4116_s1 + $0x4f8] sm:$0xff]  ;;  %v540_v9 = vld [vmem:[%s4116_s1 + $0xf90] sm:$0xff] }
  0x67   :  { %1051 = vmatprep.subr.mxu1 %v87_v11  ;;  %888 = vmatpush1.msra.mxu0 %v426_v12  ;;  %v200_v10 = vld [vmem:[%s4116_s1 + $0x4f0] sm:$0xff]  ;;  %v535_v11 = vld [vmem:[%s4116_s1 + $0xf68] sm:$0xff] }
  0x68   :  { %1052 = vmatpush1.msra.mxu1 %v86_v13  ;;  %889 = vmatprep.subr.mxu0 %v613_v14  ;;  %v195_v12 = vld [vmem:[%s4116_s1 + $0x4c8] sm:$0xff]  ;;  %v534_v13 = vld [vmem:[%s4116_s1 + $0xf60] sm:$0xff] }
  0x69   :  { %1053 = vmatprep.subr.mxu1 %v81_v15  ;;  %890 = vmatpush2.msra.mxu0 %v612_v16  ;;  %v194_v14 = vld [vmem:[%s4116_s1 + $0x4c0] sm:$0xff]  ;;  %v529_v15 = vld [vmem:[%s4116_s1 + $0xf38] sm:$0xff] }
  0x6a   :  { %1054 = vmatpush1.msra.mxu1 %v80_v17  ;;  %891 = vmatprep.subr.mxu0 %v607_v18  ;;  %v189_v16 = vld [vmem:[%s4116_s1 + $0x498] sm:$0xff]  ;;  %v528_v17 = vld [vmem:[%s4116_s1 + $0xf30] sm:$0xff] }
  0x6b   :  { %1055 = vmatprep.subr.mxu1 %v75_v19  ;;  %892 = vmatpush2.msra.mxu0 %v606_v20  ;;  %v188_v18 = vld [vmem:[%s4116_s1 + $0x490] sm:$0xff]  ;;  %v523_v19 = vld [vmem:[%s4116_s1 + $0xf08] sm:$0xff] }
  0x6c   :  { %1056 = vmatpush1.msra.mxu1 %v74_v21  ;;  %893 = vmatprep.subr.mxu0 %v601_v22  ;;  %v2663_v20 = vld [vmem:[%s4117_s0 + $0x28] sm:$0xff]  ;;  %v522_v21 = vld [vmem:[%s4116_s1 + $0xf00] sm:$0xff] }
  0x6d   :  { %1057 = vmatprep.subr.mxu1 %v69_v23  ;;  %894 = vmatpush2.msra.mxu0 %v600_v24  ;;  %v183_v22 = vld [vmem:[%s4116_s1 + $0x468] sm:$0xff]  ;;  %v2674_v23 = vld [vmem:[%s4117_s0 + $0x20] sm:$0xff] }
  0x6e   :  { %1058 = vmatpush1.msra.mxu1 %v68_v25  ;;  %895 = vmatprep.subr.mxu0 %v595_v26  ;;  %v182_v24 = vld [vmem:[%s4116_s1 + $0x460] sm:$0xff]  ;;  %v327_v25 = vld [vmem:[%s4116_s1 + $0x8e8] sm:$0xff]  ;;  %v177_v26 = vld [vmem:[%s4116_s1 + $0x438] sm:$0xff] }
  0x6f   :  { %1059 = vmatprep.subr.mxu1 %v63_v27  ;;  %896 = vmatpush2.msra.mxu0 %v594_v28  ;;  %v326_v27 = vld [vmem:[%s4116_s1 + $0x8e0] sm:$0xff]  ;;  %v176_v28 = vld [vmem:[%s4116_s1 + $0x430] sm:$0xff] }
  0x70   :  { %1060 = vmatpush1.msra.mxu1 %v62_v29  ;;  %897 = vmatprep.subr.mxu0 %v589_v30  ;;  %v321_v29 = vld [vmem:[%s4116_s1 + $0x8b8] sm:$0xff]  ;;  %v2699_v30 = vld [vmem:[%s4117_s0 + $0x60] sm:$0xff] }
  0x71   :  { %1061 = vmatprep.subr.mxu1 %v57_v31  ;;  %898 = vmatpush2.msra.mxu0 %v588_v32  ;;  %v171_v31 = vld [vmem:[%s4116_s1 + $0x408] sm:$0xff]  ;;  %v320_v32 = vld [vmem:[%s4116_s1 + $0x8b0] sm:$0xff] }
  0x72   :  { %1062 = vmatpush1.msra.mxu1 %v56_v33  ;;  %899 = vmatprep.subr.mxu0 %v583_v34  ;;  %v2710_v33 = vld [vmem:[%s4117_s0 + $0x68] sm:$0xff]  ;;  %v2716_v34 = vld [vmem:[%s4117_s0 + $0x58] sm:$0xff] }
  0x73   :  { %1063 = vmatprep.subr.mxu1 %v51_v35  ;;  %900 = vmatpush2.msra.mxu0 %v582_v36  ;;  %v170_v35 = vld [vmem:[%s4116_s1 + $0x400] sm:$0xff]  ;;  %v315_v36 = vld [vmem:[%s4116_s1 + $0x888] sm:$0xff] }
  0x74   :  { %1064 = vmatpush1.msra.mxu1 %v50_v38  ;;  %901 = vmatprep.subr.mxu0 %v577_v39  ;;  %v165_v38 = vld [vmem:[%s4116_s1 + $0x3d8] sm:$0xff]  ;;  %v314_v39 = vld [vmem:[%s4116_s1 + $0x880] sm:$0xff] }
  0x75   :  { %1065 = vmatprep.subr.mxu1 %v45_v40  ;;  %902 = vmatpush2.msra.mxu0 %v576_v42  ;;  %v642_v40 = vld [vmem:[%s4118_s2] sm:$0xff]  ;;  %v164_v42 = vld [vmem:[%s4116_s1 + $0x3d0] sm:$0xff] }
  0x76   :  { %1066 = vmatpush1.msra.mxu1 %v44_v43  ;;  %903 = vmatprep.subr.mxu0 %v571_v45  ;;  %v1821_v43 = vmov 0   ;;  %v309_v45 = vld [vmem:[%s4116_s1 + $0x858] sm:$0xff] }
  0x77   :  { %1067 = vmatprep.subr.mxu1 %v231_v46  ;;  %904 = vmatpush2.msra.mxu0 %v570_v47  ;;  %v2747_v46 = vld [vmem:[%s4117_s0 + $0x98] sm:$0xff]  ;;  %v159_v47 = vld [vmem:[%s4116_s1 + $0x3a8] sm:$0xff] }
  0x78   :  { %1068 = vmatpush2.msra.mxu1 %v230_v48  ;;  %905 = vmatprep.subr.mxu0 %v565_v49  ;;  %v308_v48 = vld [vmem:[%s4116_s1 + $0x850] sm:$0xff]  ;;  %v2758_v49 = vld [vmem:[%s4117_s0 + $0xa0] sm:$0xff] }
  0x79   :  { %1069 = vmatprep.subr.mxu1 %v225_v50  ;;  %906 = vmatpush2.msra.mxu0 %v564_v52  ;;  %v2764_v50 = vld [vmem:[%s4117_s0 + $0x90] sm:$0xff]  ;;  %v158_v52 = vld [vmem:[%s4116_s1 + $0x3a0] sm:$0xff] }
  0x7a   :  { %1070 = vmatpush2.msra.mxu1 %v224_v53  ;;  %907 = vmatprep.subr.mxu0 %v559_v55  ;;  %v303_v53 = vld [vmem:[%s4116_s1 + $0x828] sm:$0xff]  ;;  %v153_v55 = vld [vmem:[%s4116_s1 + $0x378] sm:$0xff] }
  0x7b   :  { %1071 = vmatprep.subr.mxu1 %v219_v56  ;;  %908 = vmatpush2.msra.mxu0 %v558_v57  ;;  %v302_v56 = vld [vmem:[%s4116_s1 + $0x820] sm:$0xff]  ;;  %v152_v57 = vld [vmem:[%s4116_s1 + $0x370] sm:$0xff] }
  0x7c   :  { %1072 = vmatpush2.msra.mxu1 %v218_v58  ;;  %909 = vmatprep.subr.mxu0 %v553_v59  ;;  %v297_v58 = vld [vmem:[%s4116_s1 + $0x7f8] sm:$0xff]  ;;  %v2791_v59 = vld [vmem:[%s4117_s0 + $0xd0] sm:$0xff] }
  0x7d   :  { %1073 = vmatprep.subr.mxu1 %v213_v60  ;;  %910 = vmatpush2.msra.mxu0 %v552_v62  ;;  %v147_v60 = vld [vmem:[%s4116_s1 + $0x348] sm:$0xff]  ;;  %v296_v62 = vld [vmem:[%s4116_s1 + $0x7f0] sm:$0xff] }
  0x7e   :  { %1074 = vmatpush2.msra.mxu1 %v212_v0  ;;  %911 = vmatprep.subr.mxu0 %v547_v3  ;;  %v2802_v0 = vld [vmem:[%s4117_s0 + $0xd8] sm:$0xff]  ;;  %v2808_v3 = vld [vmem:[%s4117_s0 + $0xc8] sm:$0xff] }
  0x7f   :  { %1075 = vmatprep.subr.mxu1 %v207_v4  ;;  %912 = vmatpush2.msra.mxu0 %v546_v5  ;;  %v146_v4 = vld [vmem:[%s4116_s1 + $0x340] sm:$0xff]  ;;  %v291_v5 = vld [vmem:[%s4116_s1 + $0x7c8] sm:$0xff] }
  0x80   :  { %1076 = vmatpush2.msra.mxu1 %v206_v6  ;;  %913 = vmatprep.subr.mxu0 %v541_v7  ;;  %v141_v6 = vld [vmem:[%s4116_s1 + $0x318] sm:$0xff]  ;;  %v290_v7 = vld [vmem:[%s4116_s1 + $0x7c0] sm:$0xff] }
  0x81   :  { %1077 = vmatprep.subr.mxu1 %v201_v8  ;;  %914 = vmatpush2.msra.mxu0 %v540_v9  ;;  %v140_v8 = vld [vmem:[%s4116_s1 + $0x310] sm:$0xff]  ;;  %v285_v9 = vld [vmem:[%s4116_s1 + $0x798] sm:$0xff] }
  0x82   :  { %1078 = vmatpush2.msra.mxu1 %v200_v10  ;;  %915 = vmatprep.subr.mxu0 %v535_v11  ;;  %v284_v10 = vld [vmem:[%s4116_s1 + $0x790] sm:$0xff]  ;;  %v519_v11 = vld [vmem:[%s4116_s1 + $0xee8] sm:$0xff] }
  0x83   :  { %1079 = vmatprep.subr.mxu1 %v195_v12  ;;  %916 = vmatpush2.msra.mxu0 %v534_v13  ;;  %v279_v12 = vld [vmem:[%s4116_s1 + $0x768] sm:$0xff]  ;;  %v518_v13 = vld [vmem:[%s4116_s1 + $0xee0] sm:$0xff] }
  0x84   :  { %1080 = vmatpush2.msra.mxu1 %v194_v14  ;;  %917 = vmatprep.subr.mxu0 %v529_v15  ;;  %v278_v14 = vld [vmem:[%s4116_s1 + $0x760] sm:$0xff]  ;;  %v513_v15 = vld [vmem:[%s4116_s1 + $0xeb8] sm:$0xff] }
  0x85   :  { %1081 = vmatprep.subr.mxu1 %v189_v16  ;;  %918 = vmatpush2.msra.mxu0 %v528_v17  ;;  %v273_v16 = vld [vmem:[%s4116_s1 + $0x738] sm:$0xff]  ;;  %v272_v17 = vld [vmem:[%s4116_s1 + $0x730] sm:$0xff] }
  0x86   :  { %1082 = vmatpush2.msra.mxu1 %v188_v18  ;;  %919 = vmatprep.subr.mxu0 %v523_v19  ;;  %v507_v18 = vld [vmem:[%s4116_s1 + $0xe88] sm:$0xff] }
  0x87   :  { %921 = vmatprep.mubr.f32.mxu0 %v2663_v20  ;;  %920 = vmatpush2.msra.mxu0 %v522_v21  ;;  %v267_v19 = vld [vmem:[%s4116_s1 + $0x708] sm:$0xff]  ;;  %v266_v21 = vld [vmem:[%s4116_s1 + $0x700] sm:$0xff] }
  0x88   :  { %1083 = vmatprep.subr.mxu1 %v183_v22  ;;  %922 = vmatmul.mubr.f32.vlgmr.msra.gmra.mxu0 %v2674_v23  ;;  %v501_v22 = vld [vmem:[%s4116_s1 + $0xe58] sm:$0xff] }
  0x89   :  { %1084 = vmatpush2.msra.mxu1 %v182_v24  ;;  %1124 = vmatprep.subr.mxu0 %v327_v25  ;;  %v261_v24 = vld [vmem:[%s4116_s1 + $0x6d8] sm:$0xff]  ;;  %v500_v25 = vld [vmem:[%s4116_s1 + $0xe50] sm:$0xff] }
  0x8a   :  { %1085 = vmatprep.subr.mxu1 %v177_v26  ;;  %1125 = vmatpush1.msra.mxu0 %v326_v27  ;;  %v260_v26 = vld [vmem:[%s4116_s1 + $0x6d0] sm:$0xff]  ;;  %v495_v27 = vld [vmem:[%s4116_s1 + $0xe28] sm:$0xff] }
  0x8b   :  { %1086 = vmatpush2.msra.mxu1 %v176_v28  ;;  %1126 = vmatprep.subr.mxu0 %v321_v29  ;;  %v255_v28 = vld [vmem:[%s4116_s1 + $0x6a8] sm:$0xff]  ;;  %v494_v29 = vld [vmem:[%s4116_s1 + $0xe20] sm:$0xff] }
  0x8c   :  { %927 = vmatprep.mubr.f32.mxu0 %v2699_v30  ;;  %1016 = vmatprep.mubr.f32.mxu1 %v1820_v37 }
  0x8d   :  { %1087 = vmatprep.subr.mxu1 %v171_v31  ;;  %1127 = vmatpush1.msra.mxu0 %v320_v32  ;;  %v254_v31 = vld [vmem:[%s4116_s1 + $0x6a0] sm:$0xff]  ;;  %v489_v32 = vld [vmem:[%s4116_s1 + $0xdf8] sm:$0xff] }
  0x8e   :  { %1777 = vmatmul.mubr.msk.f32.gmra.mxu1 %vm666_vm0, %v2710_v33  ;;  %928 = vmatmul.mubr.f32.gmra.mxu0 %v2716_v34 }
  0x8f   :  { %1088 = vmatpush2.msra.mxu1 %v170_v35  ;;  %1128 = vmatprep.subr.mxu0 %v315_v36  ;;  %v643_v35 = vld [vmem:[%s4118_s2 + $0x8] sm:$0xff]  ;;  %v249_v36 = vld [vmem:[%s4116_s1 + $0x678] sm:$0xff] }
  0x90   :  { %1790 = vset.pattern.permute.xlu0 %v1821_v43  ;;  %1089 = vmatprep.subr.mxu1 %v165_v38  ;;  %v488_v38 = vld [vmem:[%s4116_s1 + $0xdf0] sm:$0xff] }
  0x91   :  { %1129 = vmatpush1.msra.mxu0 %v314_v39  ;;  %648 = vperm.xlu0 %1790, %v642_v40   ;;  %v248_v39 = vld [vmem:[%s4116_s1 + $0x670] sm:$0xff]  ;;  %v483_v40 = vld [vmem:[%s4116_s1 + $0xdc8] sm:$0xff] }
  0x92   :  { %1090 = vmatpush2.msra.mxu1 %v164_v42  ;;  %1130 = vmatprep.subr.mxu0 %v309_v45  ;;  %v243_v42 = vld [vmem:[%s4116_s1 + $0x648] sm:$0xff]  ;;  %v482_v45 = vld [vmem:[%s4116_s1 + $0xdc0] sm:$0xff] }
  0x93   :  { %933 = vmatprep.mubr.f32.mxu0 %v2747_v46  ;;  %1022 = vmatprep.mubr.f32.mxu1 %v1820_v37 }
  0x94   :  { %1091 = vmatprep.subr.mxu1 %v159_v47  ;;  %1131 = vmatpush1.msra.mxu0 %v308_v48  ;;  %v242_v47 = vld [vmem:[%s4116_s1 + $0x640] sm:$0xff]  ;;  %v477_v48 = vld [vmem:[%s4116_s1 + $0xd98] sm:$0xff] }
  0x95   :  { %1778 = vmatmul.mubr.msk.f32.gmra.mxu1 %vm666_vm0, %v2758_v49  ;;  %934 = vmatmul.mubr.f32.gmra.mxu0 %v2764_v50 }
  0x96   :  { %1092 = vmatpush2.msra.mxu1 %v158_v52  ;;  %1132 = vmatprep.subr.mxu0 %v303_v53  ;;  %v644_v52 = vld [vmem:[%s4118_s2 + $0x10] sm:$0xff]  ;;  %v237_v53 = vld [vmem:[%s4116_s1 + $0x618] sm:$0xff] }
  0x97   :  { %1093 = vmatprep.subr.mxu1 %v153_v55  ;;  %1133 = vmatpush1.msra.mxu0 %v302_v56  ;;  %v476_v55 = vld [vmem:[%s4116_s1 + $0xd90] sm:$0xff] }
  0x98   :  { %1094 = vmatpush2.msra.mxu1 %v152_v57  ;;  %1134 = vmatprep.subr.mxu0 %v297_v58  ;;  %v236_v56 = vld [vmem:[%s4116_s1 + $0x610] sm:$0xff]  ;;  %v471_v57 = vld [vmem:[%s4116_s1 + $0xd68] sm:$0xff] }
  0x99   :  { %939 = vmatprep.mubr.f32.mxu0 %v2791_v59  ;;  %1028 = vmatprep.mubr.f32.mxu1 %v1820_v37  ;;  %v423_v58 = vld [vmem:[%s4116_s1 + $0xbe8] sm:$0xff] }
  0x9a   :  { %1095 = vmatprep.subr.mxu1 %v147_v60  ;;  %1135 = vmatpush1.msra.mxu0 %v296_v62  ;;  %v470_v60 = vld [vmem:[%s4116_s1 + $0xd60] sm:$0xff]  ;;  %v465_v62 = vld [vmem:[%s4116_s1 + $0xd38] sm:$0xff] }
  0x9b   :  { %1779 = vmatmul.mubr.msk.f32.gmra.mxu1 %vm666_vm0, %v2802_v0  ;;  %940 = vmatmul.mubr.f32.gmra.mxu0 %v2808_v3 }
  0x9c   :  { %1096 = vmatpush2.msra.mxu1 %v146_v4  ;;  %1136 = vmatprep.subr.mxu0 %v291_v5  ;;  %v645_v4 = vld [vmem:[%s4118_s2 + $0x18] sm:$0xff] }
  0x9d   :  { %1097 = vmatprep.subr.mxu1 %v141_v6  ;;  %1137 = vmatpush1.msra.mxu0 %v290_v7  ;;  %v417_v5 = vld [vmem:[%s4116_s1 + $0xbb8] sm:$0xff]  ;;  %v464_v6 = vld [vmem:[%s4116_s1 + $0xd30] sm:$0xff] }
  0x9e   :  { %1098 = vmatpush2.msra.mxu1 %v140_v8  ;;  %1138 = vmatprep.subr.mxu0 %v285_v9  ;;  %v416_v7 = vld [vmem:[%s4116_s1 + $0xbb0] sm:$0xff]  ;;  %v459_v8 = vld [vmem:[%s4116_s1 + $0xd08] sm:$0xff] }
  0x9f   :  { %1099 = vmatprep.mubr.f32.mxu1 %v2226_v63  ;;  %1139 = vmatpush1.msra.mxu0 %v284_v10  ;;  %v512_v63 = vld [vmem:[%s4116_s1 + $0xeb0] sm:$0xff]  ;;  %v411_v9 = vld [vmem:[%s4116_s1 + $0xb88] sm:$0xff]  ;;  %v458_v10 = vld [vmem:[%s4116_s1 + $0xd00] sm:$0xff] }
  0xa0   :  { %1213 = vmatprep.subr.mxu1 %v519_v11  ;;  %1100 = vmatmul.mubr.f32.vlgmr.msra.gmra.mxu1 %v2237_v2  ;;  %v506_v2 = vld [vmem:[%s4116_s1 + $0xe80] sm:$0xff] }
  0xa1   :  { %1140 = vmatprep.subr.mxu0 %v279_v12  ;;  %1214 = vmatpush1.msra.mxu1 %v518_v13  ;;  %v410_v11 = vld [vmem:[%s4116_s1 + $0xb80] sm:$0xff]  ;;  %v453_v12 = vld [vmem:[%s4116_s1 + $0xcd8] sm:$0xff] }
  0xa2   :  { %1141 = vmatpush1.msra.mxu0 %v278_v14  ;;  %1215 = vmatprep.subr.mxu1 %v513_v15  ;;  %v405_v13 = vld [vmem:[%s4116_s1 + $0xb58] sm:$0xff]  ;;  %v452_v14 = vld [vmem:[%s4116_s1 + $0xcd0] sm:$0xff] }
  0xa3   :  { %1142 = vmatprep.subr.mxu0 %v273_v16  ;;  %1216 = vmatpush1.msra.mxu1 %v512_v63  ;;  %v404_v15 = vld [vmem:[%s4116_s1 + $0xb50] sm:$0xff]  ;;  %v447_v16 = vld [vmem:[%s4116_s1 + $0xca8] sm:$0xff] }
  0xa4   :  { %1143 = vmatpush1.msra.mxu0 %v272_v17  ;;  %1217 = vmatprep.subr.mxu1 %v507_v18  ;;  %v399_v63 = vld [vmem:[%s4116_s1 + $0xb28] sm:$0xff]  ;;  %v446_v17 = vld [vmem:[%s4116_s1 + $0xca0] sm:$0xff] }
  0xa5   :  { %1144 = vmatprep.subr.mxu0 %v267_v19  ;;  %1218 = vmatpush1.msra.mxu1 %v506_v2  ;;  %v398_v18 = vld [vmem:[%s4116_s1 + $0xb20] sm:$0xff]  ;;  %v441_v19 = vld [vmem:[%s4116_s1 + $0xc78] sm:$0xff] }
  0xa6   :  { %1145 = vmatpush1.msra.mxu0 %v266_v21  ;;  %1219 = vmatprep.subr.mxu1 %v501_v22  ;;  %v393_v2 = vld [vmem:[%s4116_s1 + $0xaf8] sm:$0xff]  ;;  %v440_v21 = vld [vmem:[%s4116_s1 + $0xc70] sm:$0xff] }
  0xa7   :  { %1146 = vmatprep.subr.mxu0 %v261_v24  ;;  %1220 = vmatpush1.msra.mxu1 %v500_v25  ;;  %v392_v22 = vld [vmem:[%s4116_s1 + $0xaf0] sm:$0xff]  ;;  %v435_v24 = vld [vmem:[%s4116_s1 + $0xc48] sm:$0xff] }
  0xa8   :  { %1147 = vmatpush1.msra.mxu0 %v260_v26  ;;  %1221 = vmatprep.subr.mxu1 %v495_v27  ;;  %v387_v25 = vld [vmem:[%s4116_s1 + $0xac8] sm:$0xff]  ;;  %v434_v26 = vld [vmem:[%s4116_s1 + $0xc40] sm:$0xff] }
  0xa9   :  { %1148 = vmatprep.subr.mxu0 %v255_v28  ;;  %1222 = vmatpush1.msra.mxu1 %v494_v29  ;;  %v386_v27 = vld [vmem:[%s4116_s1 + $0xac0] sm:$0xff]  ;;  %v429_v28 = vld [vmem:[%s4116_s1 + $0xc18] sm:$0xff] }
  0xaa   :  { %1149 = vmatpush1.msra.mxu0 %v254_v31  ;;  %1223 = vmatprep.subr.mxu1 %v489_v32  ;;  %v381_v29 = vld [vmem:[%s4116_s1 + $0xa98] sm:$0xff]  ;;  %v428_v31 = vld [vmem:[%s4116_s1 + $0xc10] sm:$0xff] }
  0xab   :  { %653 = vperm.xlu0 %1790, %v643_v35   ;;  %1150 = vmatprep.subr.mxu0 %v249_v36  ;;  %v380_v32 = vld [vmem:[%s4116_s1 + $0xa90] sm:$0xff]  ;;  %v615_v35 = vld [vmem:[%s4116_s1 + $0x11e8] sm:$0xff] }
  0xac   :  { %1224 = vmatpush1.msra.mxu1 %v488_v38  ;;  %1151 = vmatpush1.msra.mxu0 %v248_v39  ;;  %v375_v36 = vld [vmem:[%s4116_s1 + $0xa68] sm:$0xff]  ;;  %v614_v38 = vld [vmem:[%s4116_s1 + $0x11e0] sm:$0xff] }
  0xad   :  { %1225 = vmatprep.subr.mxu1 %v483_v40  ;;  %1152 = vmatprep.subr.mxu0 %v243_v42  ;;  %v374_v39 = vld [vmem:[%s4116_s1 + $0xa60] sm:$0xff]  ;;  %v609_v40 = vld [vmem:[%s4116_s1 + $0x11b8] sm:$0xff] }
  0xae   :  { %1226 = vmatpush1.msra.mxu1 %v482_v45  ;;  %1791 = vset.pattern.permute.xlu1 %v1821_v43  ;;  %v422_v43 = vld [vmem:[%s4116_s1 + $0xbe0] sm:$0xff]  ;;  %v369_v42 = vld [vmem:[%s4116_s1 + $0xa38] sm:$0xff]  ;;  %v608_v45 = vld [vmem:[%s4116_s1 + $0x11b0] sm:$0xff] }
  0xaf   :  { %1153 = vmatpush1.msra.mxu0 %v242_v47  ;;  %1227 = vmatprep.subr.mxu1 %v477_v48  ;;  %v368_v47 = vld [vmem:[%s4116_s1 + $0xa30] sm:$0xff]  ;;  %v603_v48 = vld [vmem:[%s4116_s1 + $0x1188] sm:$0xff] }
  0xb0   :  { %658 = vperm.xlu1 %1791, %v644_v52   ;;  %1154 = vmatprep.subr.mxu0 %v237_v53  ;;  %v363_v52 = vld [vmem:[%s4116_s1 + $0xa08] sm:$0xff]  ;;  %v602_v53 = vld [vmem:[%s4116_s1 + $0x1180] sm:$0xff] }
  0xb1   :  { %1228 = vmatpush1.msra.mxu1 %v476_v55  ;;  %1155 = vmatpush1.msra.mxu0 %v236_v56  ;;  %v362_v55 = vld [vmem:[%s4116_s1 + $0xa00] sm:$0xff]  ;;  %v597_v56 = vld [vmem:[%s4116_s1 + $0x1158] sm:$0xff] }
  0xb2   :  { %1229 = vmatprep.subr.mxu1 %v471_v57  ;;  %1156 = vmatprep.subr.mxu0 %v423_v58  ;;  %v357_v57 = vld [vmem:[%s4116_s1 + $0x9d8] sm:$0xff]  ;;  %v596_v58 = vld [vmem:[%s4116_s1 + $0x1150] sm:$0xff] }
  0xb3   :  { %1230 = vmatpush1.msra.mxu1 %v470_v60  ;;  %1157 = vmatpush2.msra.mxu0 %v422_v43  ;;  %v356_v60 = vld [vmem:[%s4116_s1 + $0x9d0] sm:$0xff]  ;;  %v591_v43 = vld [vmem:[%s4116_s1 + $0x1128] sm:$0xff] }
  0xb4   :  { %1231 = vmatprep.subr.mxu1 %v465_v62  ;;  %663 = vperm.xlu1 %1791, %v645_v4   ;;  %v351_v62 = vld [vmem:[%s4116_s1 + $0x9a8] sm:$0xff]  ;;  %v590_v4 = vld [vmem:[%s4116_s1 + $0x1120] sm:$0xff] }
  0xb5   :  { %1158 = vmatprep.subr.mxu0 %v417_v5  ;;  %1232 = vmatpush1.msra.mxu1 %v464_v6  ;;  %v350_v5 = vld [vmem:[%s4116_s1 + $0x9a0] sm:$0xff]  ;;  %v585_v6 = vld [vmem:[%s4116_s1 + $0x10f8] sm:$0xff] }
  0xb6   :  { %1159 = vmatpush2.msra.mxu0 %v416_v7  ;;  %1233 = vmatprep.subr.mxu1 %v459_v8  ;;  %v345_v7 = vld [vmem:[%s4116_s1 + $0x978] sm:$0xff]  ;;  %v584_v8 = vld [vmem:[%s4116_s1 + $0x10f0] sm:$0xff] }
  0xb7   :  { %1160 = vmatprep.subr.mxu0 %v411_v9  ;;  %1234 = vmatpush1.msra.mxu1 %v458_v10  ;;  %v344_v9 = vld [vmem:[%s4116_s1 + $0x970] sm:$0xff]  ;;  %v579_v10 = vld [vmem:[%s4116_s1 + $0x10c8] sm:$0xff] }
  0xb8   :  { %1161 = vmatpush2.msra.mxu0 %v410_v11  ;;  %1235 = vmatprep.subr.mxu1 %v453_v12  ;;  %v339_v11 = vld [vmem:[%s4116_s1 + $0x948] sm:$0xff]  ;;  %v578_v12 = vld [vmem:[%s4116_s1 + $0x10c0] sm:$0xff] }
  0xb9   :  { %1162 = vmatprep.subr.mxu0 %v405_v13  ;;  %1236 = vmatpush1.msra.mxu1 %v452_v14  ;;  %v338_v13 = vld [vmem:[%s4116_s1 + $0x940] sm:$0xff]  ;;  %v573_v14 = vld [vmem:[%s4116_s1 + $0x1098] sm:$0xff] }
  0xba   :  { %1163 = vmatpush2.msra.mxu0 %v404_v15  ;;  %1237 = vmatprep.subr.mxu1 %v447_v16  ;;  %v333_v15 = vld [vmem:[%s4116_s1 + $0x918] sm:$0xff]  ;;  %v572_v16 = vld [vmem:[%s4116_s1 + $0x1090] sm:$0xff] }
  0xbb   :  { %1164 = vmatprep.subr.mxu0 %v399_v63  ;;  %1238 = vmatpush1.msra.mxu1 %v446_v17  ;;  %v332_v63 = vld [vmem:[%s4116_s1 + $0x910] sm:$0xff]  ;;  %v567_v17 = vld [vmem:[%s4116_s1 + $0x1068] sm:$0xff] }
  0xbc   :  { %1165 = vmatpush2.msra.mxu0 %v398_v18  ;;  %1239 = vmatprep.subr.mxu1 %v441_v19  ;;  %v566_v18 = vld [vmem:[%s4116_s1 + $0x1060] sm:$0xff]  ;;  %v137_v19 = vld [vmem:[%s4116_s1 + $0x2f8] sm:$0xff] }
  0xbd   :  { %1166 = vmatprep.subr.mxu0 %v393_v2  ;;  %1240 = vmatpush1.msra.mxu1 %v440_v21  ;;  %v561_v2 = vld [vmem:[%s4116_s1 + $0x1038] sm:$0xff] }
  0xbe   :  { %1167 = vmatpush2.msra.mxu0 %v392_v22  ;;  %1241 = vmatprep.subr.mxu1 %v435_v24  ;;  %v3150_v21 = vld [vmem:[%s4117_s0 + $0x18] sm:$0xff]  ;;  %v136_v22 = vld [vmem:[%s4116_s1 + $0x2f0] sm:$0xff] }
  0xbf   :  { %1168 = vmatprep.subr.mxu0 %v387_v25  ;;  %1242 = vmatpush1.msra.mxu1 %v434_v26  ;;  %v3159_v24 = vld [vmem:[%s4117_s0 + $0x10] sm:$0xff]  ;;  %v131_v26 = vld [vmem:[%s4116_s1 + $0x2c8] sm:$0xff] }
  0xc0   :  { %1169 = vmatpush2.msra.mxu0 %v386_v27  ;;  %1243 = vmatprep.subr.mxu1 %v429_v28  ;;  %v560_v25 = vld [vmem:[%s4116_s1 + $0x1030] sm:$0xff]  ;;  %v555_v27 = vld [vmem:[%s4116_s1 + $0x1008] sm:$0xff]  ;;  %v130_v28 = vld [vmem:[%s4116_s1 + $0x2c0] sm:$0xff] }
  0xc1   :  { %1170 = vmatprep.subr.mxu0 %v381_v29  ;;  %1244 = vmatpush1.msra.mxu1 %v428_v31  ;;  %v554_v29 = vld [vmem:[%s4116_s1 + $0x1000] sm:$0xff]  ;;  %v125_v31 = vld [vmem:[%s4116_s1 + $0x298] sm:$0xff] }
  0xc2   :  { %1171 = vmatpush2.msra.mxu0 %v380_v32  ;;  %1245 = vmatprep.subr.mxu1 %v615_v35  ;;  %v549_v32 = vld [vmem:[%s4116_s1 + $0xfd8] sm:$0xff]  ;;  %v548_v35 = vld [vmem:[%s4116_s1 + $0xfd0] sm:$0xff] }
  0xc3   :  { %1172 = vmatprep.subr.mxu0 %v375_v36  ;;  %1246 = vmatpush2.msra.mxu1 %v614_v38  ;;  %v119_v36 = vld [vmem:[%s4116_s1 + $0x268] sm:$0xff]  ;;  %v118_v38 = vld [vmem:[%s4116_s1 + $0x260] sm:$0xff] }
  0xc4   :  { %1173 = vmatpush2.msra.mxu0 %v374_v39  ;;  %1247 = vmatprep.subr.mxu1 %v609_v40  ;;  %v542_v39 = vld [vmem:[%s4116_s1 + $0xfa0] sm:$0xff]  ;;  %v113_v40 = vld [vmem:[%s4116_s1 + $0x238] sm:$0xff] }
  0xc5   :  { %1174 = vmatprep.subr.mxu0 %v369_v42  ;;  %1248 = vmatpush2.msra.mxu1 %v608_v45  ;;  %v537_v42 = vld [vmem:[%s4116_s1 + $0xf78] sm:$0xff]  ;;  %v536_v45 = vld [vmem:[%s4116_s1 + $0xf70] sm:$0xff] }
  0xc6   :  { %1175 = vmatpush2.msra.mxu0 %v368_v47  ;;  %1249 = vmatprep.subr.mxu1 %v603_v48  ;;  %v107_v47 = vld [vmem:[%s4116_s1 + $0x208] sm:$0xff]  ;;  %v106_v48 = vld [vmem:[%s4116_s1 + $0x200] sm:$0xff] }
  0xc7   :  { %1176 = vmatprep.subr.mxu0 %v363_v52  ;;  %1250 = vmatpush2.msra.mxu1 %v602_v53  ;;  %v530_v52 = vld [vmem:[%s4116_s1 + $0xf40] sm:$0xff]  ;;  %v101_v53 = vld [vmem:[%s4116_s1 + $0x1d8] sm:$0xff] }
  0xc8   :  { %1177 = vmatpush2.msra.mxu0 %v362_v55  ;;  %1251 = vmatprep.subr.mxu1 %v597_v56  ;;  %v525_v55 = vld [vmem:[%s4116_s1 + $0xf18] sm:$0xff]  ;;  %v524_v56 = vld [vmem:[%s4116_s1 + $0xf10] sm:$0xff] }
  0xc9   :  { %1178 = vmatprep.subr.mxu0 %v357_v57  ;;  %1252 = vmatpush2.msra.mxu1 %v596_v58  ;;  %v95_v57 = vld [vmem:[%s4116_s1 + $0x1a8] sm:$0xff]  ;;  %v89_v58 = vld [vmem:[%s4116_s1 + $0x178] sm:$0xff] }
  0xca   :  { %1179 = vmatpush2.msra.mxu0 %v356_v60  ;;  %1253 = vmatprep.subr.mxu1 %v591_v43  ;;  %v88_v60 = vld [vmem:[%s4116_s1 + $0x170] sm:$0xff]  ;;  %v83_v43 = vld [vmem:[%s4116_s1 + $0x148] sm:$0xff] }
  0xcb   :  { %1180 = vmatprep.subr.mxu0 %v351_v62  ;;  %1254 = vmatpush2.msra.mxu1 %v590_v4  ;;  %v82_v62 = vld [vmem:[%s4116_s1 + $0x140] sm:$0xff]  ;;  %v3279_v4 = vld [vmem:[%s4117_s0 + $0x48] sm:$0xff] }
  0xcc   :  { %1181 = vmatpush2.msra.mxu0 %v350_v5  ;;  %1255 = vmatprep.subr.mxu1 %v585_v6  ;;  %v639_v5 = vld [vmem:[%s4116_s1 + $0x12a8] sm:$0xff] }
  0xcd   :  { %1182 = vmatprep.subr.mxu0 %v345_v7  ;;  %1256 = vmatpush2.msra.mxu1 %v584_v8  ;;  %v71_v6 = vld [vmem:[%s4116_s1 + $0xe8] sm:$0xff]  ;;  %v638_v7 = vld [vmem:[%s4116_s1 + $0x12a0] sm:$0xff] }
  0xce   :  { %1183 = vmatpush2.msra.mxu0 %v344_v9  ;;  %1257 = vmatprep.subr.mxu1 %v579_v10  ;;  %v70_v8 = vld [vmem:[%s4116_s1 + $0xe0] sm:$0xff]  ;;  %v65_v9 = vld [vmem:[%s4116_s1 + $0xb8] sm:$0xff]  ;;  %v64_v10 = vld [vmem:[%s4116_s1 + $0xb0] sm:$0xff] }
  0xcf   :  { %1184 = vmatprep.subr.mxu0 %v339_v11  ;;  %1258 = vmatpush2.msra.mxu1 %v578_v12  ;;  %v627_v11 = vld [vmem:[%s4116_s1 + $0x1248] sm:$0xff] }
  0xd0   :  { %1185 = vmatpush2.msra.mxu0 %v338_v13  ;;  %1259 = vmatprep.subr.mxu1 %v573_v14  ;;  %v3315_v12 = vld [vmem:[%s4117_s0 + $0x88] sm:$0xff]  ;;  %v626_v13 = vld [vmem:[%s4116_s1 + $0x1240] sm:$0xff] }
  0xd1   :  { %1186 = vmatprep.subr.mxu0 %v333_v15  ;;  %1260 = vmatpush2.msra.mxu1 %v572_v16  ;;  %v58_v14 = vld [vmem:[%s4116_s1 + $0x80] sm:$0xff]  ;;  %v53_v16 = vld [vmem:[%s4116_s1 + $0x58] sm:$0xff] }
  0xd2   :  { %1187 = vmatpush2.msra.mxu0 %v332_v63  ;;  %1188 = vmatprep.mubr.f32.mxu0 %v3150_v21  ;;  %v3331_v15 = vld [vmem:[%s4117_s0 + $0x80] sm:$0xff]  ;;  %v620_v63 = vld [vmem:[%s4116_s1 + $0x1210] sm:$0xff] }
  0xd3   :  { %1261 = vmatprep.subr.mxu1 %v567_v17  ;;  %1189 = vmatmul.mubr.f32.vlgmr.msra.gmra.mxu0 %v3159_v24  ;;  %v52_v17 = vld [vmem:[%s4116_s1 + $0x50] sm:$0xff] }
  0xd4   :  { %1262 = vmatpush2.msra.mxu1 %v566_v18  ;;  %1391 = vmatprep.subr.mxu0 %v137_v19  ;;  %v47_v18 = vld [vmem:[%s4116_s1 + $0x28] sm:$0xff]  ;;  %v329_v19 = vld [vmem:[%s4116_s1 + $0x8f8] sm:$0xff] }
  0xd5   :  { %1263 = vmatprep.subr.mxu1 %v561_v2  ;;  %1392 = vmatpush1.msra.mxu0 %v136_v22  ;;  %v46_v2 = vld [vmem:[%s4116_s1 + $0x20] sm:$0xff]  ;;  %v328_v22 = vld [vmem:[%s4116_s1 + $0x8f0] sm:$0xff] }
  0xd6   :  { %1105 = vmatprep.mubr.f32.mxu1 %v2356_v41  ;;  %1264 = vmatpush2.msra.mxu1 %v560_v25  ;;  %v124_v41 = vld [vmem:[%s4116_s1 + $0x290] sm:$0xff]  ;;  %v3369_v25 = vld [vmem:[%s4117_s0 + $0xb8] sm:$0xff] }
  0xd7   :  { %1393 = vmatprep.subr.mxu0 %v131_v26  ;;  %1106 = vmatmul.mubr.f32.gmra.mxu1 %v2368_v44  ;;  %v543_v44 = vld [vmem:[%s4116_s1 + $0xfa8] sm:$0xff]  ;;  %v233_v26 = vld [vmem:[%s4116_s1 + $0x5f8] sm:$0xff] }
  0xd8   :  { %1265 = vmatprep.subr.mxu1 %v555_v27  ;;  %1394 = vmatpush1.msra.mxu0 %v130_v28  ;;  %v323_v27 = vld [vmem:[%s4116_s1 + $0x8c8] sm:$0xff]  ;;  %v3381_v28 = vld [vmem:[%s4117_s0 + $0x30] sm:$0xff] }
  0xd9   :  { %1266 = vmatpush2.msra.mxu1 %v554_v29  ;;  %1395 = vmatprep.subr.mxu0 %v125_v31  ;;  %v232_v29 = vld [vmem:[%s4116_s1 + $0x5f0] sm:$0xff]  ;;  %v322_v31 = vld [vmem:[%s4116_s1 + $0x8c0] sm:$0xff] }
  0xda   :  { %1267 = vmatprep.subr.mxu1 %v549_v32  ;;  %1396 = vmatpush1.msra.mxu0 %v124_v41  ;;  %v227_v32 = vld [vmem:[%s4116_s1 + $0x5c8] sm:$0xff]  ;;  %v317_v41 = vld [vmem:[%s4116_s1 + $0x898] sm:$0xff] }
  0xdb   :  { %1111 = vmatprep.mubr.f32.mxu1 %v2393_v51  ;;  %1268 = vmatpush2.msra.mxu1 %v548_v35  ;;  %v112_v51 = vld [vmem:[%s4116_s1 + $0x230] sm:$0xff]  ;;  %v226_v35 = vld [vmem:[%s4116_s1 + $0x5c0] sm:$0xff] }
  0xdc   :  { %1397 = vmatprep.subr.mxu0 %v119_v36  ;;  %1112 = vmatmul.mubr.f32.gmra.mxu1 %v2404_v54  ;;  %v531_v54 = vld [vmem:[%s4116_s1 + $0xf48] sm:$0xff]  ;;  %v316_v36 = vld [vmem:[%s4116_s1 + $0x890] sm:$0xff] }
  0xdd   :  { %1269 = vmatprep.subr.mxu1 %v543_v44  ;;  %1398 = vmatpush1.msra.mxu0 %v118_v38  ;;  %v221_v44 = vld [vmem:[%s4116_s1 + $0x598] sm:$0xff]  ;;  %v311_v38 = vld [vmem:[%s4116_s1 + $0x868] sm:$0xff] }
  0xde   :  { %1270 = vmatpush2.msra.mxu1 %v542_v39  ;;  %1399 = vmatprep.subr.mxu0 %v113_v40  ;;  %v220_v39 = vld [vmem:[%s4116_s1 + $0x590] sm:$0xff]  ;;  %v310_v40 = vld [vmem:[%s4116_s1 + $0x860] sm:$0xff] }
  0xdf   :  { %1271 = vmatprep.subr.mxu1 %v537_v42  ;;  %1400 = vmatpush1.msra.mxu0 %v112_v51  ;;  %v215_v42 = vld [vmem:[%s4116_s1 + $0x568] sm:$0xff]  ;;  %v214_v51 = vld [vmem:[%s4116_s1 + $0x560] sm:$0xff] }
  0xe0   :  { %1117 = vmatprep.mubr.f32.mxu1 %v2429_v61  ;;  %1272 = vmatpush2.msra.mxu1 %v536_v45  ;;  %v100_v61 = vld [vmem:[%s4116_s1 + $0x1d0] sm:$0xff] }
  0xe1   :  { %1401 = vmatprep.subr.mxu0 %v107_v47  ;;  %1118 = vmatmul.mubr.f32.gmra.mxu1 %v2440_v1  ;;  %v94_v1 = vld [vmem:[%s4116_s1 + $0x1a0] sm:$0xff]  ;;  %v304_v45 = vld [vmem:[%s4116_s1 + $0x830] sm:$0xff]  ;;  %v209_v47 = vld [vmem:[%s4116_s1 + $0x538] sm:$0xff] }
  0xe2   :  { %1273 = vmatprep.subr.mxu1 %v531_v54  ;;  %1402 = vmatpush1.msra.mxu0 %v106_v48  ;;  %v299_v54 = vld [vmem:[%s4116_s1 + $0x808] sm:$0xff]  ;;  %v208_v48 = vld [vmem:[%s4116_s1 + $0x530] sm:$0xff] }
  0xe3   :  { %1274 = vmatpush2.msra.mxu1 %v530_v52  ;;  %1403 = vmatprep.subr.mxu0 %v101_v53  ;;  %v298_v52 = vld [vmem:[%s4116_s1 + $0x800] sm:$0xff]  ;;  %v203_v53 = vld [vmem:[%s4116_s1 + $0x508] sm:$0xff] }
  0xe4   :  { %1275 = vmatprep.subr.mxu1 %v525_v55  ;;  %1404 = vmatpush1.msra.mxu0 %v100_v61  ;;  %v202_v55 = vld [vmem:[%s4116_s1 + $0x500] sm:$0xff]  ;;  %v292_v61 = vld [vmem:[%s4116_s1 + $0x7d0] sm:$0xff] }
  0xe5   :  { %1276 = vmatpush2.msra.mxu1 %v524_v56  ;;  %1277 = vmatprep.mubr.f32.mxu1 %v2663_v20  ;;  %v77_v20 = vld [vmem:[%s4116_s1 + $0x118] sm:$0xff] }
  0xe6   :  { %1405 = vmatprep.subr.mxu0 %v95_v57  ;;  %1278 = vmatmul.mubr.f32.vlgmr.msra.gmra.mxu1 %v2674_v23  ;;  %v3270_v23 = vld [vmem:[%s4117_s0 + $0x50] sm:$0xff]  ;;  %v197_v56 = vld [vmem:[%s4116_s1 + $0x4d8] sm:$0xff]  ;;  %v287_v57 = vld [vmem:[%s4116_s1 + $0x7a8] sm:$0xff] }
  0xe7   :  { %1406 = vmatpush1.msra.mxu0 %v94_v1  ;;  %1283 = vmatprep.mubr.f32.mxu1 %v2699_v30  ;;  %v76_v30 = vld [vmem:[%s4116_s1 + $0x110] sm:$0xff] }
  0xe8   :  { %1407 = vmatprep.subr.mxu0 %v89_v58  ;;  %1194 = vmatprep.mubr.f32.mxu0 %v3270_v23  ;;  %v196_v1 = vld [vmem:[%s4116_s1 + $0x4d0] sm:$0xff]  ;;  %v286_v58 = vld [vmem:[%s4116_s1 + $0x7a0] sm:$0xff] }
  0xe9   :  { %1408 = vmatpush1.msra.mxu0 %v88_v60  ;;  %1326 = vmatprep.subr.mxu1 %v639_v5  ;;  %v191_v60 = vld [vmem:[%s4116_s1 + $0x4a8] sm:$0xff]  ;;  %v184_v5 = vld [vmem:[%s4116_s1 + $0x470] sm:$0xff] }
  0xea   :  { %1409 = vmatprep.subr.mxu0 %v83_v43  ;;  %1195 = vmatmul.mubr.f32.gmra.mxu0 %v3279_v4  ;;  %v281_v43 = vld [vmem:[%s4116_s1 + $0x778] sm:$0xff] }
  0xeb   :  { %1284 = vmatmul.mubr.f32.gmra.mxu1 %v2716_v34  ;;  %1410 = vmatpush1.msra.mxu0 %v82_v62  ;;  %v633_v34 = vld [vmem:[%s4116_s1 + $0x1278] sm:$0xff]  ;;  %v280_v62 = vld [vmem:[%s4116_s1 + $0x770] sm:$0xff] }
  0xec   :  { %1411 = vmatprep.subr.mxu0 %v77_v20  ;;  %1289 = vmatprep.mubr.f32.mxu1 %v2747_v46  ;;  %v632_v46 = vld [vmem:[%s4116_s1 + $0x1270] sm:$0xff]  ;;  %v185_v20 = vld [vmem:[%s4116_s1 + $0x478] sm:$0xff] }
  0xed   :  { %1412 = vmatpush1.msra.mxu0 %v76_v30  ;;  %1327 = vmatpush1.msra.mxu1 %v638_v7  ;;  %v275_v30 = vld [vmem:[%s4116_s1 + $0x748] sm:$0xff] }
  0xee   :  { %1413 = vmatprep.subr.mxu0 %v71_v6  ;;  %1328 = vmatprep.subr.mxu1 %v633_v34  ;;  %v274_v6 = vld [vmem:[%s4116_s1 + $0x740] sm:$0xff]  ;;  %v179_v7 = vld [vmem:[%s4116_s1 + $0x448] sm:$0xff] }
  0xef   :  { %1290 = vmatmul.mubr.f32.gmra.mxu1 %v2764_v50  ;;  %1414 = vmatpush1.msra.mxu0 %v70_v8  ;;  %v59_v50 = vld [vmem:[%s4116_s1 + $0x88] sm:$0xff]  ;;  %v269_v8 = vld [vmem:[%s4116_s1 + $0x718] sm:$0xff]  ;;  %v178_v34 = vld [vmem:[%s4116_s1 + $0x440] sm:$0xff] }
  0xf0   :  { %1415 = vmatprep.subr.mxu0 %v65_v9  ;;  %1200 = vmatprep.mubr.f32.mxu0 %v3315_v12  ;;  %v268_v9 = vld [vmem:[%s4116_s1 + $0x710] sm:$0xff] }
  0xf1   :  { %1329 = vmatpush1.msra.mxu1 %v632_v46  ;;  %1416 = vmatpush1.msra.mxu0 %v64_v10  ;;  %v173_v46 = vld [vmem:[%s4116_s1 + $0x418] sm:$0xff]  ;;  %v263_v10 = vld [vmem:[%s4116_s1 + $0x6e8] sm:$0xff] }
  0xf2   :  { %1295 = vmatprep.mubr.f32.mxu1 %v2791_v59  ;;  %1201 = vmatmul.mubr.f32.gmra.mxu0 %v3331_v15  ;;  %v621_v59 = vld [vmem:[%s4116_s1 + $0x1218] sm:$0xff] }
  0xf3   :  { %1330 = vmatprep.subr.mxu1 %v627_v11  ;;  %1417 = vmatprep.subr.mxu0 %v59_v50  ;;  %v172_v11 = vld [vmem:[%s4116_s1 + $0x410] sm:$0xff]  ;;  %v262_v50 = vld [vmem:[%s4116_s1 + $0x6e0] sm:$0xff] }
  0xf4   :  { %1296 = vmatmul.mubr.f32.gmra.mxu1 %v2808_v3  ;;  %1418 = vmatpush1.msra.mxu0 %v58_v14  ;;  %v3353_v3 = vld [vmem:[%s4117_s0 + $0xc0] sm:$0xff]  ;;  %v257_v14 = vld [vmem:[%s4116_s1 + $0x6b8] sm:$0xff] }
  0xf5   :  { %1331 = vmatpush1.msra.mxu1 %v626_v13  ;;  %1419 = vmatprep.subr.mxu0 %v53_v16  ;;  %v167_v13 = vld [vmem:[%s4116_s1 + $0x3e8] sm:$0xff]  ;;  %v256_v16 = vld [vmem:[%s4116_s1 + $0x6b0] sm:$0xff] }
  0xf6   :  { %1332 = vmatprep.subr.mxu1 %v621_v59  ;;  %1206 = vmatprep.mubr.f32.mxu0 %v3353_v3  ;;  %v166_v59 = vld [vmem:[%s4116_s1 + $0x3e0] sm:$0xff] }
  0xf7   :  { %1333 = vmatpush1.msra.mxu1 %v620_v63  ;;  %1420 = vmatpush1.msra.mxu0 %v52_v17  ;;  %v161_v63 = vld [vmem:[%s4116_s1 + $0x3b8] sm:$0xff]  ;;  %v251_v17 = vld [vmem:[%s4116_s1 + $0x688] sm:$0xff] }
  0xf8   :  { %1366 = vmatprep.mubr.f32.mxu1 %v1820_v37  ;;  %1207 = vmatmul.mubr.f32.gmra.mxu0 %v3369_v25 }
  0xf9   :  { %1421 = vmatprep.subr.mxu0 %v47_v18  ;;  %1480 = vmatprep.subr.mxu1 %v329_v19  ;;  %v160_v18 = vld [vmem:[%s4116_s1 + $0x3b0] sm:$0xff]  ;;  %v250_v19 = vld [vmem:[%s4116_s1 + $0x680] sm:$0xff] }
  0xfa   :  { %1780 = vmatmul.mubr.msk.f32.vlgmr.msra.gmra.mxu1 %vm666_vm0, %v3381_v28  ;;  %1422 = vmatpush1.msra.mxu0 %v46_v2  ;;  %v155_v2 = vld [vmem:[%s4116_s1 + $0x388] sm:$0xff] }
  0xfb   :  { %1481 = vmatpush1.msra.mxu1 %v328_v22  ;;  %1423 = vmatprep.subr.mxu0 %v233_v26  ;;  %v245_v22 = vld [vmem:[%s4116_s1 + $0x658] sm:$0xff]  ;;  %v154_v26 = vld [vmem:[%s4116_s1 + $0x380] sm:$0xff] }
  0xfc   :  { %1482 = vmatprep.subr.mxu1 %v323_v27  ;;  %1424 = vmatpush2.msra.mxu0 %v232_v29  ;;  %v244_v27 = vld [vmem:[%s4116_s1 + $0x650] sm:$0xff]  ;;  %v149_v29 = vld [vmem:[%s4116_s1 + $0x358] sm:$0xff] }
  0xfd   :  { %1483 = vmatpush1.msra.mxu1 %v322_v31  ;;  %1372 = vmatprep.mubr.f32.mxu1 %v1820_v37  ;;  %v239_v31 = vld [vmem:[%s4116_s1 + $0x628] sm:$0xff] }
  0xfe   :  { %1425 = vmatprep.subr.mxu0 %v227_v32  ;;  %1484 = vmatprep.subr.mxu1 %v317_v41  ;;  %v148_v32 = vld [vmem:[%s4116_s1 + $0x350] sm:$0xff]  ;;  %v238_v41 = vld [vmem:[%s4116_s1 + $0x620] sm:$0xff] }
  0xff   :  { %1781 = vmatmul.mubr.msk.f32.gmra.mxu1 %vm666_vm0, %v2710_v33  ;;  %1426 = vmatpush2.msra.mxu0 %v226_v35  ;;  %v305_v33 = vld [vmem:[%s4116_s1 + $0x838] sm:$0xff]  ;;  %v143_v35 = vld [vmem:[%s4116_s1 + $0x328] sm:$0xff] }
 0x100   :  { %1485 = vmatpush1.msra.mxu1 %v316_v36  ;;  %1427 = vmatprep.subr.mxu0 %v221_v44  ;;  %v425_v36 = vld [vmem:[%s4116_s1 + $0xbf8] sm:$0xff]  ;;  %v142_v44 = vld [vmem:[%s4116_s1 + $0x320] sm:$0xff] }
 0x101   :  { %1486 = vmatprep.subr.mxu1 %v311_v38  ;;  %1428 = vmatpush2.msra.mxu0 %v220_v39  ;;  %v424_v38 = vld [vmem:[%s4116_s1 + $0xbf0] sm:$0xff]  ;;  %v419_v39 = vld [vmem:[%s4116_s1 + $0xbc8] sm:$0xff] }
 0x102   :  { %1487 = vmatpush1.msra.mxu1 %v310_v40  ;;  %1378 = vmatprep.mubr.f32.mxu1 %v1820_v37  ;;  %v521_v40 = vld [vmem:[%s4116_s1 + $0xef8] sm:$0xff] }
 0x103   :  { %1429 = vmatprep.subr.mxu0 %v215_v42  ;;  %1488 = vmatprep.subr.mxu1 %v305_v33  ;;  %v1801_v42 = vld [vmem:[%s4117_s0 + $0x8] sm:$0xff]  ;;  %v418_v33 = vld [vmem:[%s4116_s1 + $0xbc0] sm:$0xff] }
 0x104   :  { %1782 = vmatmul.mubr.msk.f32.gmra.mxu1 %vm666_vm0, %v2758_v49  ;;  %1430 = vmatpush2.msra.mxu0 %v214_v51  ;;  %v293_v49 = vld [vmem:[%s4116_s1 + $0x7d8] sm:$0xff]  ;;  %v520_v51 = vld [vmem:[%s4116_s1 + $0xef0] sm:$0xff] }
 0x105   :  { %1489 = vmatpush1.msra.mxu1 %v304_v45  ;;  %1431 = vmatprep.subr.mxu0 %v209_v47  ;;  %v1802_v45 = vld [vmem:[%s4117_s0] sm:$0xff]  ;;  %v413_v47 = vld [vmem:[%s4116_s1 + $0xb98] sm:$0xff] }
 0x106   :  { %1490 = vmatprep.subr.mxu1 %v299_v54  ;;  %1432 = vmatpush2.msra.mxu0 %v208_v48  ;;  %v515_v54 = vld [vmem:[%s4116_s1 + $0xec8] sm:$0xff]  ;;  %v412_v48 = vld [vmem:[%s4116_s1 + $0xb90] sm:$0xff] }
 0x107   :  { %1491 = vmatpush1.msra.mxu1 %v298_v52  ;;  %1384 = vmatprep.mubr.f32.mxu1 %v1820_v37  ;;  %v514_v52 = vld [vmem:[%s4116_s1 + $0xec0] sm:$0xff] }
 0x108   :  { %1433 = vmatprep.subr.mxu0 %v203_v53  ;;  %1492 = vmatprep.subr.mxu1 %v293_v49  ;;  %v407_v53 = vld [vmem:[%s4116_s1 + $0xb68] sm:$0xff]  ;;  %v509_v49 = vld [vmem:[%s4116_s1 + $0xe98] sm:$0xff] }
 0x109   :  { %1783 = vmatmul.mubr.msk.f32.gmra.mxu1 %vm666_vm0, %v2802_v0  ;;  %1434 = vmatpush2.msra.mxu0 %v202_v55  ;;  %v190_v0 = vld [vmem:[%s4116_s1 + $0x4a0] sm:$0xff] }
 0x10a   :  { %1493 = vmatpush1.msra.mxu1 %v292_v61  ;;  %1435 = vmatprep.subr.mxu0 %v197_v56  ;;  %v406_v55 = vld [vmem:[%s4116_s1 + $0xb60] sm:$0xff]  ;;  %v508_v61 = vld [vmem:[%s4116_s1 + $0xe90] sm:$0xff]  ;;  %v401_v56 = vld [vmem:[%s4116_s1 + $0xb38] sm:$0xff] }
 0x10b   :  { %1494 = vmatprep.subr.mxu1 %v287_v57  ;;  %1436 = vmatpush2.msra.mxu0 %v196_v1  ;;  %v503_v57 = vld [vmem:[%s4116_s1 + $0xe68] sm:$0xff]  ;;  %v400_v1 = vld [vmem:[%s4116_s1 + $0xb30] sm:$0xff] }
 0x10c   :  { %1495 = vmatpush1.msra.mxu1 %v286_v58  ;;  %1437 = vmatprep.subr.mxu0 %v191_v60  ;;  %v502_v58 = vld [vmem:[%s4116_s1 + $0xe60] sm:$0xff]  ;;  %v395_v60 = vld [vmem:[%s4116_s1 + $0xb08] sm:$0xff] }
 0x10d   :  { %1496 = vmatprep.subr.mxu1 %v281_v43  ;;  %1438 = vmatpush2.msra.mxu0 %v190_v0  ;;  %v497_v43 = vld [vmem:[%s4116_s1 + $0xe38] sm:$0xff]  ;;  %v394_v0 = vld [vmem:[%s4116_s1 + $0xb00] sm:$0xff] }
 0x10e   :  { %1497 = vmatpush1.msra.mxu1 %v280_v62  ;;  %1439 = vmatprep.subr.mxu0 %v185_v20  ;;  %v496_v62 = vld [vmem:[%s4116_s1 + $0xe30] sm:$0xff]  ;;  %v389_v20 = vld [vmem:[%s4116_s1 + $0xad8] sm:$0xff] }
 0x10f   :  { %1498 = vmatprep.subr.mxu1 %v275_v30  ;;  %1440 = vmatpush2.msra.mxu0 %v184_v5  ;;  %v491_v30 = vld [vmem:[%s4116_s1 + $0xe08] sm:$0xff]  ;;  %v388_v5 = vld [vmem:[%s4116_s1 + $0xad0] sm:$0xff] }
 0x110   :  { %1499 = vmatpush1.msra.mxu1 %v274_v6  ;;  %1441 = vmatprep.subr.mxu0 %v179_v7  ;;  %v490_v6 = vld [vmem:[%s4116_s1 + $0xe00] sm:$0xff]  ;;  %v383_v7 = vld [vmem:[%s4116_s1 + $0xaa8] sm:$0xff] }
 0x111   :  { %1500 = vmatprep.subr.mxu1 %v269_v8  ;;  %1442 = vmatpush2.msra.mxu0 %v178_v34  ;;  %v485_v8 = vld [vmem:[%s4116_s1 + $0xdd8] sm:$0xff]  ;;  %v3664_v34 = vpop.f32.mrf.mxu1 }
 0x112   :  { %1501 = vmatpush1.msra.mxu1 %v268_v9  ;;  %1443 = vmatprep.subr.mxu0 %v173_v46  ;;  %v382_v9 = vld [vmem:[%s4116_s1 + $0xaa0] sm:$0xff]  ;;  %v484_v46 = vld [vmem:[%s4116_s1 + $0xdd0] sm:$0xff] }
 0x113   :  { %1502 = vmatprep.subr.mxu1 %v263_v10  ;;  %1444 = vmatpush2.msra.mxu0 %v172_v11  ;;  %v377_v10 = vld [vmem:[%s4116_s1 + $0xa78] sm:$0xff]  ;;  %v479_v11 = vld [vmem:[%s4116_s1 + $0xda8] sm:$0xff] }
 0x114   :  { %1503 = vmatpush1.msra.mxu1 %v262_v50  ;;  %1445 = vmatprep.subr.mxu0 %v167_v13  ;;  %v376_v50 = vld [vmem:[%s4116_s1 + $0xa70] sm:$0xff]  ;;  %v478_v13 = vld [vmem:[%s4116_s1 + $0xda0] sm:$0xff] }
 0x115   :  { %1504 = vmatprep.subr.mxu1 %v257_v14  ;;  %1446 = vmatpush2.msra.mxu0 %v166_v59  ;;  %v3684_v14 = vpop.f32.mrf.mxu0  ;;  %v371_v59 = vld [vmem:[%s4116_s1 + $0xa48] sm:$0xff] }
 0x116   :  { %1505 = vmatpush1.msra.mxu1 %v256_v16  ;;  %1447 = vmatprep.subr.mxu0 %v161_v63  ;;  %v473_v16 = vld [vmem:[%s4116_s1 + $0xd78] sm:$0xff]  ;;  %v3692_v63 = vpop.f32.mrf.mxu1 }
 0x117   :  { %1506 = vmatprep.subr.mxu1 %v251_v17  ;;  %1448 = vmatpush2.msra.mxu0 %v160_v18  ;;  %v370_v17 = vld [vmem:[%s4116_s1 + $0xa40] sm:$0xff]  ;;  %v472_v18 = vld [vmem:[%s4116_s1 + $0xd70] sm:$0xff] }
 0x118   :  { %1507 = vmatpush1.msra.mxu1 %v250_v19  ;;  %1449 = vmatprep.subr.mxu0 %v155_v2  ;;  %v365_v19 = vld [vmem:[%s4116_s1 + $0xa18] sm:$0xff]  ;;  %v467_v2 = vld [vmem:[%s4116_s1 + $0xd48] sm:$0xff] }
 0x119   :  { %1508 = vmatprep.subr.mxu1 %v245_v22  ;;  %1450 = vmatpush2.msra.mxu0 %v154_v26  ;;  %v364_v22 = vld [vmem:[%s4116_s1 + $0xa10] sm:$0xff]  ;;  %v466_v26 = vld [vmem:[%s4116_s1 + $0xd40] sm:$0xff] }
 0x11a   :  { %1509 = vmatpush1.msra.mxu1 %v244_v27  ;;  %1451 = vmatprep.subr.mxu0 %v149_v29  ;;  %v3712_v27 = vpop.f32.mrf.mxu1  ;;  %v3714_v29 = vpop.f32.mrf.mxu0 }
 0x11b   :  { %1510 = vmatprep.subr.mxu1 %v239_v31  ;;  %1452 = vmatpush2.msra.mxu0 %v148_v32  ;;  %v359_v31 = vld [vmem:[%s4116_s1 + $0x9e8] sm:$0xff]  ;;  %v461_v32 = vld [vmem:[%s4116_s1 + $0xd18] sm:$0xff] }
 0x11c   :  { %1511 = vmatpush1.msra.mxu1 %v238_v41  ;;  %1453 = vmatprep.subr.mxu0 %v143_v35  ;;  %v358_v41 = vld [vmem:[%s4116_s1 + $0x9e0] sm:$0xff]  ;;  %v460_v35 = vld [vmem:[%s4116_s1 + $0xd10] sm:$0xff] }
 0x11d   :  { %1512 = vmatprep.subr.mxu1 %v425_v36  ;;  %1454 = vmatpush2.msra.mxu0 %v142_v44  ;;  %v3728_v36 = vpop.f32.mrf.mxu0  ;;  %v353_v44 = vld [vmem:[%s4116_s1 + $0x9b8] sm:$0xff] }
 0x11e   :  { %1455 = vmatprep.mubr.f32.mxu0 %v1801_v42  ;;  %1513 = vmatpush2.msra.mxu1 %v424_v38  ;;  %v455_v38 = vld [vmem:[%s4116_s1 + $0xce8] sm:$0xff]  ;;  %v454_v42 = vld [vmem:[%s4116_s1 + $0xce0] sm:$0xff] }
 0x11f   :  { %1456 = vmatmul.mubr.f32.vlgmr.msra.gmra.mxu0 %v1802_v45  ;;  %1514 = vmatprep.subr.mxu1 %v419_v39  ;;  %v3736_v39 = vpop.f32.mrf.mxu1  ;;  %v346_v45 = vld [vmem:[%s4116_s1 + $0x980] sm:$0xff] }
 0x120   :  { %1569 = vmatprep.subr.mxu0 %v521_v40  ;;  %1515 = vmatpush2.msra.mxu1 %v418_v33  ;;  %v352_v40 = vld [vmem:[%s4116_s1 + $0x9b0] sm:$0xff]  ;;  %v347_v33 = vld [vmem:[%s4116_s1 + $0x988] sm:$0xff] }
 0x121   :  { %1570 = vmatpush1.msra.mxu0 %v520_v51  ;;  %1516 = vmatprep.subr.mxu1 %v413_v47  ;;  %v449_v51 = vld [vmem:[%s4116_s1 + $0xcb8] sm:$0xff]  ;;  %v448_v47 = vld [vmem:[%s4116_s1 + $0xcb0] sm:$0xff] }
 0x122   :  { %1571 = vmatprep.subr.mxu0 %v515_v54  ;;  %1517 = vmatpush2.msra.mxu1 %v412_v48  ;;  %v3756_v54 = vpop.f32.mrf.mxu0  ;;  %v341_v48 = vld [vmem:[%s4116_s1 + $0x958] sm:$0xff] }
 0x123   :  { %1572 = vmatpush1.msra.mxu0 %v514_v52  ;;  %1518 = vmatprep.subr.mxu1 %v407_v53  ;;  %v443_v52 = vld [vmem:[%s4116_s1 + $0xc88] sm:$0xff]  ;;  %v3764_v53 = vpop.f32.mrf.mxu1 }
 0x124   :  { %1573 = vmatprep.subr.mxu0 %v509_v49  ;;  %1519 = vmatpush2.msra.mxu1 %v406_v55  ;;  %v340_v49 = vld [vmem:[%s4116_s1 + $0x950] sm:$0xff]  ;;  %v442_v55 = vld [vmem:[%s4116_s1 + $0xc80] sm:$0xff] }
 0x125   :  { %1574 = vmatpush1.msra.mxu0 %v508_v61  ;;  %1520 = vmatprep.subr.mxu1 %v401_v56  ;;  %v335_v61 = vld [vmem:[%s4116_s1 + $0x928] sm:$0xff]  ;;  %v437_v56 = vld [vmem:[%s4116_s1 + $0xc58] sm:$0xff] }
 0x126   :  { %1575 = vmatprep.subr.mxu0 %v503_v57  ;;  %1521 = vmatpush2.msra.mxu1 %v400_v1  ;;  %v334_v57 = vld [vmem:[%s4116_s1 + $0x920] sm:$0xff]  ;;  %v3781_v1 = vpop.f32.mrf.mxu0 }
 0x127   :  { %1576 = vmatpush1.msra.mxu0 %v502_v58  ;;  %1522 = vmatprep.subr.mxu1 %v395_v60  ;;  %v436_v58 = vld [vmem:[%s4116_s1 + $0xc50] sm:$0xff]  ;;  %v3786_v60 = vpop.f32.mrf.mxu1 }
 0x128   :  { %1577 = vmatprep.subr.mxu0 %v497_v43  ;;  %1523 = vmatpush2.msra.mxu1 %v394_v0  ;;  %v431_v43 = vld [vmem:[%s4116_s1 + $0xc28] sm:$0xff]  ;;  %v430_v0 = vld [vmem:[%s4116_s1 + $0xc20] sm:$0xff] }
 0x129   :  { %1578 = vmatpush1.msra.mxu0 %v496_v62  ;;  %1524 = vmatprep.subr.mxu1 %v389_v20  ;;  %v641_v62 = vld [vmem:[%s4116_s1 + $0x12b8] sm:$0xff] }
 0x12a   :  { %1579 = vmatprep.subr.mxu0 %v491_v30  ;;  %1525 = vmatpush2.msra.mxu1 %v388_v5  ;;  %v617_v20 = vld [vmem:[%s4116_s1 + $0x11f8] sm:$0xff]  ;;  %v3802_v30 = vpop.f32.mrf.mxu0  ;;  %v1803_v5 = vld [vmem:[%s4117_s0 + $0x40] sm:$0xff] }
 0x12b   :  { %1580 = vmatpush1.msra.mxu0 %v490_v6  ;;  %1526 = vmatprep.subr.mxu1 %v383_v7  ;;  %v3813_v6 = vpop.f32.mrf.mxu1  ;;  %v611_v7 = vld [vmem:[%s4116_s1 + $0x11c8] sm:$0xff] }
 0x12c   :  { %1581 = vmatprep.subr.mxu0 %v485_v8  ;;  %1527 = vmatpush2.msra.mxu1 %v382_v9  ;;  %v3818_v8 = vpop.permute.xlu0 %648  ;;  %v610_v9 = vld [vmem:[%s4116_s1 + $0x11c0] sm:$0xff] }
 0x12d   :  { %1582 = vmatpush1.msra.mxu0 %v484_v46  ;;  %1528 = vmatprep.subr.mxu1 %v377_v10  ;;  %v1804_v46 = vld [vmem:[%s4117_s0 + $0x38] sm:$0xff] }
 0x12e   :  { %1583 = vmatprep.subr.mxu0 %v479_v11  ;;  %1529 = vmatpush2.msra.mxu1 %v376_v50  ;;  %v605_v10 = vld [vmem:[%s4116_s1 + $0x1198] sm:$0xff]  ;;  %v3829_v11 = vpop.f32.mrf.mxu0  ;;  %v604_v50 = vld [vmem:[%s4116_s1 + $0x1190] sm:$0xff] }
 0x12f   :  { %1584 = vmatpush1.msra.mxu0 %v478_v13  ;;  %1530 = vmatprep.subr.mxu1 %v371_v59  ;;  %v635_v13 = vld [vmem:[%s4116_s1 + $0x1288] sm:$0xff]  ;;  %v746_v59 = vadd.f32 %v3684_v14, %v3818_v8  ;;  %v634_v14 = vld [vmem:[%s4116_s1 + $0x1280] sm:$0xff] }
 0x130   :  { %1585 = vmatprep.subr.mxu0 %v473_v16  ;;  %1531 = vmatpush2.msra.mxu1 %v370_v17  ;;  %v3840_v16 = vpop.f32.mrf.mxu1  ;;  %v599_v17 = vld [vmem:[%s4116_s1 + $0x1168] sm:$0xff] }
 0x131   :  { %1586 = vmatpush1.msra.mxu0 %v472_v18  ;;  %1532 = vmatprep.subr.mxu1 %v365_v19  ;;  %v1805_v18 = vld [vmem:[%s4117_s0 + $0x78] sm:$0xff]  ;;  %v748_v19 = vadd.f32 %v3714_v29, %v3818_v8  ;;  %v835_v29 = vadd.f32 %v3664_v34, %v746_v59  ;;  %v551_v59 = vld [vmem:[%s4116_s1 + $0xfe8] sm:$0xff] }
 0x132   :  { %1587 = vmatprep.subr.mxu0 %v467_v2  ;;  %1533 = vmatpush2.msra.mxu1 %v364_v22  ;;  %v3860_v2 = vpop.permute.xlu0 %653  ;;  %v3862_v22 = vpop.f32.mrf.mxu0 }
 0x133   :  { %1588 = vmatpush1.msra.mxu0 %v466_v26  ;;  %1534 = vmatprep.subr.mxu1 %v359_v31  ;;  %v592_v26 = vld [vmem:[%s4116_s1 + $0x1130] sm:$0xff]  ;;  %v837_v34 = vadd.f32 %v3692_v63, %v748_v19 }
 0x134   :  { %1589 = vmatprep.subr.mxu0 %v461_v32  ;;  %1535 = vmatpush2.msra.mxu1 %v358_v41  ;;  %v1806_v31 = vld [vmem:[%s4117_s0 + $0x70] sm:$0xff]  ;;  %v1012_v32 = vpop.f32.mrf.mxu1  ;;  %v587_v41 = vld [vmem:[%s4116_s1 + $0x1108] sm:$0xff] }
 0x135   :  { %1590 = vmatpush1.msra.mxu0 %v460_v35  ;;  %1536 = vmatprep.subr.mxu1 %v353_v44  ;;  %v586_v35 = vld [vmem:[%s4116_s1 + $0x1100] sm:$0xff]  ;;  %v629_v44 = vld [vmem:[%s4116_s1 + $0x1258] sm:$0xff]  ;;  %v1807_v63 = vld [vmem:[%s4117_s0 + $0xb0] sm:$0xff] }
 0x136   :  { %1591 = vmatprep.subr.mxu0 %v455_v38  ;;  %1537 = vmatpush2.msra.mxu1 %v352_v40  ;;  %v752_v40 = vadd.f32 %v3728_v36, %v3860_v2  ;;  %v628_v36 = vld [vmem:[%s4116_s1 + $0x1250] sm:$0xff] }
 0x137   :  { %1592 = vmatpush1.msra.mxu0 %v454_v42  ;;  %1538 = vmatprep.subr.mxu1 %v347_v33  ;;  %v581_v42 = vld [vmem:[%s4116_s1 + $0x10d8] sm:$0xff] }
 0x138   :  { %1593 = vmatprep.subr.mxu0 %v449_v51  ;;  %1539 = vmatpush2.msra.mxu1 %v346_v45  ;;  %v754_v45 = vadd.f32 %v3756_v54, %v3860_v2  ;;  %v841_v54 = vadd.f32 %v3712_v27, %v752_v40  ;;  %v568_v27 = vld [vmem:[%s4116_s1 + $0x1070] sm:$0xff] }
 0x139   :  { %1594 = vmatpush1.msra.mxu0 %v448_v47  ;;  %1540 = vmatprep.subr.mxu1 %v341_v48  ;;  %v575_v47 = vld [vmem:[%s4116_s1 + $0x10a8] sm:$0xff] }
 0x13a   :  { %1595 = vmatprep.subr.mxu0 %v443_v52  ;;  %1541 = vmatpush2.msra.mxu1 %v340_v49  ;;  %v574_v49 = vld [vmem:[%s4116_s1 + $0x10a0] sm:$0xff] }
 0x13b   :  { %1596 = vmatpush1.msra.mxu0 %v442_v55  ;;  %1542 = vmatprep.subr.mxu1 %v335_v61  ;;  %v1808_v55 = vld [vmem:[%s4117_s0 + $0xa8] sm:$0xff]  ;;  %v3909_v61 = vpop.permute.xlu1 %658 }
 0x13c   :  { %1597 = vmatprep.subr.mxu0 %v437_v56  ;;  %1543 = vmatpush2.msra.mxu1 %v334_v57  ;;  %v569_v56 = vld [vmem:[%s4116_s1 + $0x1078] sm:$0xff]  ;;  %v623_v57 = vld [vmem:[%s4116_s1 + $0x1228] sm:$0xff] }
 0x13d   :  { %1544 = vmatprep.mubr.f32.mxu1 %v3150_v21  ;;  %1598 = vmatpush1.msra.mxu0 %v436_v58  ;;  %v616_v21 = vld [vmem:[%s4116_s1 + $0x11f0] sm:$0xff] }
 0x13e   :  { %1545 = vmatmul.mubr.f32.vlgmr.msra.gmra.mxu1 %v3159_v24  ;;  %1599 = vmatprep.subr.mxu0 %v431_v43  ;;  %v640_v24 = vld [vmem:[%s4116_s1 + $0x12b0] sm:$0xff] }
 0x13f   :  { %1461 = vmatprep.mubr.f32.mxu0 %v1803_v5  ;;  %1600 = vmatpush1.msra.mxu0 %v430_v0  ;;  %v622_v0 = vld [vmem:[%s4116_s1 + $0x1220] sm:$0xff] }
 0x140   :  { %1682 = vmatprep.subr.mxu1 %v641_v62  ;;  %1601 = vmatprep.subr.mxu0 %v617_v20  ;;  %v843_v20 = vadd.f32 %v3736_v39, %v754_v45  ;;  %v562_v39 = vld [vmem:[%s4116_s1 + $0x1040] sm:$0xff] }
 0x141   :  { %1462 = vmatmul.mubr.f32.gmra.mxu0 %v1804_v46  ;;  %1683 = vmatpush1.msra.mxu1 %v640_v24 }
 0x142   :  { %1602 = vmatpush2.msra.mxu0 %v616_v21  ;;  %1550 = vmatprep.mubr.f32.mxu1 %v3270_v23  ;;  %v598_v23 = vld [vmem:[%s4116_s1 + $0x1160] sm:$0xff]  ;;  %v563_v21 = vld [vmem:[%s4116_s1 + $0x1048] sm:$0xff] }
 0x143   :  { %1603 = vmatprep.subr.mxu0 %v611_v7  ;;  %1551 = vmatmul.mubr.f32.gmra.mxu1 %v3279_v4  ;;  %v593_v4 = vld [vmem:[%s4116_s1 + $0x1138] sm:$0xff] }
 0x144   :  { %1604 = vmatpush2.msra.mxu0 %v610_v9  ;;  %1467 = vmatprep.mubr.f32.mxu0 %v1805_v18 }
 0x145   :  { %1605 = vmatprep.subr.mxu0 %v605_v10  ;;  %1684 = vmatprep.subr.mxu1 %v635_v13  ;;  %v760_v10 = vadd.f32 %v3802_v30, %v3909_v61  ;;  %v3951_v13 = vpop.permute.xlu1 %663 }
 0x146   :  { %1606 = vmatpush2.msra.mxu0 %v604_v50  ;;  %1685 = vmatpush1.msra.mxu1 %v634_v14  ;;  %v1809_v50 = vld [vmem:[%s4117_s0 + $0x28] sm:$0xff]  ;;  %v545_v14 = vld [vmem:[%s4116_s1 + $0xfb8] sm:$0xff] }
 0x147   :  { %1607 = vmatprep.subr.mxu0 %v599_v17  ;;  %1468 = vmatmul.mubr.f32.gmra.mxu0 %v1806_v31 }
 0x148   :  { %1608 = vmatpush2.msra.mxu0 %v598_v23  ;;  %1556 = vmatprep.mubr.f32.mxu1 %v3315_v12  ;;  %v923_v38 = vpop.f32.mrf.mxu0  ;;  %v580_v12 = vld [vmem:[%s4116_s1 + $0x10d0] sm:$0xff]  ;;  %v550_v23 = vld [vmem:[%s4116_s1 + $0xfe0] sm:$0xff] }
 0x149   :  { %1609 = vmatprep.subr.mxu0 %v593_v4  ;;  %1557 = vmatmul.mubr.f32.gmra.mxu1 %v3331_v15  ;;  %v924_v33 = vadd.f32 %v923_v38, %v835_v29  ;;  %v1014_v15 = vpop.f32.mrf.mxu1  ;;  %v764_v4 = vadd.f32 %v3829_v11, %v3951_v13  ;;  %v539_v29 = vld [vmem:[%s4116_s1 + $0xf88] sm:$0xff]  ;;  %v533_v38 = vld [vmem:[%s4116_s1 + $0xf58] sm:$0xff] }
 0x14a   :  { %1610 = vmatpush2.msra.mxu0 %v592_v26  ;;  %1473 = vmatprep.mubr.f32.mxu0 %v1807_v63  ;;  %v925_v51 = vpop.f32.mrf.mxu0  ;;  %v1810_v11 = vld [vmem:[%s4117_s0 + $0x68] sm:$0xff] }
 0x14b   :  { %1611 = vmatprep.subr.mxu0 %v587_v41  ;;  %1686 = vmatprep.subr.mxu1 %v629_v44  ;;  %v1013_v48 = vadd.f32 %v1012_v32, %v924_v33  ;;  %v926_v52 = vadd.f32 %v925_v51, %v837_v34  ;;  %v766_v41 = vadd.f32 %v3862_v22, %v3951_v13  ;;  %v532_v34 = vld [vmem:[%s4116_s1 + $0xf50] sm:$0xff]  ;;  %v527_v33 = vld [vmem:[%s4116_s1 + $0xf28] sm:$0xff] }
 0x14c   :  { %1612 = vmatpush2.msra.mxu0 %v586_v35  ;;  %1687 = vmatpush1.msra.mxu1 %v628_v36  ;;  %v853_v22 = vadd.f32 %v3813_v6, %v764_v4  ;;  %v526_v6 = vld [vmem:[%s4116_s1 + $0xf20] sm:$0xff] }
 0x14d   :  { %1613 = vmatprep.subr.mxu0 %v581_v42  ;;  %1474 = vmatmul.mubr.f32.gmra.mxu0 %v1808_v55  ;;  %1747 = vst [vmem:[%s4119_s3] sm:$0xff] %v1013_v48  ;;  %v1015_v58 = vadd.f32 %v1014_v15, %v926_v52  ;;  %v855_v63 = vadd.f32 %v3840_v16, %v766_v41  ;;  %v1811_v36 = vld [vmem:[%s4117_s0 + $0xa0] sm:$0xff]  ;;  %v1813_v52 = vld [vmem:[%s4117_s0 + $0xd8] sm:$0xff] }
 0x14e   :  { %1614 = vmatpush2.msra.mxu0 %v580_v12  ;;  %v1018_v43 = vpop.f32.mrf.mxu1  ;;  %1562 = vmatprep.mubr.f32.mxu1 %v3353_v3  ;;  %v929_v62 = vpop.f32.mrf.mxu0  ;;  %v758_v3 = vadd.f32 %v3781_v1, %v3909_v61  ;;  %v556_v1 = vld [vmem:[%s4116_s1 + $0x1010] sm:$0xff]  ;;  %v1812_v48 = vld [vmem:[%s4117_s0 + $0x20] sm:$0xff]  ;;  %v1815_v55 = vld [vmem:[%s4117_s0 + $0x58] sm:$0xff] }
 0x14f   :  { %1615 = vmatprep.subr.mxu0 %v575_v47  ;;  %1563 = vmatmul.mubr.f32.gmra.mxu1 %v3369_v25  ;;  %1748 = vst [vmem:[%s4119_s3 + $0x8] sm:$0xff] %v1015_v58  ;;  %v930_v5 = vadd.f32 %v929_v62, %v841_v54  ;;  %v557_v25 = vld [vmem:[%s4116_s1 + $0x1018] sm:$0xff]  ;;  %v1819_v58 = vld [vmem:[%s4117_s0 + $0xc8] sm:$0xff] }
 0x150   :  { %1616 = vmatpush2.msra.mxu0 %v574_v49  ;;  %1688 = vmatprep.subr.mxu1 %v623_v57  ;;  %v931_v24 = vpop.f32.mrf.mxu0  ;;  %v1020_v7 = vpop.f32.mrf.mxu1  ;;  %v847_v17 = vadd.f32 %v3764_v53, %v758_v3  ;;  %v849_v53 = vadd.f32 %v3786_v60, %v760_v10  ;;  %v538_v60 = vld [vmem:[%s4116_s1 + $0xf80] sm:$0xff]  ;;  %v1816_v54 = vld [vmem:[%s4117_s0 + $0x98] sm:$0xff]  ;;  %v1818_v57 = vld [vmem:[%s4117_s0 + $0xd0] sm:$0xff] }
 0x151   :  { %1617 = vmatprep.subr.mxu0 %v569_v56  ;;  %1689 = vmatpush1.msra.mxu1 %v622_v0  ;;  %v932_v9 = vadd.f32 %v931_v24, %v843_v20  ;;  %v1019_v46 = vadd.f32 %v1018_v43, %v930_v5  ;;  %v1814_v49 = vld [vmem:[%s4117_s0 + $0x60] sm:$0xff]  ;;  %v1817_v56 = vld [vmem:[%s4117_s0 + $0x90] sm:$0xff] }
 0x152   :  { %1618 = vmatpush2.msra.mxu0 %v568_v27  ;;  %1633 = vmatprep.mubr.f32.mxu0 %v1809_v50 }
 0x153   :  { %1619 = vmatprep.subr.mxu0 %v563_v21  ;;  %1722 = vmatprep.mubr.f32.mxu1 %v1820_v37  ;;  %1754 = vst [vmem:[%s4119_s3 + $0x30] sm:$0xff] %v1019_v46  ;;  %v1021_v30 = vadd.f32 %v1020_v7, %v932_v9 }
 0x154   :  { %1620 = vmatpush2.msra.mxu0 %v562_v39  ;;  %1784 = vmatmul.mubr.msk.f32.vlgmr.msra.gmra.mxu1 %vm666_vm0, %v3381_v28  ;;  %v544_v28 = vld [vmem:[%s4116_s1 + $0xfb0] sm:$0xff] }
 0x155   :  { %1621 = vmatprep.subr.mxu0 %v557_v25  ;;  %v1024_v18 = vpop.f32.mrf.mxu1  ;;  %1728 = vmatprep.mubr.f32.mxu1 %v1820_v37  ;;  %v935_v19 = vpop.f32.mrf.mxu0  ;;  %1755 = vst [vmem:[%s4119_s3 + $0x38] sm:$0xff] %v1021_v30 }
 0x156   :  { %1622 = vmatpush2.msra.mxu0 %v556_v1  ;;  %v936_v26 = vadd.f32 %v935_v19, %v847_v17 }
 0x157   :  { %1623 = vmatprep.subr.mxu0 %v551_v59  ;;  %v1026_v31 = vpop.f32.mrf.mxu1  ;;  %v937_v32 = vpop.f32.mrf.mxu0 }
 0x158   :  { %1624 = vmatpush2.msra.mxu0 %v550_v23  ;;  %1785 = vmatmul.mubr.msk.f32.gmra.mxu1 %vm666_vm0, %v1810_v11  ;;  %v938_v35 = vadd.f32 %v937_v32, %v849_v53  ;;  %v1025_v44 = vadd.f32 %v1024_v18, %v936_v26 }
 0x159   :  { %1625 = vmatprep.subr.mxu0 %v545_v14  ;;  %1734 = vmatprep.mubr.f32.mxu1 %v1820_v37 }
 0x15a   :  { %1626 = vmatpush2.msra.mxu0 %v544_v28  ;;  %1760 = vst [vmem:[%s4119_s3 + $0x60] sm:$0xff] %v1025_v44  ;;  %v1027_v40 = vadd.f32 %v1026_v31, %v938_v35 }
 0x15b   :  { %1627 = vmatprep.subr.mxu0 %v539_v29  ;;  %v1030_v42 = vpop.f32.mrf.mxu1  ;;  %v941_v12 = vpop.f32.mrf.mxu0 }
 0x15c   :  { %1628 = vmatpush2.msra.mxu0 %v538_v60  ;;  %1786 = vmatmul.mubr.msk.f32.gmra.mxu1 %vm666_vm0, %v1811_v36  ;;  %v942_v51 = vadd.f32 %v941_v12, %v853_v22  ;;  %1761 = vst [vmem:[%s4119_s3 + $0x68] sm:$0xff] %v1027_v40 }
 0x15d   :  { %1629 = vmatprep.subr.mxu0 %v533_v38  ;;  %1740 = vmatprep.mubr.f32.mxu1 %v1820_v37  ;;  %v943_v16 = vpop.f32.mrf.mxu0  ;;  %v1032_v45 = vpop.f32.mrf.mxu1 }
 0x15e   :  { %1630 = vmatpush2.msra.mxu0 %v532_v34  ;;  %v944_v15 = vadd.f32 %v943_v16, %v855_v63  ;;  %v1031_v47 = vadd.f32 %v1030_v42, %v942_v51 }
 0x15f   :  { %1631 = vmatprep.subr.mxu0 %v527_v33 }
 0x160   :  { %1632 = vmatpush2.msra.mxu0 %v526_v6  ;;  %1787 = vmatmul.mubr.msk.f32.gmra.mxu1 %vm666_vm0, %v1813_v52  ;;  %1766 = vst [vmem:[%s4119_s3 + $0x90] sm:$0xff] %v1031_v47  ;;  %v1033_v37 = vadd.f32 %v1032_v45, %v944_v15  ;;  %v1101_v43 = vpop.f32.mrf.mxu1 }
 0x161   :  { %1634 = vmatmul.mubr.f32.vlgmr.msra.gmra.mxu0 %v1812_v48  ;;  %v1102_v17 = vadd.f32 %v1101_v43, %v3818_v8 }
 0x162   :  { %1639 = vmatprep.mubr.f32.mxu0 %v1814_v49  ;;  %1767 = vst [vmem:[%s4119_s3 + $0x98] sm:$0xff] %v1033_v37  ;;  %v1103_v27 = vpop.f32.mrf.mxu1 }
 0x163   :  { %v1104_v14 = vadd.f32 %v1103_v27, %v3818_v8 }
 0x165   :  { %1640 = vmatmul.mubr.f32.gmra.mxu0 %v1815_v55 }
 0x166   :  { %1645 = vmatprep.mubr.f32.mxu0 %v1816_v54 }
 0x169   :  { %1646 = vmatmul.mubr.f32.gmra.mxu0 %v1817_v56 }
 0x16a   :  { %1651 = vmatprep.mubr.f32.mxu0 %v1818_v57 }
 0x16d   :  { %1652 = vmatmul.mubr.f32.gmra.mxu0 %v1819_v58 }
 0x193   :  { %v1190_v24 = vpop.f32.mrf.mxu0 }
 0x194   :  { %v1191_v19 = vadd.f32 %v1190_v24, %v1102_v17 }
 0x195   :  { %v1192_v9 = vpop.f32.mrf.mxu0 }
 0x196   :  { %v1193_v28 = vadd.f32 %v1192_v9, %v1104_v14 }
 0x197   :  { %v1107_v0 = vpop.f32.mrf.mxu1 }
 0x198   :  { %v1108_v23 = vadd.f32 %v1107_v0, %v3860_v2 }
 0x199   :  { %v1109_v62 = vpop.f32.mrf.mxu1 }
 0x19a   :  { %v1110_v4 = vadd.f32 %v1109_v62, %v3860_v2 }
 0x19c   :  { %v1113_v20 = vpop.f32.mrf.mxu1 }
 0x19d   :  { %v1114_v32 = vadd.f32 %v1113_v20, %v3909_v61 }
 0x19e   :  { %v1115_v21 = vpop.f32.mrf.mxu1 }
 0x19f   :  { %v1116_v38 = vadd.f32 %v1115_v21, %v3909_v61 }
 0x1a1   :  { %v1119_v5 = vpop.f32.mrf.mxu1 }
 0x1a2   :  { %v1120_v12 = vadd.f32 %v1119_v5, %v3951_v13 }
 0x1a3   :  { %v1121_v3 = vpop.f32.mrf.mxu1 }
 0x1a4   :  { %v1122_v16 = vadd.f32 %v1121_v3, %v3951_v13 }
 0x1a6   :  { %v1279_v39 = vpop.f32.mrf.mxu1 }
 0x1a7   :  { %v1280_v26 = vadd.f32 %v1279_v39, %v1191_v19 }
 0x1a8   :  { %v1281_v7 = vpop.f32.mrf.mxu1 }
 0x1a9   :  { %v1282_v41 = vadd.f32 %v1281_v7, %v1193_v28 }
 0x1aa   :  { %v1196_v10 = vpop.f32.mrf.mxu0 }
 0x1ab   :  { %v1285_v25 = vpop.f32.mrf.mxu1  ;;  %v1197_v31 = vadd.f32 %v1196_v10, %v1108_v23 }
 0x1ac   :  { %v1198_v59 = vpop.f32.mrf.mxu0 }
 0x1ad   :  { %v1287_v46 = vpop.f32.mrf.mxu1  ;;  %v1199_v35 = vadd.f32 %v1198_v59, %v1110_v4  ;;  %v1286_v34 = vadd.f32 %v1285_v25, %v1197_v31 }
 0x1af   :  { %v1291_v1 = vpop.f32.mrf.mxu1  ;;  %v1288_v6 = vadd.f32 %v1287_v46, %v1199_v35 }
 0x1b1   :  { %v1293_v50 = vpop.f32.mrf.mxu1 }
 0x1b2   :  { %v1202_v53 = vpop.f32.mrf.mxu0 }
 0x1b3   :  { %v1203_v40 = vadd.f32 %v1202_v53, %v1114_v32 }
 0x1b4   :  { %v1297_v30 = vpop.f32.mrf.mxu1  ;;  %v1204_v60 = vpop.f32.mrf.mxu0 }
 0x1b5   :  { %v1205_v36 = vadd.f32 %v1204_v60, %v1116_v38  ;;  %v1292_v47 = vadd.f32 %v1291_v1, %v1203_v40 }
 0x1b6   :  { %v1299_v18 = vpop.f32.mrf.mxu1 }
 0x1b7   :  { %v1294_v49 = vadd.f32 %v1293_v50, %v1205_v36 }
 0x1b8   :  { %v1208_v42 = vpop.f32.mrf.mxu0 }
 0x1b9   :  { %v1209_v48 = vadd.f32 %v1208_v42, %v1120_v12 }
 0x1ba   :  { %v1368_v29 = vpop.f32.mrf.mxu1  ;;  %v1210_v15 = vpop.f32.mrf.mxu0 }
 0x1bb   :  { %v1369_v11 = vadd.f32 %v1368_v29, %v1280_v26  ;;  %v1211_v55 = vadd.f32 %v1210_v15, %v1122_v16  ;;  %v1298_v57 = vadd.f32 %v1297_v30, %v1209_v48 }
 0x1bc   :  { %v1370_v44 = vpop.f32.mrf.mxu1 }
 0x1bd   :  { %1749 = vst [vmem:[%s4119_s3 + $0x10] sm:$0xff] %v1369_v11  ;;  %v1371_v22 = vadd.f32 %v1370_v44, %v1282_v41  ;;  %v1300_v27 = vadd.f32 %v1299_v18, %v1211_v55 }
 0x1bf   :  { %1750 = vst [vmem:[%s4119_s3 + $0x18] sm:$0xff] %v1371_v22  ;;  %v1374_v33 = vpop.f32.mrf.mxu1 }
 0x1c0   :  { %v1375_v63 = vadd.f32 %v1374_v33, %v1286_v34 }
 0x1c1   :  { %v1376_v51 = vpop.f32.mrf.mxu1 }
 0x1c2   :  { %1756 = vst [vmem:[%s4119_s3 + $0x40] sm:$0xff] %v1375_v63  ;;  %v1377_v45 = vadd.f32 %v1376_v51, %v1288_v6 }
 0x1c4   :  { %1757 = vst [vmem:[%s4119_s3 + $0x48] sm:$0xff] %v1377_v45  ;;  %v1380_v52 = vpop.f32.mrf.mxu1 }
 0x1c5   :  { %v1381_v37 = vadd.f32 %v1380_v52, %v1292_v47 }
 0x1c6   :  { %v1382_v54 = vpop.f32.mrf.mxu1 }
 0x1c7   :  { %1762 = vst [vmem:[%s4119_s3 + $0x70] sm:$0xff] %v1381_v37  ;;  %v1383_v56 = vadd.f32 %v1382_v54, %v1294_v49 }
 0x1c9   :  { %1763 = vst [vmem:[%s4119_s3 + $0x78] sm:$0xff] %v1383_v56  ;;  %v1386_v58 = vpop.f32.mrf.mxu1 }
 0x1ca   :  { %v1387_v43 = vadd.f32 %v1386_v58, %v1298_v57 }
 0x1cb   :  { %v1388_v0 = vpop.f32.mrf.mxu1 }
 0x1cc   :  { %1768 = vst [vmem:[%s4119_s3 + $0xa0] sm:$0xff] %v1387_v43  ;;  %v1389_v62 = vadd.f32 %v1388_v0, %v1300_v27 }
 0x1ce   :  { %1769 = vst [vmem:[%s4119_s3 + $0xa8] sm:$0xff] %v1389_v62 }
 0x1df   :  { %v1457_v3 = vpop.f32.mrf.mxu0 }
 0x1e0   :  { %v1458_v14 = vadd.f32 %v1457_v3, %v3818_v8 }
 0x1e1   :  { %v1459_v24 = vpop.f32.mrf.mxu0 }
 0x1e2   :  { %v1460_v53 = vadd.f32 %v1459_v24, %v3818_v8 }
 0x1fe   :  { %v1546_v20 = vpop.f32.mrf.mxu1 }
 0x1ff   :  { %v1547_v4 = vadd.f32 %v1546_v20, %v1458_v14 }
 0x200   :  { %v1548_v21 = vpop.f32.mrf.mxu1 }
 0x201   :  { %v1463_v25 = vpop.f32.mrf.mxu0  ;;  %v1549_v29 = vadd.f32 %v1548_v21, %v1460_v53 }
 0x202   :  { %v1464_v28 = vadd.f32 %v1463_v25, %v3860_v2 }
 0x203   :  { %v1552_v5 = vpop.f32.mrf.mxu1  ;;  %v1465_v46 = vpop.f32.mrf.mxu0 }
 0x204   :  { %v1466_v32 = vadd.f32 %v1465_v46, %v3860_v2  ;;  %v1553_v11 = vadd.f32 %v1552_v5, %v1464_v28 }
 0x205   :  { %v1554_v39 = vpop.f32.mrf.mxu1 }
 0x206   :  { %v1555_v40 = vadd.f32 %v1554_v39, %v1466_v32 }
 0x207   :  { %v1469_v50 = vpop.f32.mrf.mxu0 }
 0x208   :  { %v1470_v35 = vadd.f32 %v1469_v50, %v3909_v61 }
 0x209   :  { %v1558_v7 = vpop.f32.mrf.mxu1  ;;  %v1471_v30 = vpop.f32.mrf.mxu0 }
 0x20a   :  { %v1472_v8 = vadd.f32 %v1471_v30, %v3909_v61  ;;  %v1559_v12 = vadd.f32 %v1558_v7, %v1470_v35 }
 0x20b   :  { %v1560_v9 = vpop.f32.mrf.mxu1 }
 0x20c   :  { %v1561_v61 = vadd.f32 %v1560_v9, %v1472_v8 }
 0x20d   :  { %v1475_v23 = vpop.f32.mrf.mxu0 }
 0x20e   :  { %v1476_v63 = vadd.f32 %v1475_v23, %v3951_v13 }
 0x20f   :  { %v1564_v10 = vpop.f32.mrf.mxu1  ;;  %v1477_v19 = vpop.f32.mrf.mxu0 }
 0x210   :  { %v1478_v45 = vadd.f32 %v1477_v19, %v3951_v13  ;;  %v1565_v52 = vadd.f32 %v1564_v10, %v1476_v63 }
 0x211   :  { %v1566_v1 = vpop.f32.mrf.mxu1 }
 0x212   :  { %v1567_v56 = vadd.f32 %v1566_v1, %v1478_v45 }
 0x214   :  { %v1724_v59 = vpop.f32.mrf.mxu1 }
 0x216   :  { %v1726_v17 = vpop.f32.mrf.mxu1 }
 0x218   :  { %v1730_v18 = vpop.f32.mrf.mxu1 }
 0x21a   :  { %v1732_v31 = vpop.f32.mrf.mxu1 }
 0x21c   :  { %v1736_v34 = vpop.f32.mrf.mxu1 }
 0x21e   :  { %v1738_v16 = vpop.f32.mrf.mxu1 }
 0x220   :  { %v1742_v54 = vpop.f32.mrf.mxu1 }
 0x221   :  { %v1635_v26 = vpop.f32.mrf.mxu0 }
 0x222   :  { %v1636_v41 = vadd.f32 %v1635_v26, %v1547_v4  ;;  %v1744_v0 = vpop.f32.mrf.mxu1 }
 0x223   :  { %v1637_v60 = vpop.f32.mrf.mxu0 }
 0x224   :  { %v1725_v44 = vadd.f32 %v1724_v59, %v1636_v41  ;;  %v1638_v38 = vadd.f32 %v1637_v60, %v1549_v29 }
 0x225   :  { %v1641_v22 = vpop.f32.mrf.mxu0 }
 0x226   :  { %1751 = vst [vmem:[%s4119_s3 + $0x20] sm:$0xff] %v1725_v44  ;;  %v1727_v42 = vadd.f32 %v1726_v17, %v1638_v38  ;;  %v1642_v33 = vadd.f32 %v1641_v22, %v1553_v11 }
 0x227   :  { %v1643_v2 = vpop.f32.mrf.mxu0 }
 0x228   :  { %1753 = vst.msk [vmem:[%s4119_s3 + $0x28] sm:$0xff] %vm1752_vm1, %v1727_v42  ;;  %v1731_v6 = vadd.f32 %v1730_v18, %v1642_v33  ;;  %v1644_v36 = vadd.f32 %v1643_v2, %v1555_v40 }
 0x229   :  { %v1647_v51 = vpop.f32.mrf.mxu0 }
 0x22a   :  { %1758 = vst [vmem:[%s4119_s3 + $0x50] sm:$0xff] %v1731_v6  ;;  %v1733_v15 = vadd.f32 %v1732_v31, %v1644_v36  ;;  %v1648_v47 = vadd.f32 %v1647_v51, %v1559_v12 }
 0x22b   :  { %v1649_v48 = vpop.f32.mrf.mxu0 }
 0x22c   :  { %1759 = vst.msk [vmem:[%s4119_s3 + $0x58] sm:$0xff] %vm1752_vm1, %v1733_v15  ;;  %v1737_v37 = vadd.f32 %v1736_v34, %v1648_v47  ;;  %v1650_v49 = vadd.f32 %v1649_v48, %v1561_v61 }
 0x22d   :  { %v1653_v55 = vpop.f32.mrf.mxu0 }
 0x22e   :  { %1764 = vst [vmem:[%s4119_s3 + $0x80] sm:$0xff] %v1737_v37  ;;  %v1739_v13 = vadd.f32 %v1738_v16, %v1650_v49  ;;  %v1654_v57 = vadd.f32 %v1653_v55, %v1565_v52 }
 0x22f   :  { %v1655_v58 = vpop.f32.mrf.mxu0 }
 0x230   :  { %1765 = vst.msk [vmem:[%s4119_s3 + $0x88] sm:$0xff] %vm1752_vm1, %v1739_v13  ;;  %v1743_v43 = vadd.f32 %v1742_v54, %v1654_v57  ;;  %v1656_v27 = vadd.f32 %v1655_v58, %v1567_v56 }
 0x232   :  { %1770 = vst [vmem:[%s4119_s3 + $0xb0] sm:$0xff] %v1743_v43  ;;  %v1745_v62 = vadd.f32 %v1744_v0, %v1656_v27 }
 0x234   :  { %1771 = vst.msk [vmem:[%s4119_s3 + $0xb8] sm:$0xff] %vm1752_vm1, %v1745_v62 }

// kernel: model_forward.5
= control target key start
LH: loop header
LB: loop body
LE: loop exit
PB: predicated region body
PF: predicated region fallthrough
CT: control target
= control target key end

     0   :  { %vm266_vm0 = vcmask 261120   ;;  %vm938_vm1 = vcmask 728064   ;;  %s1888_s1 = inlined_call_operand.vmem [shape: f32[288,729], index: 1, kind: input, shape index: {}]   ;;  %s1889_s0 = inlined_call_operand.vmem [shape: f32[32,288], index: 0, kind: input, shape index: {}]   ;;  %s1890_s2 = inlined_call_operand.vmem [shape: f32[32,1], index: 2, kind: input, shape index: {}]   ;;  %s1891_s3 = inlined_call_operand.vmem [shape: f32[32,729], index: 3, kind: output, shape index: {}]  }
   0x1   :  { %v117_v0 = vld [vmem:[%s1888_s1 + $0x2d8] sm:$0xff]  ;;  %v119_v1 = vld [vmem:[%s1888_s1 + $0x2e8] sm:$0xff]  ;;  %v116_v2 = vld [vmem:[%s1888_s1 + $0x2d0] sm:$0xff] }
   0x2   :  { %279 = vmatprep.subr.mxu0 %v117_v0  ;;  %457 = vmatprep.subr.mxu1 %v119_v1  ;;  %v118_v3 = vld [vmem:[%s1888_s1 + $0x2e0] sm:$0xff]  ;;  %v111_v4 = vld [vmem:[%s1888_s1 + $0x2a8] sm:$0xff]  ;;  %v113_v5 = vld [vmem:[%s1888_s1 + $0x2b8] sm:$0xff] }
   0x3   :  { %280 = vmatpush1.msra.mxu0 %v116_v2  ;;  %458 = vmatpush1.msra.mxu1 %v118_v3  ;;  %v110_v6 = vld [vmem:[%s1888_s1 + $0x2a0] sm:$0xff]  ;;  %v112_v7 = vld [vmem:[%s1888_s1 + $0x2b0] sm:$0xff]  ;;  %v105_v8 = vld [vmem:[%s1888_s1 + $0x278] sm:$0xff] }
   0x4   :  { %281 = vmatprep.subr.mxu0 %v111_v4  ;;  %459 = vmatprep.subr.mxu1 %v113_v5  ;;  %v107_v9 = vld [vmem:[%s1888_s1 + $0x288] sm:$0xff]  ;;  %v104_v10 = vld [vmem:[%s1888_s1 + $0x270] sm:$0xff]  ;;  %v106_v11 = vld [vmem:[%s1888_s1 + $0x280] sm:$0xff] }
   0x5   :  { %282 = vmatpush1.msra.mxu0 %v110_v6  ;;  %460 = vmatpush1.msra.mxu1 %v112_v7  ;;  %v99_v12 = vld [vmem:[%s1888_s1 + $0x248] sm:$0xff]  ;;  %v101_v13 = vld [vmem:[%s1888_s1 + $0x258] sm:$0xff]  ;;  %v98_v14 = vld [vmem:[%s1888_s1 + $0x240] sm:$0xff] }
   0x6   :  { %283 = vmatprep.subr.mxu0 %v105_v8  ;;  %461 = vmatprep.subr.mxu1 %v107_v9  ;;  %v100_v15 = vld [vmem:[%s1888_s1 + $0x250] sm:$0xff]  ;;  %v93_v16 = vld [vmem:[%s1888_s1 + $0x218] sm:$0xff]  ;;  %v95_v17 = vld [vmem:[%s1888_s1 + $0x228] sm:$0xff] }
   0x7   :  { %284 = vmatpush1.msra.mxu0 %v104_v10  ;;  %462 = vmatpush1.msra.mxu1 %v106_v11  ;;  %v92_v18 = vld [vmem:[%s1888_s1 + $0x210] sm:$0xff]  ;;  %v94_v19 = vld [vmem:[%s1888_s1 + $0x220] sm:$0xff]  ;;  %v87_v20 = vld [vmem:[%s1888_s1 + $0x1e8] sm:$0xff] }
   0x8   :  { %285 = vmatprep.subr.mxu0 %v99_v12  ;;  %463 = vmatprep.subr.mxu1 %v101_v13  ;;  %v89_v21 = vld [vmem:[%s1888_s1 + $0x1f8] sm:$0xff]  ;;  %v86_v22 = vld [vmem:[%s1888_s1 + $0x1e0] sm:$0xff]  ;;  %v88_v23 = vld [vmem:[%s1888_s1 + $0x1f0] sm:$0xff] }
   0x9   :  { %286 = vmatpush1.msra.mxu0 %v98_v14  ;;  %464 = vmatpush1.msra.mxu1 %v100_v15  ;;  %v81_v24 = vld [vmem:[%s1888_s1 + $0x1b8] sm:$0xff]  ;;  %v83_v25 = vld [vmem:[%s1888_s1 + $0x1c8] sm:$0xff]  ;;  %v80_v26 = vld [vmem:[%s1888_s1 + $0x1b0] sm:$0xff] }
   0xa   :  { %287 = vmatprep.subr.mxu0 %v93_v16  ;;  %465 = vmatprep.subr.mxu1 %v95_v17  ;;  %v82_v27 = vld [vmem:[%s1888_s1 + $0x1c0] sm:$0xff]  ;;  %v75_v28 = vld [vmem:[%s1888_s1 + $0x188] sm:$0xff]  ;;  %v77_v29 = vld [vmem:[%s1888_s1 + $0x198] sm:$0xff] }
   0xb   :  { %288 = vmatpush1.msra.mxu0 %v92_v18  ;;  %466 = vmatpush1.msra.mxu1 %v94_v19  ;;  %v74_v30 = vld [vmem:[%s1888_s1 + $0x180] sm:$0xff]  ;;  %v76_v31 = vld [vmem:[%s1888_s1 + $0x190] sm:$0xff]  ;;  %v69_v32 = vld [vmem:[%s1888_s1 + $0x158] sm:$0xff] }
   0xc   :  { %289 = vmatprep.subr.mxu0 %v87_v20  ;;  %467 = vmatprep.subr.mxu1 %v89_v21  ;;  %v71_v33 = vld [vmem:[%s1888_s1 + $0x168] sm:$0xff]  ;;  %v68_v34 = vld [vmem:[%s1888_s1 + $0x150] sm:$0xff]  ;;  %v70_v35 = vld [vmem:[%s1888_s1 + $0x160] sm:$0xff] }
   0xd   :  { %290 = vmatpush1.msra.mxu0 %v86_v22  ;;  %468 = vmatpush1.msra.mxu1 %v88_v23  ;;  %v63_v36 = vld [vmem:[%s1888_s1 + $0x128] sm:$0xff]  ;;  %v65_v37 = vld [vmem:[%s1888_s1 + $0x138] sm:$0xff]  ;;  %v62_v38 = vld [vmem:[%s1888_s1 + $0x120] sm:$0xff] }
   0xe   :  { %291 = vmatprep.subr.mxu0 %v81_v24  ;;  %469 = vmatprep.subr.mxu1 %v83_v25  ;;  %v64_v39 = vld [vmem:[%s1888_s1 + $0x130] sm:$0xff]  ;;  %v57_v40 = vld [vmem:[%s1888_s1 + $0xf8] sm:$0xff]  ;;  %v59_v41 = vld [vmem:[%s1888_s1 + $0x108] sm:$0xff] }
   0xf   :  { %292 = vmatpush1.msra.mxu0 %v80_v26  ;;  %470 = vmatpush1.msra.mxu1 %v82_v27  ;;  %v56_v42 = vld [vmem:[%s1888_s1 + $0xf0] sm:$0xff]  ;;  %v58_v43 = vld [vmem:[%s1888_s1 + $0x100] sm:$0xff]  ;;  %v51_v44 = vld [vmem:[%s1888_s1 + $0xc8] sm:$0xff] }
  0x10   :  { %293 = vmatprep.subr.mxu0 %v75_v28  ;;  %471 = vmatprep.subr.mxu1 %v77_v29  ;;  %v53_v45 = vld [vmem:[%s1888_s1 + $0xd8] sm:$0xff]  ;;  %v50_v46 = vld [vmem:[%s1888_s1 + $0xc0] sm:$0xff]  ;;  %v52_v47 = vld [vmem:[%s1888_s1 + $0xd0] sm:$0xff] }
  0x11   :  { %294 = vmatpush1.msra.mxu0 %v74_v30  ;;  %472 = vmatpush1.msra.mxu1 %v76_v31  ;;  %v45_v48 = vld [vmem:[%s1888_s1 + $0x98] sm:$0xff]  ;;  %v47_v49 = vld [vmem:[%s1888_s1 + $0xa8] sm:$0xff]  ;;  %v44_v50 = vld [vmem:[%s1888_s1 + $0x90] sm:$0xff] }
  0x12   :  { %295 = vmatprep.subr.mxu0 %v69_v32  ;;  %473 = vmatprep.subr.mxu1 %v71_v33  ;;  %v46_v51 = vld [vmem:[%s1888_s1 + $0xa0] sm:$0xff]  ;;  %v39_v52 = vld [vmem:[%s1888_s1 + $0x68] sm:$0xff]  ;;  %v41_v53 = vld [vmem:[%s1888_s1 + $0x78] sm:$0xff] }
  0x13   :  { %296 = vmatpush1.msra.mxu0 %v68_v34  ;;  %474 = vmatpush1.msra.mxu1 %v70_v35  ;;  %v38_v54 = vld [vmem:[%s1888_s1 + $0x60] sm:$0xff]  ;;  %v40_v55 = vld [vmem:[%s1888_s1 + $0x70] sm:$0xff]  ;;  %v33_v56 = vld [vmem:[%s1888_s1 + $0x38] sm:$0xff] }
  0x14   :  { %297 = vmatprep.subr.mxu0 %v63_v36  ;;  %475 = vmatprep.subr.mxu1 %v65_v37  ;;  %v35_v57 = vld [vmem:[%s1888_s1 + $0x48] sm:$0xff]  ;;  %v32_v58 = vld [vmem:[%s1888_s1 + $0x30] sm:$0xff]  ;;  %v34_v59 = vld [vmem:[%s1888_s1 + $0x40] sm:$0xff] }
  0x15   :  { %298 = vmatpush1.msra.mxu0 %v62_v38  ;;  %476 = vmatpush1.msra.mxu1 %v64_v39  ;;  %v27_v60 = vld [vmem:[%s1888_s1 + $0x8] sm:$0xff]  ;;  %v29_v61 = vld [vmem:[%s1888_s1 + $0x18] sm:$0xff]  ;;  %v26_v62 = vld [vmem:[%s1888_s1] sm:$0xff] }
  0x16   :  { %299 = vmatprep.subr.mxu0 %v57_v40  ;;  %477 = vmatprep.subr.mxu1 %v59_v41  ;;  %v28_v63 = vld [vmem:[%s1888_s1 + $0x10] sm:$0xff]  ;;  %v213_v0 = vld [vmem:[%s1888_s1 + $0x5d8] sm:$0xff]  ;;  %v215_v1 = vld [vmem:[%s1888_s1 + $0x5e8] sm:$0xff] }
  0x17   :  { %300 = vmatpush1.msra.mxu0 %v56_v42  ;;  %478 = vmatpush1.msra.mxu1 %v58_v43  ;;  %v212_v2 = vld [vmem:[%s1888_s1 + $0x5d0] sm:$0xff]  ;;  %v214_v3 = vld [vmem:[%s1888_s1 + $0x5e0] sm:$0xff]  ;;  %v207_v4 = vld [vmem:[%s1888_s1 + $0x5a8] sm:$0xff] }
  0x18   :  { %301 = vmatprep.subr.mxu0 %v51_v44  ;;  %479 = vmatprep.subr.mxu1 %v53_v45  ;;  %v209_v5 = vld [vmem:[%s1888_s1 + $0x5b8] sm:$0xff]  ;;  %v206_v6 = vld [vmem:[%s1888_s1 + $0x5a0] sm:$0xff]  ;;  %v208_v7 = vld [vmem:[%s1888_s1 + $0x5b0] sm:$0xff] }
  0x19   :  { %302 = vmatpush1.msra.mxu0 %v50_v46  ;;  %480 = vmatpush1.msra.mxu1 %v52_v47  ;;  %v201_v8 = vld [vmem:[%s1888_s1 + $0x578] sm:$0xff]  ;;  %v203_v9 = vld [vmem:[%s1888_s1 + $0x588] sm:$0xff]  ;;  %v200_v10 = vld [vmem:[%s1888_s1 + $0x570] sm:$0xff] }
  0x1a   :  { %303 = vmatprep.subr.mxu0 %v45_v48  ;;  %481 = vmatprep.subr.mxu1 %v47_v49  ;;  %v202_v11 = vld [vmem:[%s1888_s1 + $0x580] sm:$0xff]  ;;  %v195_v12 = vld [vmem:[%s1888_s1 + $0x548] sm:$0xff]  ;;  %v197_v13 = vld [vmem:[%s1888_s1 + $0x558] sm:$0xff] }
  0x1b   :  { %304 = vmatpush1.msra.mxu0 %v44_v50  ;;  %482 = vmatpush1.msra.mxu1 %v46_v51  ;;  %v194_v14 = vld [vmem:[%s1888_s1 + $0x540] sm:$0xff]  ;;  %v196_v15 = vld [vmem:[%s1888_s1 + $0x550] sm:$0xff]  ;;  %v189_v16 = vld [vmem:[%s1888_s1 + $0x518] sm:$0xff] }
  0x1c   :  { %305 = vmatprep.subr.mxu0 %v39_v52  ;;  %483 = vmatprep.subr.mxu1 %v41_v53  ;;  %v191_v17 = vld [vmem:[%s1888_s1 + $0x528] sm:$0xff]  ;;  %v188_v18 = vld [vmem:[%s1888_s1 + $0x510] sm:$0xff]  ;;  %v190_v19 = vld [vmem:[%s1888_s1 + $0x520] sm:$0xff] }
  0x1d   :  { %306 = vmatpush1.msra.mxu0 %v38_v54  ;;  %484 = vmatpush1.msra.mxu1 %v40_v55  ;;  %v183_v20 = vld [vmem:[%s1888_s1 + $0x4e8] sm:$0xff]  ;;  %v185_v21 = vld [vmem:[%s1888_s1 + $0x4f8] sm:$0xff]  ;;  %v182_v22 = vld [vmem:[%s1888_s1 + $0x4e0] sm:$0xff] }
  0x1e   :  { %307 = vmatprep.subr.mxu0 %v33_v56  ;;  %485 = vmatprep.subr.mxu1 %v35_v57  ;;  %v184_v23 = vld [vmem:[%s1888_s1 + $0x4f0] sm:$0xff]  ;;  %v177_v24 = vld [vmem:[%s1888_s1 + $0x4b8] sm:$0xff]  ;;  %v179_v25 = vld [vmem:[%s1888_s1 + $0x4c8] sm:$0xff] }
  0x1f   :  { %308 = vmatpush1.msra.mxu0 %v32_v58  ;;  %486 = vmatpush1.msra.mxu1 %v34_v59  ;;  %v176_v26 = vld [vmem:[%s1888_s1 + $0x4b0] sm:$0xff]  ;;  %v178_v27 = vld [vmem:[%s1888_s1 + $0x4c0] sm:$0xff]  ;;  %v171_v28 = vld [vmem:[%s1888_s1 + $0x488] sm:$0xff] }
  0x20   :  { %309 = vmatprep.subr.mxu0 %v27_v60  ;;  %487 = vmatprep.subr.mxu1 %v29_v61  ;;  %v173_v29 = vld [vmem:[%s1888_s1 + $0x498] sm:$0xff]  ;;  %v170_v30 = vld [vmem:[%s1888_s1 + $0x480] sm:$0xff]  ;;  %v172_v31 = vld [vmem:[%s1888_s1 + $0x490] sm:$0xff] }
  0x21   :  { %310 = vmatpush1.msra.mxu0 %v26_v62  ;;  %488 = vmatpush1.msra.mxu1 %v28_v63  ;;  %v165_v32 = vld [vmem:[%s1888_s1 + $0x458] sm:$0xff]  ;;  %v167_v33 = vld [vmem:[%s1888_s1 + $0x468] sm:$0xff]  ;;  %v164_v34 = vld [vmem:[%s1888_s1 + $0x450] sm:$0xff] }
  0x22   :  { %311 = vmatprep.subr.mxu0 %v213_v0  ;;  %489 = vmatprep.subr.mxu1 %v215_v1  ;;  %v166_v35 = vld [vmem:[%s1888_s1 + $0x460] sm:$0xff]  ;;  %v159_v36 = vld [vmem:[%s1888_s1 + $0x428] sm:$0xff]  ;;  %v161_v37 = vld [vmem:[%s1888_s1 + $0x438] sm:$0xff] }
  0x23   :  { %312 = vmatpush2.msra.mxu0 %v212_v2  ;;  %490 = vmatpush2.msra.mxu1 %v214_v3  ;;  %v158_v38 = vld [vmem:[%s1888_s1 + $0x420] sm:$0xff]  ;;  %v160_v39 = vld [vmem:[%s1888_s1 + $0x430] sm:$0xff]  ;;  %v153_v40 = vld [vmem:[%s1888_s1 + $0x3f8] sm:$0xff] }
  0x24   :  { %313 = vmatprep.subr.mxu0 %v207_v4  ;;  %491 = vmatprep.subr.mxu1 %v209_v5  ;;  %v155_v41 = vld [vmem:[%s1888_s1 + $0x408] sm:$0xff]  ;;  %v152_v42 = vld [vmem:[%s1888_s1 + $0x3f0] sm:$0xff]  ;;  %v154_v43 = vld [vmem:[%s1888_s1 + $0x400] sm:$0xff] }
  0x25   :  { %314 = vmatpush2.msra.mxu0 %v206_v6  ;;  %492 = vmatpush2.msra.mxu1 %v208_v7  ;;  %v147_v44 = vld [vmem:[%s1888_s1 + $0x3c8] sm:$0xff]  ;;  %v149_v45 = vld [vmem:[%s1888_s1 + $0x3d8] sm:$0xff]  ;;  %v146_v46 = vld [vmem:[%s1888_s1 + $0x3c0] sm:$0xff] }
  0x26   :  { %315 = vmatprep.subr.mxu0 %v201_v8  ;;  %493 = vmatprep.subr.mxu1 %v203_v9  ;;  %v148_v47 = vld [vmem:[%s1888_s1 + $0x3d0] sm:$0xff]  ;;  %v141_v48 = vld [vmem:[%s1888_s1 + $0x398] sm:$0xff]  ;;  %v143_v49 = vld [vmem:[%s1888_s1 + $0x3a8] sm:$0xff] }
  0x27   :  { %316 = vmatpush2.msra.mxu0 %v200_v10  ;;  %494 = vmatpush2.msra.mxu1 %v202_v11  ;;  %v140_v50 = vld [vmem:[%s1888_s1 + $0x390] sm:$0xff]  ;;  %v142_v51 = vld [vmem:[%s1888_s1 + $0x3a0] sm:$0xff]  ;;  %v135_v52 = vld [vmem:[%s1888_s1 + $0x368] sm:$0xff] }
  0x28   :  { %317 = vmatprep.subr.mxu0 %v195_v12  ;;  %495 = vmatprep.subr.mxu1 %v197_v13  ;;  %v137_v53 = vld [vmem:[%s1888_s1 + $0x378] sm:$0xff]  ;;  %v134_v54 = vld [vmem:[%s1888_s1 + $0x360] sm:$0xff]  ;;  %v136_v55 = vld [vmem:[%s1888_s1 + $0x370] sm:$0xff] }
  0x29   :  { %318 = vmatpush2.msra.mxu0 %v194_v14  ;;  %496 = vmatpush2.msra.mxu1 %v196_v15  ;;  %v129_v56 = vld [vmem:[%s1888_s1 + $0x338] sm:$0xff]  ;;  %v131_v57 = vld [vmem:[%s1888_s1 + $0x348] sm:$0xff]  ;;  %v128_v58 = vld [vmem:[%s1888_s1 + $0x330] sm:$0xff] }
  0x2a   :  { %319 = vmatprep.subr.mxu0 %v189_v16  ;;  %497 = vmatprep.subr.mxu1 %v191_v17  ;;  %v130_v59 = vld [vmem:[%s1888_s1 + $0x340] sm:$0xff]  ;;  %v123_v60 = vld [vmem:[%s1888_s1 + $0x308] sm:$0xff]  ;;  %v125_v61 = vld [vmem:[%s1888_s1 + $0x318] sm:$0xff] }
  0x2b   :  { %320 = vmatpush2.msra.mxu0 %v188_v18  ;;  %498 = vmatpush2.msra.mxu1 %v190_v19  ;;  %v122_v62 = vld [vmem:[%s1888_s1 + $0x300] sm:$0xff]  ;;  %v1384_v63 = vld [vmem:[%s1889_s0 + $0x8] sm:$0xff]  ;;  %v124_v0 = vld [vmem:[%s1888_s1 + $0x310] sm:$0xff] }
  0x2c   :  { %321 = vmatprep.subr.mxu0 %v183_v20  ;;  %499 = vmatprep.subr.mxu1 %v185_v21  ;;  %v1392_v1 = vld [vmem:[%s1889_s0] sm:$0xff]  ;;  %v121_v2 = vld [vmem:[%s1888_s1 + $0x2f8] sm:$0xff]  ;;  %v120_v4 = vld [vmem:[%s1888_s1 + $0x2f0] sm:$0xff] }
  0x2d   :  { %322 = vmatpush2.msra.mxu0 %v182_v22  ;;  %500 = vmatpush2.msra.mxu1 %v184_v23  ;;  %v1401_v3 = vld [vmem:[%s1889_s0 + $0x20] sm:$0xff]  ;;  %v237_v5 = vld [vmem:[%s1888_s1 + $0x698] sm:$0xff]  ;;  %v115_v6 = vld [vmem:[%s1888_s1 + $0x2c8] sm:$0xff] }
  0x2e   :  { %323 = vmatprep.subr.mxu0 %v177_v24  ;;  %501 = vmatprep.subr.mxu1 %v179_v25  ;;  %v236_v7 = vld [vmem:[%s1888_s1 + $0x690] sm:$0xff]  ;;  %v114_v8 = vld [vmem:[%s1888_s1 + $0x2c0] sm:$0xff]  ;;  %v1425_v9 = vld [vmem:[%s1889_s0 + $0x18] sm:$0xff] }
  0x2f   :  { %324 = vmatpush2.msra.mxu0 %v176_v26  ;;  %502 = vmatpush2.msra.mxu1 %v178_v27  ;;  %v109_v10 = vld [vmem:[%s1888_s1 + $0x298] sm:$0xff]  ;;  %v108_v12 = vld [vmem:[%s1888_s1 + $0x290] sm:$0xff]  ;;  %v231_v13 = vld [vmem:[%s1888_s1 + $0x668] sm:$0xff] }
  0x30   :  { %325 = vmatprep.subr.mxu0 %v171_v28  ;;  %503 = vmatprep.subr.mxu1 %v173_v29  ;;  %v1433_v11 = vld [vmem:[%s1889_s0 + $0x38] sm:$0xff]  ;;  %v103_v14 = vld [vmem:[%s1888_s1 + $0x268] sm:$0xff]  ;;  %v230_v15 = vld [vmem:[%s1888_s1 + $0x660] sm:$0xff] }
  0x31   :  { %326 = vmatpush2.msra.mxu0 %v170_v30  ;;  %504 = vmatpush2.msra.mxu1 %v172_v31  ;;  %v102_v16 = vld [vmem:[%s1888_s1 + $0x260] sm:$0xff]  ;;  %v1455_v17 = vld [vmem:[%s1889_s0 + $0x30] sm:$0xff]  ;;  %v97_v18 = vld [vmem:[%s1888_s1 + $0x238] sm:$0xff] }
  0x32   :  { %327 = vmatprep.subr.mxu0 %v165_v32  ;;  %505 = vmatprep.subr.mxu1 %v167_v33  ;;  %v1463_v19 = vld [vmem:[%s1889_s0 + $0x50] sm:$0xff]  ;;  %v225_v21 = vld [vmem:[%s1888_s1 + $0x638] sm:$0xff]  ;;  %v91_v22 = vld [vmem:[%s1888_s1 + $0x208] sm:$0xff] }
  0x33   :  { %328 = vmatpush2.msra.mxu0 %v164_v34  ;;  %506 = vmatpush2.msra.mxu1 %v166_v35  ;;  %v96_v20 = vld [vmem:[%s1888_s1 + $0x230] sm:$0xff]  ;;  %v90_v24 = vld [vmem:[%s1888_s1 + $0x200] sm:$0xff]  ;;  %v1485_v25 = vld [vmem:[%s1889_s0 + $0x48] sm:$0xff]  ;;  %v978_v34 = vmov 0.0  }
  0x34   :  { %329 = vmatprep.subr.mxu0 %v159_v36  ;;  %507 = vmatprep.subr.mxu1 %v161_v37  ;;  %v224_v23 = vld [vmem:[%s1888_s1 + $0x630] sm:$0xff]  ;;  %v85_v26 = vld [vmem:[%s1888_s1 + $0x1d8] sm:$0xff]  ;;  %v219_v27 = vld [vmem:[%s1888_s1 + $0x608] sm:$0xff] }
  0x35   :  { %330 = vmatpush2.msra.mxu0 %v158_v38  ;;  %508 = vmatpush2.msra.mxu1 %v160_v39  ;;  %v84_v28 = vld [vmem:[%s1888_s1 + $0x1d0] sm:$0xff]  ;;  %v218_v29 = vld [vmem:[%s1888_s1 + $0x600] sm:$0xff]  ;;  %v79_v30 = vld [vmem:[%s1888_s1 + $0x1a8] sm:$0xff] }
  0x36   :  { %331 = vmatprep.subr.mxu0 %v153_v40  ;;  %509 = vmatprep.subr.mxu1 %v155_v41  ;;  %v78_v31 = vld [vmem:[%s1888_s1 + $0x1a0] sm:$0xff]  ;;  %v1509_v32 = vld [vmem:[%s1889_s0 + $0x10] sm:$0xff]  ;;  %v73_v33 = vld [vmem:[%s1888_s1 + $0x178] sm:$0xff] }
  0x37   :  { %332 = vmatpush2.msra.mxu0 %v152_v42  ;;  %510 = vmatpush2.msra.mxu1 %v154_v43  ;;  %v72_v35 = vld [vmem:[%s1888_s1 + $0x170] sm:$0xff]  ;;  %v239_v36 = vld [vmem:[%s1888_s1 + $0x6a8] sm:$0xff]  ;;  %v238_v38 = vld [vmem:[%s1888_s1 + $0x6a0] sm:$0xff] }
  0x38   :  { %333 = vmatprep.subr.mxu0 %v147_v44  ;;  %511 = vmatprep.subr.mxu1 %v149_v45  ;;  %v67_v37 = vld [vmem:[%s1888_s1 + $0x148] sm:$0xff]  ;;  %v66_v39 = vld [vmem:[%s1888_s1 + $0x140] sm:$0xff]  ;;  %v61_v41 = vld [vmem:[%s1888_s1 + $0x118] sm:$0xff] }
  0x39   :  { %334 = vmatpush2.msra.mxu0 %v146_v46  ;;  %512 = vmatpush2.msra.mxu1 %v148_v47  ;;  %v1536_v40 = vld [vmem:[%s1889_s0 + $0x28] sm:$0xff]  ;;  %v60_v42 = vld [vmem:[%s1888_s1 + $0x110] sm:$0xff]  ;;  %v233_v43 = vld [vmem:[%s1888_s1 + $0x678] sm:$0xff] }
  0x3a   :  { %335 = vmatprep.subr.mxu0 %v141_v48  ;;  %513 = vmatprep.subr.mxu1 %v143_v49  ;;  %v55_v44 = vld [vmem:[%s1888_s1 + $0xe8] sm:$0xff]  ;;  %v232_v45 = vld [vmem:[%s1888_s1 + $0x670] sm:$0xff]  ;;  %v54_v46 = vld [vmem:[%s1888_s1 + $0xe0] sm:$0xff] }
  0x3b   :  { %336 = vmatpush2.msra.mxu0 %v140_v50  ;;  %514 = vmatpush2.msra.mxu1 %v142_v51  ;;  %v1562_v47 = vld [vmem:[%s1889_s0 + $0x40] sm:$0xff]  ;;  %v49_v48 = vld [vmem:[%s1888_s1 + $0xb8] sm:$0xff]  ;;  %v48_v49 = vld [vmem:[%s1888_s1 + $0xb0] sm:$0xff] }
  0x3c   :  { %337 = vmatprep.subr.mxu0 %v135_v52  ;;  %515 = vmatprep.subr.mxu1 %v137_v53  ;;  %v227_v50 = vld [vmem:[%s1888_s1 + $0x648] sm:$0xff]  ;;  %v226_v52 = vld [vmem:[%s1888_s1 + $0x640] sm:$0xff] }
  0x3d   :  { %338 = vmatpush2.msra.mxu0 %v134_v54  ;;  %516 = vmatpush2.msra.mxu1 %v136_v55  ;;  %v43_v51 = vld [vmem:[%s1888_s1 + $0x88] sm:$0xff]  ;;  %v42_v53 = vld [vmem:[%s1888_s1 + $0x80] sm:$0xff]  ;;  %v1588_v54 = vld [vmem:[%s1889_s0 + $0x58] sm:$0xff] }
  0x3e   :  { %339 = vmatprep.subr.mxu0 %v129_v56  ;;  %517 = vmatprep.subr.mxu1 %v131_v57  ;;  %v37_v55 = vld [vmem:[%s1888_s1 + $0x58] sm:$0xff]  ;;  %v36_v57 = vld [vmem:[%s1888_s1 + $0x50] sm:$0xff] }
  0x3f   :  { %340 = vmatpush2.msra.mxu0 %v128_v58  ;;  %518 = vmatpush2.msra.mxu1 %v130_v59  ;;  %v221_v56 = vld [vmem:[%s1888_s1 + $0x618] sm:$0xff]  ;;  %v220_v58 = vld [vmem:[%s1888_s1 + $0x610] sm:$0xff]  ;;  %v31_v59 = vld [vmem:[%s1888_s1 + $0x28] sm:$0xff] }
  0x40   :  { %341 = vmatprep.subr.mxu0 %v123_v60  ;;  %519 = vmatprep.subr.mxu1 %v125_v61  ;;  %v30_v60 = vld [vmem:[%s1888_s1 + $0x20] sm:$0xff]  ;;  %v217_v61 = vld [vmem:[%s1888_s1 + $0x5f8] sm:$0xff] }
  0x41   :  { %342 = vmatpush2.msra.mxu0 %v122_v62  ;;  %343 = vmatprep.mubr.f32.mxu0 %v1384_v63  ;;  %v216_v62 = vld [vmem:[%s1888_s1 + $0x5f0] sm:$0xff] }
  0x42   :  { %520 = vmatpush2.msra.mxu1 %v124_v0  ;;  %521 = vmatprep.mubr.f32.mxu1 %v1384_v63  ;;  %v211_v0 = vld [vmem:[%s1888_s1 + $0x5c8] sm:$0xff] }
  0x43   :  { %344 = vmatmul.mubr.f32.vlgmr.msra.gmra.mxu0 %v1392_v1  ;;  %522 = vmatmul.mubr.f32.vlgmr.msra.gmra.mxu1 %v1392_v1 }
  0x44   :  { %635 = vmatprep.subr.mxu1 %v121_v2  ;;  %349 = vmatprep.mubr.f32.mxu0 %v1401_v3  ;;  %v210_v2 = vld [vmem:[%s1888_s1 + $0x5c0] sm:$0xff] }
  0x45   :  { %636 = vmatpush1.msra.mxu1 %v120_v4  ;;  %392 = vmatprep.subr.mxu0 %v237_v5  ;;  %v205_v4 = vld [vmem:[%s1888_s1 + $0x598] sm:$0xff]  ;;  %v204_v5 = vld [vmem:[%s1888_s1 + $0x590] sm:$0xff] }
  0x46   :  { %637 = vmatprep.subr.mxu1 %v115_v6  ;;  %393 = vmatpush1.msra.mxu0 %v236_v7  ;;  %v199_v6 = vld [vmem:[%s1888_s1 + $0x568] sm:$0xff]  ;;  %v198_v7 = vld [vmem:[%s1888_s1 + $0x560] sm:$0xff] }
  0x47   :  { %638 = vmatpush1.msra.mxu1 %v114_v8  ;;  %350 = vmatmul.mubr.f32.gmra.mxu0 %v1425_v9  ;;  %v241_v8 = vld [vmem:[%s1888_s1 + $0x6b8] sm:$0xff] }
  0x48   :  { %639 = vmatprep.subr.mxu1 %v109_v10  ;;  %355 = vmatprep.mubr.f32.mxu0 %v1433_v11  ;;  %v193_v10 = vld [vmem:[%s1888_s1 + $0x538] sm:$0xff] }
  0x49   :  { %640 = vmatpush1.msra.mxu1 %v108_v12  ;;  %394 = vmatprep.subr.mxu0 %v231_v13  ;;  %v192_v12 = vld [vmem:[%s1888_s1 + $0x530] sm:$0xff] }
  0x4a   :  { %641 = vmatprep.subr.mxu1 %v103_v14  ;;  %395 = vmatpush1.msra.mxu0 %v230_v15  ;;  %v240_v13 = vld [vmem:[%s1888_s1 + $0x6b0] sm:$0xff]  ;;  %v187_v14 = vld [vmem:[%s1888_s1 + $0x508] sm:$0xff]  ;;  %v186_v15 = vld [vmem:[%s1888_s1 + $0x500] sm:$0xff] }
  0x4b   :  { %642 = vmatpush1.msra.mxu1 %v102_v16  ;;  %356 = vmatmul.mubr.f32.gmra.mxu0 %v1455_v17  ;;  %v181_v16 = vld [vmem:[%s1888_s1 + $0x4d8] sm:$0xff] }
  0x4c   :  { %643 = vmatprep.subr.mxu1 %v97_v18  ;;  %361 = vmatprep.mubr.f32.mxu0 %v1463_v19  ;;  %v180_v18 = vld [vmem:[%s1888_s1 + $0x4d0] sm:$0xff] }
  0x4d   :  { %644 = vmatpush1.msra.mxu1 %v96_v20  ;;  %396 = vmatprep.subr.mxu0 %v225_v21  ;;  %v235_v20 = vld [vmem:[%s1888_s1 + $0x688] sm:$0xff] }
  0x4e   :  { %645 = vmatprep.subr.mxu1 %v91_v22  ;;  %397 = vmatpush1.msra.mxu0 %v224_v23  ;;  %v175_v21 = vld [vmem:[%s1888_s1 + $0x4a8] sm:$0xff]  ;;  %v174_v22 = vld [vmem:[%s1888_s1 + $0x4a0] sm:$0xff] }
  0x4f   :  { %646 = vmatpush1.msra.mxu1 %v90_v24  ;;  %362 = vmatmul.mubr.f32.gmra.mxu0 %v1485_v25  ;;  %v234_v23 = vld [vmem:[%s1888_s1 + $0x680] sm:$0xff]  ;;  %v169_v24 = vld [vmem:[%s1888_s1 + $0x478] sm:$0xff] }
  0x50   :  { %647 = vmatprep.subr.mxu1 %v85_v26  ;;  %398 = vmatprep.subr.mxu0 %v219_v27  ;;  %v229_v26 = vld [vmem:[%s1888_s1 + $0x658] sm:$0xff]  ;;  %v168_v27 = vld [vmem:[%s1888_s1 + $0x470] sm:$0xff] }
  0x51   :  { %648 = vmatpush1.msra.mxu1 %v84_v28  ;;  %399 = vmatpush1.msra.mxu0 %v218_v29  ;;  %v228_v28 = vld [vmem:[%s1888_s1 + $0x650] sm:$0xff]  ;;  %v163_v29 = vld [vmem:[%s1888_s1 + $0x448] sm:$0xff] }
  0x52   :  { %649 = vmatprep.subr.mxu1 %v79_v30  ;;  %432 = vmatprep.mubr.f32.mxu0 %v978_v34  ;;  %v223_v30 = vld [vmem:[%s1888_s1 + $0x628] sm:$0xff] }
  0x53   :  { %650 = vmatpush1.msra.mxu1 %v78_v31  ;;  %962 = vmatmul.mubr.msk.f32.vlgmr.msra.gmra.mxu0 %vm266_vm0, %v1509_v32  ;;  %v162_v31 = vld [vmem:[%s1888_s1 + $0x440] sm:$0xff] }
  0x54   :  { %651 = vmatprep.subr.mxu1 %v73_v33  ;;  %438 = vmatprep.mubr.f32.mxu0 %v978_v34  ;;  %v222_v33 = vld [vmem:[%s1888_s1 + $0x620] sm:$0xff] }
  0x55   :  { %652 = vmatpush1.msra.mxu1 %v72_v35  ;;  %570 = vmatprep.subr.mxu0 %v239_v36  ;;  %v157_v35 = vld [vmem:[%s1888_s1 + $0x418] sm:$0xff]  ;;  %v156_v36 = vld [vmem:[%s1888_s1 + $0x410] sm:$0xff] }
  0x56   :  { %653 = vmatprep.subr.mxu1 %v67_v37  ;;  %571 = vmatpush1.msra.mxu0 %v238_v38  ;;  %v151_v37 = vld [vmem:[%s1888_s1 + $0x3e8] sm:$0xff]  ;;  %v150_v38 = vld [vmem:[%s1888_s1 + $0x3e0] sm:$0xff] }
  0x57   :  { %654 = vmatpush1.msra.mxu1 %v66_v39  ;;  %963 = vmatmul.mubr.msk.f32.gmra.mxu0 %vm266_vm0, %v1536_v40  ;;  %v145_v39 = vld [vmem:[%s1888_s1 + $0x3b8] sm:$0xff] }
  0x58   :  { %655 = vmatprep.subr.mxu1 %v61_v41  ;;  %444 = vmatprep.mubr.f32.mxu0 %v978_v34  ;;  %v144_v41 = vld [vmem:[%s1888_s1 + $0x3b0] sm:$0xff] }
  0x59   :  { %656 = vmatpush1.msra.mxu1 %v60_v42  ;;  %572 = vmatprep.subr.mxu0 %v233_v43  ;;  %v242_v42 = vld [vmem:[%s1890_s2] sm:$0xff] }
  0x5a   :  { %657 = vmatprep.subr.mxu1 %v55_v44  ;;  %573 = vmatpush1.msra.mxu0 %v232_v45  ;;  %v138_v43 = vld [vmem:[%s1888_s1 + $0x380] sm:$0xff]  ;;  %v979_v44 = vmov 0   ;;  %v132_v45 = vld [vmem:[%s1888_s1 + $0x350] sm:$0xff] }
  0x5b   :  { %658 = vmatpush1.msra.mxu1 %v54_v46  ;;  %964 = vmatmul.mubr.msk.f32.gmra.mxu0 %vm266_vm0, %v1562_v47  ;;  %v243_v46 = vld [vmem:[%s1890_s2 + $0x8] sm:$0xff] }
  0x5c   :  { %659 = vmatprep.subr.mxu1 %v49_v48  ;;  %450 = vmatprep.mubr.f32.mxu0 %v978_v34  ;;  %v127_v48 = vld [vmem:[%s1888_s1 + $0x328] sm:$0xff] }
  0x5d   :  { %660 = vmatpush1.msra.mxu1 %v48_v49  ;;  %574 = vmatprep.subr.mxu0 %v227_v50  ;;  %v126_v49 = vld [vmem:[%s1888_s1 + $0x320] sm:$0xff]  ;;  %v245_v50 = vld [vmem:[%s1890_s2 + $0x18] sm:$0xff] }
  0x5e   :  { %661 = vmatprep.subr.mxu1 %v43_v51  ;;  %575 = vmatpush1.msra.mxu0 %v226_v52 }
  0x5f   :  { %662 = vmatpush1.msra.mxu1 %v42_v53  ;;  %965 = vmatmul.mubr.msk.f32.gmra.mxu0 %vm266_vm0, %v1588_v54 }
  0x60   :  { %663 = vmatprep.subr.mxu1 %v37_v55  ;;  %576 = vmatprep.subr.mxu0 %v221_v56 }
  0x61   :  { %664 = vmatpush1.msra.mxu1 %v36_v57  ;;  %577 = vmatpush1.msra.mxu0 %v220_v58 }
  0x62   :  { %665 = vmatprep.subr.mxu1 %v31_v59  ;;  %610 = vmatprep.mubr.f32.mxu0 %v978_v34 }
  0x63   :  { %666 = vmatpush1.msra.mxu1 %v30_v60  ;;  %966 = vmatmul.mubr.msk.f32.vlgmr.msra.gmra.mxu0 %vm266_vm0, %v1509_v32 }
  0x64   :  { %667 = vmatprep.subr.mxu1 %v217_v61  ;;  %527 = vmatprep.mubr.f32.mxu1 %v1401_v3 }
  0x65   :  { %668 = vmatpush2.msra.mxu1 %v216_v62  ;;  %616 = vmatprep.mubr.f32.mxu0 %v978_v34 }
  0x66   :  { %669 = vmatprep.subr.mxu1 %v211_v0  ;;  %528 = vmatmul.mubr.f32.gmra.mxu1 %v1425_v9 }
  0x67   :  { %670 = vmatpush2.msra.mxu1 %v210_v2  ;;  %967 = vmatmul.mubr.msk.f32.gmra.mxu0 %vm266_vm0, %v1536_v40 }
  0x68   :  { %671 = vmatprep.subr.mxu1 %v205_v4  ;;  %533 = vmatprep.mubr.f32.mxu1 %v1433_v11 }
  0x69   :  { %672 = vmatpush2.msra.mxu1 %v204_v5  ;;  %622 = vmatprep.mubr.f32.mxu0 %v978_v34 }
  0x6a   :  { %673 = vmatprep.subr.mxu1 %v199_v6  ;;  %534 = vmatmul.mubr.f32.gmra.mxu1 %v1455_v17 }
  0x6b   :  { %674 = vmatpush2.msra.mxu1 %v198_v7  ;;  %748 = vmatprep.subr.mxu0 %v241_v8 }
  0x6c   :  { %675 = vmatprep.subr.mxu1 %v193_v10  ;;  %968 = vmatmul.mubr.msk.f32.gmra.mxu0 %vm266_vm0, %v1562_v47 }
  0x6d   :  { %676 = vmatpush2.msra.mxu1 %v192_v12  ;;  %749 = vmatpush1.msra.mxu0 %v240_v13 }
  0x6e   :  { %677 = vmatprep.subr.mxu1 %v187_v14  ;;  %539 = vmatprep.mubr.f32.mxu1 %v1463_v19 }
  0x6f   :  { %678 = vmatpush2.msra.mxu1 %v186_v15  ;;  %628 = vmatprep.mubr.f32.mxu0 %v978_v34 }
  0x70   :  { %679 = vmatprep.subr.mxu1 %v181_v16  ;;  %540 = vmatmul.mubr.f32.gmra.mxu1 %v1485_v25 }
  0x71   :  { %680 = vmatpush2.msra.mxu1 %v180_v18  ;;  %750 = vmatprep.subr.mxu0 %v235_v20 }
  0x72   :  { %681 = vmatprep.subr.mxu1 %v175_v21  ;;  %969 = vmatmul.mubr.msk.f32.gmra.mxu0 %vm266_vm0, %v1588_v54 }
  0x73   :  { %682 = vmatpush2.msra.mxu1 %v174_v22  ;;  %751 = vmatpush1.msra.mxu0 %v234_v23 }
  0x74   :  { %683 = vmatprep.subr.mxu1 %v169_v24  ;;  %752 = vmatprep.subr.mxu0 %v229_v26 }
  0x75   :  { %684 = vmatpush2.msra.mxu1 %v168_v27  ;;  %753 = vmatpush1.msra.mxu0 %v228_v28 }
  0x76   :  { %685 = vmatprep.subr.mxu1 %v163_v29  ;;  %754 = vmatprep.subr.mxu0 %v223_v30 }
  0x77   :  { %686 = vmatpush2.msra.mxu1 %v162_v31  ;;  %755 = vmatpush1.msra.mxu0 %v222_v33 }
  0x78   :  { %687 = vmatprep.subr.mxu1 %v157_v35  ;;  %699 = vmatprep.mubr.f32.mxu1 %v1384_v63  ;;  %v139_v63 = vld [vmem:[%s1888_s1 + $0x388] sm:$0xff] }
  0x79   :  { %688 = vmatpush2.msra.mxu1 %v156_v36  ;;  %788 = vmatprep.mubr.f32.mxu0 %v978_v34 }
  0x7a   :  { %689 = vmatprep.subr.mxu1 %v151_v37  ;;  %970 = vmatmul.mubr.msk.f32.vlgmr.msra.gmra.mxu0 %vm266_vm0, %v1509_v32  ;;  %v133_v32 = vld [vmem:[%s1888_s1 + $0x358] sm:$0xff] }
  0x7b   :  { %690 = vmatpush2.msra.mxu1 %v150_v38  ;;  %794 = vmatprep.mubr.f32.mxu0 %v978_v34 }
  0x7c   :  { %691 = vmatprep.subr.mxu1 %v145_v39  ;;  %976 = vset.pattern.permute.xlu0 %v979_v44 }
  0x7d   :  { %692 = vmatpush2.msra.mxu1 %v144_v41  ;;  %248 = vperm.xlu0 %976, %v242_v42  }
  0x7e   :  { %693 = vmatprep.subr.mxu1 %v139_v63  ;;  %971 = vmatmul.mubr.msk.f32.gmra.mxu0 %vm266_vm0, %v1536_v40  ;;  %v244_v40 = vld [vmem:[%s1890_s2 + $0x10] sm:$0xff] }
  0x7f   :  { %694 = vmatpush2.msra.mxu1 %v138_v43  ;;  %800 = vmatprep.mubr.f32.mxu0 %v978_v34 }
  0x80   :  { %695 = vmatprep.subr.mxu1 %v133_v32  ;;  %977 = vset.pattern.permute.xlu1 %v979_v44 }
  0x81   :  { %696 = vmatpush2.msra.mxu1 %v132_v45  ;;  %253 = vperm.xlu0 %976, %v243_v46  }
  0x82   :  { %697 = vmatprep.subr.mxu1 %v127_v48  ;;  %972 = vmatmul.mubr.msk.f32.gmra.mxu0 %vm266_vm0, %v1562_v47 }
  0x83   :  { %698 = vmatpush2.msra.mxu1 %v126_v49  ;;  %806 = vmatprep.mubr.f32.mxu0 %v978_v34 }
  0x84   :  { %700 = vmatmul.mubr.f32.vlgmr.msra.gmra.mxu1 %v1392_v1  ;;  %258 = vperm.xlu1 %977, %v244_v40  }
  0x85   :  { %705 = vmatprep.mubr.f32.mxu1 %v1401_v3 }
  0x86   :  { %973 = vmatmul.mubr.msk.f32.gmra.mxu0 %vm266_vm0, %v1588_v54 }
  0x88   :  { %706 = vmatmul.mubr.f32.gmra.mxu1 %v1425_v9  ;;  %263 = vperm.xlu1 %977, %v245_v50  }
  0x89   :  { %711 = vmatprep.mubr.f32.mxu1 %v1433_v11 }
  0x8c   :  { %712 = vmatmul.mubr.f32.gmra.mxu1 %v1455_v17 }
  0x8d   :  { %717 = vmatprep.mubr.f32.mxu1 %v1463_v19 }
  0x90   :  { %718 = vmatmul.mubr.f32.gmra.mxu1 %v1485_v25 }
  0xf8   :  { %v1780_v52 = vpop.permute.xlu0 %248 }
  0xfc   :  { %v1783_v56 = vpop.permute.xlu0 %253 }
  0xff   :  { %v1786_v17 = vpop.permute.xlu1 %258 }
 0x103   :  { %v345_v1 = vpop.f32.mrf.mxu0  ;;  %v1790_v5 = vpop.permute.xlu1 %263 }
 0x104   :  { %v346_v9 = vadd.f32 %v345_v1, %v1780_v52  ;;  %v523_v18 = vpop.f32.mrf.mxu1 }
 0x105   :  { %v347_v3 = vpop.f32.mrf.mxu0  ;;  %v524_v32 = vadd.f32 %v523_v18, %v1780_v52 }
 0x106   :  { %v348_v11 = vadd.f32 %v347_v3, %v1780_v52  ;;  %v525_v37 = vpop.f32.mrf.mxu1 }
 0x107   :  { %v351_v34 = vpop.f32.mrf.mxu0  ;;  %v526_v40 = vadd.f32 %v525_v37, %v1780_v52 }
 0x108   :  { %v352_v57 = vadd.f32 %v351_v34, %v1783_v56 }
 0x109   :  { %v353_v47 = vpop.f32.mrf.mxu0 }
 0x10a   :  { %v354_v61 = vadd.f32 %v353_v47, %v1783_v56 }
 0x10b   :  { %v357_v51 = vpop.f32.mrf.mxu0 }
 0x10c   :  { %v358_v7 = vadd.f32 %v357_v51, %v1786_v17 }
 0x10d   :  { %v359_v53 = vpop.f32.mrf.mxu0 }
 0x10e   :  { %v360_v15 = vadd.f32 %v359_v53, %v1786_v17 }
 0x10f   :  { %v363_v54 = vpop.f32.mrf.mxu0 }
 0x110   :  { %v364_v16 = vadd.f32 %v363_v54, %v1790_v5 }
 0x111   :  { %v365_v55 = vpop.f32.mrf.mxu0 }
 0x112   :  { %v366_v27 = vadd.f32 %v365_v55, %v1790_v5 }
 0x113   :  { %v434_v19 = vpop.f32.mrf.mxu0 }
 0x114   :  { %v435_v25 = vadd.f32 %v434_v19, %v346_v9 }
 0x115   :  { %v436_v58 = vpop.f32.mrf.mxu0 }
 0x116   :  { %v813_v59 = vadd.f32 3.0, %v435_v25  ;;  %v437_v60 = vadd.f32 %v436_v58, %v348_v11 }
 0x117   :  { %v440_v62 = vpop.f32.mrf.mxu0 }
 0x118   :  { %v837_v0 = vmax.f32 %v813_v59, 0.0  ;;  %v814_v2 = vadd.f32 3.0, %v437_v60  ;;  %v441_v4 = vadd.f32 %v440_v62, %v352_v57 }
 0x119   :  { %v442_v6 = vpop.f32.mrf.mxu0 }
 0x11a   :  { %v861_v8 = vmin.f32 %v837_v0, 6.0  ;;  %v838_v10 = vmax.f32 %v814_v2, 0.0  ;;  %v819_v12 = vadd.f32 3.0, %v441_v4  ;;  %v443_v13 = vadd.f32 %v442_v6, %v354_v61 }
 0x11b   :  { %v446_v14 = vpop.f32.mrf.mxu0 }
 0x11c   :  { %v885_v20 = vmul.f32 %v861_v8, %v435_v25  ;;  %v862_v21 = vmin.f32 %v838_v10, 6.0  ;;  %v843_v22 = vmax.f32 %v819_v12, 0.0  ;;  %v820_v23 = vadd.f32 3.0, %v443_v13 }
 0x11d   :  { %v447_v24 = vadd.f32 %v446_v14, %v358_v7  ;;  %v448_v26 = vpop.f32.mrf.mxu0 }
 0x11e   :  { %v909_v28 = vmul.f32 0.16666667, %v885_v20  ;;  %v886_v29 = vmul.f32 %v862_v21, %v437_v60  ;;  %v867_v30 = vmin.f32 %v843_v22, 6.0  ;;  %v844_v31 = vmax.f32 %v820_v23, 0.0 }
 0x11f   :  { %v825_v33 = vadd.f32 3.0, %v447_v24  ;;  %v449_v35 = vadd.f32 %v448_v26, %v360_v15  ;;  %v452_v36 = vpop.f32.mrf.mxu0 }
 0x120   :  { %933 = vst [vmem:[%s1891_s3] sm:$0xff] %v909_v28  ;;  %v910_v38 = vmul.f32 0.16666667, %v886_v29  ;;  %v891_v39 = vmul.f32 %v867_v30, %v441_v4  ;;  %v868_v41 = vmin.f32 %v844_v31, 6.0  ;;  %v453_v42 = vadd.f32 %v452_v36, %v364_v16 }
 0x121   :  { %v849_v63 = vmax.f32 %v825_v33, 0.0  ;;  %v826_v43 = vadd.f32 3.0, %v449_v35  ;;  %v454_v44 = vpop.f32.mrf.mxu0 }
 0x122   :  { %934 = vst [vmem:[%s1891_s3 + $0x8] sm:$0xff] %v910_v38  ;;  %v915_v45 = vmul.f32 0.16666667, %v891_v39  ;;  %v892_v46 = vmul.f32 %v868_v41, %v443_v13  ;;  %v831_v48 = vadd.f32 3.0, %v453_v42  ;;  %v455_v49 = vadd.f32 %v454_v44, %v366_v27 }
 0x123   :  { %v873_v50 = vmin.f32 %v849_v63, 6.0  ;;  %v850_v1 = vmax.f32 %v826_v43, 0.0  ;;  %v612_v3 = vpop.f32.mrf.mxu0 }
 0x124   :  { %940 = vst [vmem:[%s1891_s3 + $0x30] sm:$0xff] %v915_v45  ;;  %v916_v34 = vmul.f32 0.16666667, %v892_v46  ;;  %v855_v47 = vmax.f32 %v831_v48, 0.0  ;;  %v832_v51 = vadd.f32 3.0, %v455_v49  ;;  %v613_v53 = vadd.f32 %v612_v3, %v524_v32 }
 0x125   :  { %v897_v54 = vmul.f32 %v873_v50, %v447_v24  ;;  %v874_v9 = vmin.f32 %v850_v1, 6.0  ;;  %v614_v55 = vpop.f32.mrf.mxu0 }
 0x126   :  { %941 = vst [vmem:[%s1891_s3 + $0x38] sm:$0xff] %v916_v34  ;;  %v879_v11 = vmin.f32 %v855_v47, 6.0  ;;  %v856_v19 = vmax.f32 %v832_v51, 0.0  ;;  %v815_v25 = vadd.f32 3.0, %v613_v53  ;;  %v615_v57 = vadd.f32 %v614_v55, %v526_v40  ;;  %v529_v58 = vpop.f32.mrf.mxu1 }
 0x127   :  { %v921_v59 = vmul.f32 0.16666667, %v897_v54  ;;  %v898_v60 = vmul.f32 %v874_v9, %v449_v35  ;;  %v530_v61 = vadd.f32 %v529_v58, %v1783_v56  ;;  %v618_v62 = vpop.f32.mrf.mxu0 }
 0x128   :  { %v903_v0 = vmul.f32 %v879_v11, %v453_v42  ;;  %v880_v2 = vmin.f32 %v856_v19, 6.0  ;;  %v839_v4 = vmax.f32 %v815_v25, 0.0  ;;  %v816_v6 = vadd.f32 3.0, %v615_v57  ;;  %v531_v7 = vpop.f32.mrf.mxu1 }
 0x129   :  { %946 = vst [vmem:[%s1891_s3 + $0x60] sm:$0xff] %v921_v59  ;;  %v922_v8 = vmul.f32 0.16666667, %v898_v60  ;;  %v532_v10 = vadd.f32 %v531_v7, %v1783_v56  ;;  %v619_v12 = vadd.f32 %v618_v62, %v530_v61  ;;  %v620_v13 = vpop.f32.mrf.mxu0 }
 0x12a   :  { %v927_v14 = vmul.f32 0.16666667, %v903_v0  ;;  %v904_v15 = vmul.f32 %v880_v2, %v455_v49  ;;  %v863_v16 = vmin.f32 %v839_v4, 6.0  ;;  %v840_v18 = vmax.f32 %v816_v6, 0.0  ;;  %v535_v20 = vpop.f32.mrf.mxu1 }
 0x12b   :  { %947 = vst [vmem:[%s1891_s3 + $0x68] sm:$0xff] %v922_v8  ;;  %v821_v21 = vadd.f32 3.0, %v619_v12  ;;  %v536_v22 = vadd.f32 %v535_v20, %v1786_v17  ;;  %v621_v23 = vadd.f32 %v620_v13, %v532_v10 }
 0x12c   :  { %952 = vst [vmem:[%s1891_s3 + $0x90] sm:$0xff] %v927_v14  ;;  %v928_v24 = vmul.f32 0.16666667, %v904_v15  ;;  %v887_v26 = vmul.f32 %v863_v16, %v613_v53  ;;  %v864_v27 = vmin.f32 %v840_v18, 6.0  ;;  %v537_v28 = vpop.f32.mrf.mxu1  ;;  %v624_v29 = vpop.f32.mrf.mxu0 }
 0x12d   :  { %v845_v30 = vmax.f32 %v821_v21, 0.0  ;;  %v822_v31 = vadd.f32 3.0, %v621_v23  ;;  %v538_v33 = vadd.f32 %v537_v28, %v1786_v17  ;;  %v625_v35 = vadd.f32 %v624_v29, %v536_v22 }
 0x12e   :  { %953 = vst [vmem:[%s1891_s3 + $0x98] sm:$0xff] %v928_v24  ;;  %v911_v36 = vmul.f32 0.16666667, %v887_v26  ;;  %v888_v37 = vmul.f32 %v864_v27, %v615_v57  ;;  %v626_v38 = vpop.f32.mrf.mxu0 }
 0x12f   :  { %v869_v39 = vmin.f32 %v845_v30, 6.0  ;;  %v846_v41 = vmax.f32 %v822_v31, 0.0  ;;  %v827_v42 = vadd.f32 3.0, %v625_v35  ;;  %v627_v63 = vadd.f32 %v626_v38, %v538_v33 }
 0x130   :  { %935 = vst [vmem:[%s1891_s3 + $0x10] sm:$0xff] %v911_v36  ;;  %v912_v43 = vmul.f32 0.16666667, %v888_v37  ;;  %v541_v44 = vpop.f32.mrf.mxu1 }
 0x131   :  { %v893_v32 = vmul.f32 %v869_v39, %v619_v12  ;;  %v870_v45 = vmin.f32 %v846_v41, 6.0  ;;  %v851_v46 = vmax.f32 %v827_v42, 0.0  ;;  %v542_v48 = vadd.f32 %v541_v44, %v1790_v5 }
 0x132   :  { %936 = vst [vmem:[%s1891_s3 + $0x18] sm:$0xff] %v912_v43  ;;  %v828_v49 = vadd.f32 3.0, %v627_v63  ;;  %v543_v40 = vpop.f32.mrf.mxu1  ;;  %v630_v50 = vpop.f32.mrf.mxu0 }
 0x133   :  { %v917_v1 = vmul.f32 0.16666667, %v893_v32  ;;  %v894_v3 = vmul.f32 %v870_v45, %v621_v23  ;;  %v875_v34 = vmin.f32 %v851_v46, 6.0  ;;  %v544_v47 = vadd.f32 %v543_v40, %v1790_v5 }
 0x134   :  { %v852_v51 = vmax.f32 %v828_v49, 0.0  ;;  %v631_v53 = vadd.f32 %v630_v50, %v542_v48  ;;  %v632_v54 = vpop.f32.mrf.mxu0 }
 0x135   :  { %942 = vst [vmem:[%s1891_s3 + $0x40] sm:$0xff] %v917_v1  ;;  %v918_v9 = vmul.f32 0.16666667, %v894_v3  ;;  %v899_v55 = vmul.f32 %v875_v34, %v625_v35  ;;  %v633_v11 = vadd.f32 %v632_v54, %v544_v47 }
 0x136   :  { %v876_v19 = vmin.f32 %v852_v51, 6.0  ;;  %v833_v25 = vadd.f32 3.0, %v631_v53 }
 0x137   :  { %943 = vst [vmem:[%s1891_s3 + $0x48] sm:$0xff] %v918_v9  ;;  %v923_v57 = vmul.f32 0.16666667, %v899_v55  ;;  %v834_v58 = vadd.f32 3.0, %v633_v11 }
 0x138   :  { %v900_v59 = vmul.f32 %v876_v19, %v627_v63  ;;  %v857_v60 = vmax.f32 %v833_v25, 0.0 }
 0x139   :  { %948 = vst [vmem:[%s1891_s3 + $0x70] sm:$0xff] %v923_v57  ;;  %v858_v61 = vmax.f32 %v834_v58, 0.0 }
 0x13a   :  { %v924_v62 = vmul.f32 0.16666667, %v900_v59  ;;  %v881_v0 = vmin.f32 %v857_v60, 6.0  ;;  %v790_v2 = vpop.f32.mrf.mxu0 }
 0x13b   :  { %v882_v4 = vmin.f32 %v858_v61, 6.0 }
 0x13c   :  { %949 = vst [vmem:[%s1891_s3 + $0x78] sm:$0xff] %v924_v62  ;;  %v905_v6 = vmul.f32 %v881_v0, %v631_v53  ;;  %v792_v7 = vpop.f32.mrf.mxu0 }
 0x13d   :  { %v906_v8 = vmul.f32 %v882_v4, %v633_v11 }
 0x13e   :  { %v929_v10 = vmul.f32 0.16666667, %v905_v6  ;;  %v796_v13 = vpop.f32.mrf.mxu0 }
 0x13f   :  { %v930_v12 = vmul.f32 0.16666667, %v906_v8 }
 0x140   :  { %954 = vst [vmem:[%s1891_s3 + $0xa0] sm:$0xff] %v929_v10  ;;  %v798_v15 = vpop.f32.mrf.mxu0 }
 0x141   :  { %955 = vst [vmem:[%s1891_s3 + $0xa8] sm:$0xff] %v930_v12 }
 0x142   :  { %v802_v23 = vpop.f32.mrf.mxu0 }
 0x144   :  { %v701_v14 = vpop.f32.mrf.mxu1  ;;  %v804_v36 = vpop.f32.mrf.mxu0 }
 0x145   :  { %v702_v16 = vadd.f32 %v701_v14, %v1780_v52 }
 0x146   :  { %v703_v18 = vpop.f32.mrf.mxu1  ;;  %v808_v49 = vpop.f32.mrf.mxu0 }
 0x147   :  { %v791_v20 = vadd.f32 %v790_v2, %v702_v16  ;;  %v704_v21 = vadd.f32 %v703_v18, %v1780_v52 }
 0x148   :  { %v707_v22 = vpop.f32.mrf.mxu1  ;;  %v810_v25 = vpop.f32.mrf.mxu0 }
 0x149   :  { %v817_v24 = vadd.f32 3.0, %v791_v20  ;;  %v793_v26 = vadd.f32 %v792_v7, %v704_v21  ;;  %v708_v27 = vadd.f32 %v707_v22, %v1783_v56 }
 0x14a   :  { %v709_v28 = vpop.f32.mrf.mxu1 }
 0x14b   :  { %v841_v29 = vmax.f32 %v817_v24, 0.0  ;;  %v818_v30 = vadd.f32 3.0, %v793_v26  ;;  %v797_v31 = vadd.f32 %v796_v13, %v708_v27  ;;  %v710_v33 = vadd.f32 %v709_v28, %v1783_v56 }
 0x14c   :  { %v713_v35 = vpop.f32.mrf.mxu1 }
 0x14d   :  { %v865_v37 = vmin.f32 %v841_v29, 6.0  ;;  %v842_v38 = vmax.f32 %v818_v30, 0.0  ;;  %v823_v39 = vadd.f32 3.0, %v797_v31  ;;  %v799_v41 = vadd.f32 %v798_v15, %v710_v33 }
 0x14e   :  { %v714_v52 = vadd.f32 %v713_v35, %v1786_v17  ;;  %v715_v42 = vpop.f32.mrf.mxu1 }
 0x14f   :  { %v889_v63 = vmul.f32 %v865_v37, %v791_v20  ;;  %v866_v43 = vmin.f32 %v842_v38, 6.0  ;;  %v847_v44 = vmax.f32 %v823_v39, 0.0  ;;  %v824_v32 = vadd.f32 3.0, %v799_v41 }
 0x150   :  { %v803_v45 = vadd.f32 %v802_v23, %v714_v52  ;;  %v716_v46 = vadd.f32 %v715_v42, %v1786_v17  ;;  %v719_v48 = vpop.f32.mrf.mxu1 }
 0x151   :  { %v913_v40 = vmul.f32 0.16666667, %v889_v63  ;;  %v890_v56 = vmul.f32 %v866_v43, %v793_v26  ;;  %v871_v50 = vmin.f32 %v847_v44, 6.0  ;;  %v848_v1 = vmax.f32 %v824_v32, 0.0 }
 0x152   :  { %v829_v3 = vadd.f32 3.0, %v803_v45  ;;  %v805_v34 = vadd.f32 %v804_v36, %v716_v46  ;;  %v720_v47 = vadd.f32 %v719_v48, %v1790_v5  ;;  %v721_v51 = vpop.f32.mrf.mxu1 }
 0x153   :  { %937 = vst [vmem:[%s1891_s3 + $0x20] sm:$0xff] %v913_v40  ;;  %v914_v53 = vmul.f32 0.16666667, %v890_v56  ;;  %v895_v54 = vmul.f32 %v871_v50, %v797_v31  ;;  %v872_v9 = vmin.f32 %v848_v1, 6.0  ;;  %v722_v17 = vadd.f32 %v721_v51, %v1790_v5 }
 0x154   :  { %v853_v55 = vmax.f32 %v829_v3, 0.0  ;;  %v830_v11 = vadd.f32 3.0, %v805_v34  ;;  %v809_v19 = vadd.f32 %v808_v49, %v720_v47 }
 0x155   :  { %939 = vst.msk [vmem:[%s1891_s3 + $0x28] sm:$0xff] %vm938_vm1, %v914_v53  ;;  %v919_v57 = vmul.f32 0.16666667, %v895_v54  ;;  %v896_v58 = vmul.f32 %v872_v9, %v799_v41  ;;  %v811_v59 = vadd.f32 %v810_v25, %v722_v17 }
 0x156   :  { %v877_v60 = vmin.f32 %v853_v55, 6.0  ;;  %v854_v61 = vmax.f32 %v830_v11, 0.0  ;;  %v835_v62 = vadd.f32 3.0, %v809_v19 }
 0x157   :  { %944 = vst [vmem:[%s1891_s3 + $0x50] sm:$0xff] %v919_v57  ;;  %v920_v5 = vmul.f32 0.16666667, %v896_v58  ;;  %v836_v0 = vadd.f32 3.0, %v811_v59 }
 0x158   :  { %v901_v2 = vmul.f32 %v877_v60, %v803_v45  ;;  %v878_v4 = vmin.f32 %v854_v61, 6.0  ;;  %v859_v6 = vmax.f32 %v835_v62, 0.0 }
 0x159   :  { %945 = vst.msk [vmem:[%s1891_s3 + $0x58] sm:$0xff] %vm938_vm1, %v920_v5  ;;  %v860_v7 = vmax.f32 %v836_v0, 0.0 }
 0x15a   :  { %v925_v8 = vmul.f32 0.16666667, %v901_v2  ;;  %v902_v10 = vmul.f32 %v878_v4, %v805_v34  ;;  %v883_v12 = vmin.f32 %v859_v6, 6.0 }
 0x15b   :  { %v884_v13 = vmin.f32 %v860_v7, 6.0 }
 0x15c   :  { %950 = vst [vmem:[%s1891_s3 + $0x80] sm:$0xff] %v925_v8  ;;  %v926_v14 = vmul.f32 0.16666667, %v902_v10  ;;  %v907_v15 = vmul.f32 %v883_v12, %v809_v19 }
 0x15d   :  { %v908_v16 = vmul.f32 %v884_v13, %v811_v59 }
 0x15e   :  { %951 = vst.msk [vmem:[%s1891_s3 + $0x88] sm:$0xff] %vm938_vm1, %v926_v14  ;;  %v931_v18 = vmul.f32 0.16666667, %v907_v15 }
 0x15f   :  { %v932_v20 = vmul.f32 0.16666667, %v908_v16 }
 0x160   :  { %956 = vst [vmem:[%s1891_s3 + $0xb0] sm:$0xff] %v931_v18 }
 0x161   :  { %957 = vst.msk [vmem:[%s1891_s3 + $0xb8] sm:$0xff] %vm938_vm1, %v932_v20 }

</bundles_post_ra>
